<compile_context>
chip_gen: v6e
topology: v6e:2x2x1
jax: 0.10.0
libtpu: 0.0.40
codegen_flags: <defaults>
</compile_context>

<pallas_src>
import functools

import jax
import jax.numpy as jnp
from jax.experimental import pallas as pl
from jax.experimental.pallas import tpu as pltpu

EPS = 1e-5


# --------------------------- fused single-call path -------------------------

def _fused_conv_bn_kernel(x_ref, w_ref, gamma_ref, beta_ref, o_ref, *,
                          inv_m, cast_bf16):
    """Whole problem resident in VMEM: conv matmul + global BN stats + affine."""
    x = x_ref[...]                         # (C_in,  M)
    w = w_ref[...]                         # (C_out, C_in)
    if cast_bf16:
        # In-kernel cast: avoids a wrapper-side HBM copy of X; f32 accumulate.
        x = x.astype(jnp.bfloat16)
        w = w.astype(jnp.bfloat16)
    # 1x1 conv over NCHW == (C_out, C_in) @ (C_in, N*H*W) on the MXU.
    y = jnp.dot(w, x, preferred_element_type=jnp.float32)       # (C_out, M)
    # Global per-channel training-mode BatchNorm statistics (biased variance,
    # centered form: Y never leaves VMEM, so the second traversal is cheap).
    mean = jnp.sum(y, axis=1, keepdims=True) * inv_m             # (C_out, 1)
    yc = y - mean
    var = jnp.sum(yc * yc, axis=1, keepdims=True) * inv_m        # (C_out, 1)
    inv_std = jax.lax.rsqrt(var + EPS)
    scale = gamma_ref[...] * inv_std                              # (C_out, 1)
    o_ref[...] = (yc * scale + beta_ref[...]).astype(o_ref.dtype)


# ------------------------ two-pass fallback (large M) ------------------------

def _matmul_stats_kernel(x_ref, w_ref, y_ref, stats_ref, *, cast_bf16):
    # x_ref: (C_in, TILE_M); w_ref: (C_out, C_in); y_ref: (C_out, TILE_M)
    # stats_ref: (1, 2, C_out) -- lane-dense per-tile [sum, sumsq] rows.
    x = x_ref[...]
    w = w_ref[...]
    if cast_bf16:
        x = x.astype(jnp.bfloat16)
        w = w.astype(jnp.bfloat16)
    y = jnp.dot(w, x, preferred_element_type=jnp.float32)
    y_ref[...] = y
    s1 = jnp.sum(y, axis=1, keepdims=True)         # (C_out, 1)
    s2 = jnp.sum(y * y, axis=1, keepdims=True)     # (C_out, 1)
    st = jnp.concatenate([s1, s2], axis=1)         # (C_out, 2)
    stats_ref[0] = st.T                            # (2, C_out) whole-row store


def _normalize_kernel(y_ref, scale_ref, shift_ref, o_ref):
    # y_ref: (C_out, TILE_M); scale/shift: (C_out, 1) broadcast over lanes.
    o_ref[...] = (y_ref[...] * scale_ref[...] + shift_ref[...]).astype(o_ref.dtype)


def _two_pass(x_mat, w_mat, gamma2, beta2, M, out_dtype, matmul_bf16,
              tile_m_cap):
    C_in = x_mat.shape[0]
    C_out = w_mat.shape[0]

    # Cap tile_m (v7x has only 64 MiB physical VMEM; 2048 keeps the per-step
    # double-buffered working set comfortable on every generation), then pick
    # the smallest 128-multiple tile so padding waste is < 128 cols per tile.
    tile_m_cap = max(256, int(tile_m_cap))
    num_tiles = pl.cdiv(M, tile_m_cap)
    per_tile = -(-M // num_tiles)
    tile_m = -(-per_tile // 128) * 128
    m_pad = num_tiles * tile_m
    if m_pad != M:
        # Zero columns contribute 0 to sum / sumsq; we divide by the true M,
        # so the BatchNorm statistics stay exact.
        x_mat = jnp.pad(x_mat, ((0, 0), (0, m_pad - M)))

    # Pass 1: conv matmul + per-tile lane-dense stats partials.
    y, stats = pl.pallas_call(
        functools.partial(_matmul_stats_kernel, cast_bf16=matmul_bf16),
        grid=(num_tiles,),
        out_shape=(
            jax.ShapeDtypeStruct((C_out, m_pad), jnp.float32),
            jax.ShapeDtypeStruct((num_tiles, 2, C_out), jnp.float32),
        ),
        in_specs=[
            pl.BlockSpec((C_in, tile_m), lambda i: (0, i)),
            pl.BlockSpec((C_out, C_in), lambda i: (0, 0)),
        ],
        out_specs=(
            pl.BlockSpec((C_out, tile_m), lambda i: (0, i)),
            pl.BlockSpec((1, 2, C_out), lambda i: (i, 0, 0)),
        ),
        compiler_params=pltpu.CompilerParams(
            dimension_semantics=("parallel",)),
    )(x_mat, w_mat)

    # Tiny cross-tile reduction + BN affine folding (XLA; 2*C_out values).
    tot = jnp.sum(stats, axis=0)                     # (2, C_out)
    mean = tot[0] / M
    # TODO(synk): E[y^2]-E[y]^2 is cancellation-prone for very large M /
    # large-mean activations; acceptable here, clamped at 0.
    var = jnp.maximum(tot[1] / M - mean * mean, 0.0)
    inv_std = jax.lax.rsqrt(var + EPS)
    g = gamma2[:, 0]
    scale = (g * inv_std).reshape(C_out, 1)
    shift = (beta2[:, 0] - mean * g * inv_std).reshape(C_out, 1)

    # Pass 2: fused per-channel scale/shift over Y tiles.
    out_mat = pl.pallas_call(
        _normalize_kernel,
        grid=(num_tiles,),
        out_shape=jax.ShapeDtypeStruct((C_out, m_pad), out_dtype),
        in_specs=[
            pl.BlockSpec((C_out, tile_m), lambda i: (0, i)),
            pl.BlockSpec((C_out, 1), lambda i: (0, 0)),
            pl.BlockSpec((C_out, 1), lambda i: (0, 0)),
        ],
        out_specs=pl.BlockSpec((C_out, tile_m), lambda i: (0, i)),
        compiler_params=pltpu.CompilerParams(
            dimension_semantics=("parallel",)),
    )(y, scale, shift)
    return out_mat[:, :M]


# --------------------------------- wrapper ----------------------------------

@functools.partial(jax.jit,
                   static_argnames=("matmul_bf16", "force_two_pass",
                                    "tile_m_cap"))
def conv2d_batchnorm(x_nchw, weight_oihw, gamma, beta, *, matmul_bf16=False,
                     force_two_pass=False, tile_m_cap=2048):
    """1x1 conv (no bias) + BatchNorm2d (training-mode statistics).

    x_nchw:      (N, C_in, H, W)
    weight_oihw: (C_out, C_in, 1, 1)
    gamma, beta: (C_out,)
    """
    N, C_in, H, W = x_nchw.shape
    C_out = weight_oihw.shape[0]
    M = N * H * W
    out_dtype = x_nchw.dtype

    # NCHW is already channel-major: (N, C_in, H*W) -> (C_in, N*H*W).
    # For the module's N == 1 this is a pure reshape (no HBM transpose).
    # TODO(synk): for N > 1 index the batch via a grid axis instead of this
    # wrapper transpose.
    x_mat = jnp.transpose(x_nchw.reshape(N, C_in, H * W), (1, 0, 2)).reshape(C_in, M)
    w_mat = weight_oihw.reshape(C_out, C_in)
    gamma2 = gamma.astype(jnp.float32).reshape(C_out, 1)
    beta2 = beta.astype(jnp.float32).reshape(C_out, 1)

    # Whole-problem VMEM footprint (f32): X + W + Y (+ temps) + out.
    fused_bytes = 4 * (C_in * M + C_out * C_in + 3 * C_out * M)
    if (not force_two_pass) and fused_bytes <= 16 * 1024 * 1024:
        # Single fused kernel: no grid, full-extent blocks, no padding of M.
        # (Megacore is irrelevant here; at these sizes the op is launch-bound.)
        out_mat = pl.pallas_call(
            functools.partial(_fused_conv_bn_kernel, inv_m=1.0 / M,
                              cast_bf16=matmul_bf16),
            out_shape=jax.ShapeDtypeStruct((C_out, M), out_dtype),
            in_specs=[pl.BlockSpec(memory_space=pltpu.MemorySpace.VMEM)] * 4,
            out_specs=pl.BlockSpec(memory_space=pltpu.MemorySpace.VMEM),
        )(x_mat, w_mat, gamma2, beta2)
    else:
        out_mat = _two_pass(x_mat, w_mat, gamma2, beta2, M, out_dtype,
                            matmul_bf16, tile_m_cap)

    # (C_out, N*H*W) -> (N, C_out, H, W); free for N == 1.
    out = jnp.transpose(out_mat.reshape(C_out, N, H * W), (1, 0, 2))
    return out.reshape(N, C_out, H, W)


# -------------------------------- reference ----------------------------------

def reference(x_nchw, weight_oihw, gamma, beta):
    """Pure-JAX reference matching PyTorch Conv2d(1x1) + BatchNorm2d (training)."""
    N, C_in, H, W = x_nchw.shape
    C_out = weight_oihw.shape[0]
    x_mat = jnp.transpose(x_nchw, (0, 2, 3, 1)).reshape(-1, C_in).astype(jnp.float32)
    w_mat = weight_oihw.reshape(C_out, C_in).T.astype(jnp.float32)
    y = x_mat @ w_mat
    mean = y.mean(axis=0, keepdims=True)
    var = ((y - mean) ** 2).mean(axis=0, keepdims=True)
    out = (y - mean) / jnp.sqrt(var + EPS) * gamma[None, :] + beta[None, :]
    return jnp.transpose(out.reshape(N, H, W, C_out), (0, 3, 1, 2)).astype(x_nchw.dtype)


if __name__ == "__main__":
    # Shapes implied by the module: x = (1, 512, 28, 28), Conv2d 512 -> 128.
    N, C_IN, H, W = 1, 512, 28, 28
    C_OUT = 128

    key = jax.random.PRNGKey(0)
    kx, kw, kg, kb = jax.random.split(key, 4)
    x = jax.random.normal(kx, (N, C_IN, H, W), dtype=jnp.float32)
    weight = jax.random.normal(kw, (C_OUT, C_IN, 1, 1), dtype=jnp.float32) * (1.0 / C_IN ** 0.5)
    gamma = 1.0 + 0.1 * jax.random.normal(kg, (C_OUT,), dtype=jnp.float32)
    beta = 0.1 * jax.random.normal(kb, (C_OUT,), dtype=jnp.float32)

    ref = reference(x, weight, gamma, beta)

    # Fused single-kernel f32 path (matches module semantics).
    out = jax.block_until_ready(conv2d_batchnorm(x, weight, gamma, beta))
    assert out.shape == (N, C_OUT, H, W), out.shape
    assert jnp.allclose(out, ref, atol=1e-3, rtol=1e-3), float(jnp.max(jnp.abs(out - ref)))

    # Fused kernel with in-kernel bf16 matmul (f32 accumulate / f32 stats).
    # NOTE: mean/var come from the bf16-input matmul, hence the looser tol.
    out_bf16 = jax.block_until_ready(
        conv2d_batchnorm(x, weight, gamma, beta, matmul_bf16=True))
    assert jnp.allclose(out_bf16, ref, atol=5e-2, rtol=5e-2), \
        float(jnp.max(jnp.abs(out_bf16 - ref)))

    # Two-pass large-M fallback path, forced and multi-tile, for coverage.
    out_tp = jax.block_until_ready(
        conv2d_batchnorm(x, weight, gamma, beta, force_two_pass=True,
                         tile_m_cap=256))
    assert jnp.allclose(out_tp, ref, atol=1e-3, rtol=1e-3), \
        float(jnp.max(jnp.abs(out_tp - ref)))

    print("KERNEL_OK")
</pallas_src>

<mosaic_0001>
module attributes {stable_mosaic.version = 11 : i64} {
  func.func @_fused_conv_bn_kernel(%arg0: memref<512x784xf32, #tpu.memory_space<vmem>>, %arg1: memref<128x512xf32, #tpu.memory_space<vmem>>, %arg2: memref<128x1xf32, #tpu.memory_space<vmem>>, %arg3: memref<128x1xf32, #tpu.memory_space<vmem>>, %arg4: memref<128x784xf32, #tpu.memory_space<vmem>>) attributes {dimension_semantics = [], scalar_prefetch = 0 : i64, scratch_operands = 0 : i64, tpu.core_type = #tpu.core_type<tc>} {
    %c0 = arith.constant 0 : index
    %c0_0 = arith.constant 0 : index
    %0 = vector.load %arg0[%c0, %c0_0] : memref<512x784xf32, #tpu.memory_space<vmem>>, vector<512x784xf32>
    %c0_1 = arith.constant 0 : index
    %c0_2 = arith.constant 0 : index
    %1 = vector.load %arg1[%c0_1, %c0_2] : memref<128x512xf32, #tpu.memory_space<vmem>>, vector<128x512xf32>
    %cst = arith.constant dense<0.000000e+00> : vector<128x784xf32>
    %2 = tpu.matmul %1, %0, %cst {dimension_numbers = #tpu.dot_dimension_numbers<[1], [0], [0], [1], [0, 0, 1, 1], [], []>} : vector<128x512xf32>, vector<512x784xf32>, vector<128x784xf32> -> vector<128x784xf32>
    %cst_3 = arith.constant dense<0.000000e+00> : vector<128xf32>
    %3 = vector.multi_reduction <add>, %2, %cst_3 [1] : vector<128x784xf32> to vector<128xf32>
    %4 = vector.shape_cast %3 : vector<128xf32> to vector<128x1xf32>
    %cst_4 = arith.constant 0.00127551018 : f32
    %5 = vector.broadcast %cst_4 : f32 to vector<128x1xf32>
    %6 = arith.mulf %4, %5 : vector<128x1xf32>
    %7 = vector.broadcast %6 : vector<128x1xf32> to vector<128x784xf32>
    %8 = arith.subf %2, %7 : vector<128x784xf32>
    %9 = arith.mulf %8, %8 : vector<128x784xf32>
    %cst_5 = arith.constant dense<0.000000e+00> : vector<128xf32>
    %10 = vector.multi_reduction <add>, %9, %cst_5 [1] : vector<128x784xf32> to vector<128xf32>
    %11 = vector.shape_cast %10 : vector<128xf32> to vector<128x1xf32>
    %cst_6 = arith.constant 0.00127551018 : f32
    %12 = vector.broadcast %cst_6 : f32 to vector<128x1xf32>
    %13 = arith.mulf %11, %12 : vector<128x1xf32>
    %cst_7 = arith.constant 9.99999974E-6 : f32
    %14 = vector.broadcast %cst_7 : f32 to vector<128x1xf32>
    %15 = arith.addf %13, %14 : vector<128x1xf32>
    %16 = math.rsqrt %15 : vector<128x1xf32>
    %c0_8 = arith.constant 0 : index
    %c0_9 = arith.constant 0 : index
    %17 = vector.load %arg2[%c0_8, %c0_9] : memref<128x1xf32, #tpu.memory_space<vmem>>, vector<128x1xf32>
    %18 = arith.mulf %17, %16 : vector<128x1xf32>
    %19 = vector.broadcast %18 : vector<128x1xf32> to vector<128x784xf32>
    %20 = arith.mulf %8, %19 : vector<128x784xf32>
    %c0_10 = arith.constant 0 : index
    %c0_11 = arith.constant 0 : index
    %21 = vector.load %arg3[%c0_10, %c0_11] : memref<128x1xf32, #tpu.memory_space<vmem>>, vector<128x1xf32>
    %22 = vector.broadcast %21 : vector<128x1xf32> to vector<128x784xf32>
    %23 = arith.addf %20, %22 : vector<128x784xf32>
    %c0_12 = arith.constant 0 : index
    %c0_13 = arith.constant 0 : index
    %24 = vector.load %arg4[%c0_12, %c0_13] : memref<128x784xf32, #tpu.memory_space<vmem>>, vector<128x784xf32>
    tpu.vector_store %arg4[%c0_12, %c0_13], %23 {strides = array<i32>} : memref<128x784xf32, #tpu.memory_space<vmem>>, vector<128x784xf32>,
    return
  }
}

</mosaic_0001>

<bundles_post_ra>
// kernel: conv2d_batchnorm.1
= control target key start
LH: loop header
LB: loop body
LE: loop exit
PB: predicated region body
PF: predicated region fallthrough
CT: control target
= control target key end

     0   :  { %vm1790_vm0 = vcmask 130048   ;;  %s7124_s0 = inlined_call_operand.vmem [shape: f32[512,784], index: 0, kind: input, shape index: {}]   ;;  %s7125_s1 = inlined_call_operand.vmem [shape: f32[128,512], index: 1, kind: input, shape index: {}]   ;;  %s7126_s3 = inlined_call_operand.vmem [shape: f32[128,1], index: 3, kind: input, shape index: {}]   ;;  %s7127_s2 = inlined_call_operand.vmem [shape: f32[128,1], index: 2, kind: input, shape index: {}]   ;;  %s7128_s4 = inlined_call_operand.vmem [shape: f32[128,784], index: 4, kind: output, shape index: {}]  }
   0x1   :  { %v123_v0 = vld [vmem:[%s7124_s0 + $0x350] sm:$0xff]  ;;  %v122_v2 = vld [vmem:[%s7124_s0 + $0x348] sm:$0xff]  ;;  %v116_v4 = vld [vmem:[%s7124_s0 + $0x318] sm:$0xff] }
   0x2   :  { %v347_v1 = vld [vmem:[%s7124_s0 + $0xa50] sm:$0xff]  ;;  %529 = vmatprep.subr.mxu0 %v123_v0  ;;  %v346_v3 = vld [vmem:[%s7124_s0 + $0xa48] sm:$0xff]  ;;  %v340_v5 = vld [vmem:[%s7124_s0 + $0xa18] sm:$0xff] }
   0x3   :  { %690 = vmatprep.subr.mxu1 %v347_v1  ;;  %530 = vmatpush1.msra.mxu0 %v122_v2  ;;  %v115_v6 = vld [vmem:[%s7124_s0 + $0x310] sm:$0xff]  ;;  %v109_v8 = vld [vmem:[%s7124_s0 + $0x2e0] sm:$0xff]  ;;  %v108_v10 = vld [vmem:[%s7124_s0 + $0x2d8] sm:$0xff] }
   0x4   :  { %691 = vmatpush1.msra.mxu1 %v346_v3  ;;  %v339_v7 = vld [vmem:[%s7124_s0 + $0xa10] sm:$0xff]  ;;  %531 = vmatprep.subr.mxu0 %v116_v4  ;;  %v333_v9 = vld [vmem:[%s7124_s0 + $0x9e0] sm:$0xff]  ;;  %v332_v11 = vld [vmem:[%s7124_s0 + $0x9d8] sm:$0xff] }
   0x5   :  { %692 = vmatprep.subr.mxu1 %v340_v5  ;;  %532 = vmatpush1.msra.mxu0 %v115_v6  ;;  %v102_v12 = vld [vmem:[%s7124_s0 + $0x2a8] sm:$0xff]  ;;  %v101_v14 = vld [vmem:[%s7124_s0 + $0x2a0] sm:$0xff]  ;;  %v95_v16 = vld [vmem:[%s7124_s0 + $0x270] sm:$0xff] }
   0x6   :  { %693 = vmatpush1.msra.mxu1 %v339_v7  ;;  %v326_v13 = vld [vmem:[%s7124_s0 + $0x9a8] sm:$0xff]  ;;  %533 = vmatprep.subr.mxu0 %v109_v8  ;;  %v325_v15 = vld [vmem:[%s7124_s0 + $0x9a0] sm:$0xff]  ;;  %v319_v17 = vld [vmem:[%s7124_s0 + $0x970] sm:$0xff] }
   0x7   :  { %694 = vmatprep.subr.mxu1 %v333_v9  ;;  %534 = vmatpush1.msra.mxu0 %v108_v10  ;;  %v94_v18 = vld [vmem:[%s7124_s0 + $0x268] sm:$0xff]  ;;  %v88_v20 = vld [vmem:[%s7124_s0 + $0x238] sm:$0xff]  ;;  %v87_v22 = vld [vmem:[%s7124_s0 + $0x230] sm:$0xff] }
   0x8   :  { %695 = vmatpush1.msra.mxu1 %v332_v11  ;;  %535 = vmatprep.subr.mxu0 %v102_v12  ;;  %v318_v19 = vld [vmem:[%s7124_s0 + $0x968] sm:$0xff]  ;;  %v312_v21 = vld [vmem:[%s7124_s0 + $0x938] sm:$0xff]  ;;  %v311_v23 = vld [vmem:[%s7124_s0 + $0x930] sm:$0xff] }
   0x9   :  { %696 = vmatprep.subr.mxu1 %v326_v13  ;;  %536 = vmatpush1.msra.mxu0 %v101_v14  ;;  %v81_v24 = vld [vmem:[%s7124_s0 + $0x200] sm:$0xff]  ;;  %v80_v26 = vld [vmem:[%s7124_s0 + $0x1f8] sm:$0xff]  ;;  %v74_v28 = vld [vmem:[%s7124_s0 + $0x1c8] sm:$0xff] }
   0xa   :  { %697 = vmatpush1.msra.mxu1 %v325_v15  ;;  %537 = vmatprep.subr.mxu0 %v95_v16  ;;  %v305_v25 = vld [vmem:[%s7124_s0 + $0x900] sm:$0xff]  ;;  %v304_v27 = vld [vmem:[%s7124_s0 + $0x8f8] sm:$0xff]  ;;  %v298_v29 = vld [vmem:[%s7124_s0 + $0x8c8] sm:$0xff] }
   0xb   :  { %698 = vmatprep.subr.mxu1 %v319_v17  ;;  %538 = vmatpush1.msra.mxu0 %v94_v18  ;;  %v73_v30 = vld [vmem:[%s7124_s0 + $0x1c0] sm:$0xff]  ;;  %v67_v32 = vld [vmem:[%s7124_s0 + $0x190] sm:$0xff]  ;;  %v66_v34 = vld [vmem:[%s7124_s0 + $0x188] sm:$0xff] }
   0xc   :  { %699 = vmatpush1.msra.mxu1 %v318_v19  ;;  %539 = vmatprep.subr.mxu0 %v88_v20  ;;  %v297_v31 = vld [vmem:[%s7124_s0 + $0x8c0] sm:$0xff]  ;;  %v291_v33 = vld [vmem:[%s7124_s0 + $0x890] sm:$0xff]  ;;  %v290_v35 = vld [vmem:[%s7124_s0 + $0x888] sm:$0xff] }
   0xd   :  { %700 = vmatprep.subr.mxu1 %v312_v21  ;;  %540 = vmatpush1.msra.mxu0 %v87_v22  ;;  %v60_v36 = vld [vmem:[%s7124_s0 + $0x158] sm:$0xff]  ;;  %v59_v38 = vld [vmem:[%s7124_s0 + $0x150] sm:$0xff]  ;;  %v53_v40 = vld [vmem:[%s7124_s0 + $0x120] sm:$0xff] }
   0xe   :  { %701 = vmatpush1.msra.mxu1 %v311_v23  ;;  %541 = vmatprep.subr.mxu0 %v81_v24  ;;  %v284_v37 = vld [vmem:[%s7124_s0 + $0x858] sm:$0xff]  ;;  %v283_v39 = vld [vmem:[%s7124_s0 + $0x850] sm:$0xff]  ;;  %v277_v41 = vld [vmem:[%s7124_s0 + $0x820] sm:$0xff] }
   0xf   :  { %702 = vmatprep.subr.mxu1 %v305_v25  ;;  %542 = vmatpush1.msra.mxu0 %v80_v26  ;;  %v52_v42 = vld [vmem:[%s7124_s0 + $0x118] sm:$0xff]  ;;  %v46_v44 = vld [vmem:[%s7124_s0 + $0xe8] sm:$0xff]  ;;  %v45_v46 = vld [vmem:[%s7124_s0 + $0xe0] sm:$0xff] }
  0x10   :  { %703 = vmatpush1.msra.mxu1 %v304_v27  ;;  %543 = vmatprep.subr.mxu0 %v74_v28  ;;  %v276_v43 = vld [vmem:[%s7124_s0 + $0x818] sm:$0xff]  ;;  %v270_v45 = vld [vmem:[%s7124_s0 + $0x7e8] sm:$0xff]  ;;  %v269_v47 = vld [vmem:[%s7124_s0 + $0x7e0] sm:$0xff] }
  0x11   :  { %704 = vmatprep.subr.mxu1 %v298_v29  ;;  %544 = vmatpush1.msra.mxu0 %v73_v30  ;;  %v39_v48 = vld [vmem:[%s7124_s0 + $0xb0] sm:$0xff]  ;;  %v38_v50 = vld [vmem:[%s7124_s0 + $0xa8] sm:$0xff]  ;;  %v32_v52 = vld [vmem:[%s7124_s0 + $0x78] sm:$0xff] }
  0x12   :  { %705 = vmatpush1.msra.mxu1 %v297_v31  ;;  %545 = vmatprep.subr.mxu0 %v67_v32  ;;  %v263_v49 = vld [vmem:[%s7124_s0 + $0x7b0] sm:$0xff]  ;;  %v262_v51 = vld [vmem:[%s7124_s0 + $0x7a8] sm:$0xff]  ;;  %v256_v53 = vld [vmem:[%s7124_s0 + $0x778] sm:$0xff] }
  0x13   :  { %706 = vmatprep.subr.mxu1 %v291_v33  ;;  %546 = vmatpush1.msra.mxu0 %v66_v34  ;;  %v31_v54 = vld [vmem:[%s7124_s0 + $0x70] sm:$0xff]  ;;  %v25_v56 = vld [vmem:[%s7124_s0 + $0x40] sm:$0xff]  ;;  %v24_v58 = vld [vmem:[%s7124_s0 + $0x38] sm:$0xff] }
  0x14   :  { %707 = vmatpush1.msra.mxu1 %v290_v35  ;;  %547 = vmatprep.subr.mxu0 %v60_v36  ;;  %v255_v55 = vld [vmem:[%s7124_s0 + $0x770] sm:$0xff]  ;;  %v249_v57 = vld [vmem:[%s7124_s0 + $0x740] sm:$0xff]  ;;  %v248_v59 = vld [vmem:[%s7124_s0 + $0x738] sm:$0xff] }
  0x15   :  { %708 = vmatprep.subr.mxu1 %v284_v37  ;;  %548 = vmatpush1.msra.mxu0 %v59_v38  ;;  %v18_v60 = vld [vmem:[%s7124_s0 + $0x8] sm:$0xff]  ;;  %v17_v62 = vld [vmem:[%s7124_s0] sm:$0xff]  ;;  %v235_v0 = vld [vmem:[%s7124_s0 + $0x6d0] sm:$0xff] }
  0x16   :  { %709 = vmatpush1.msra.mxu1 %v283_v39  ;;  %549 = vmatprep.subr.mxu0 %v53_v40  ;;  %v242_v61 = vld [vmem:[%s7124_s0 + $0x708] sm:$0xff]  ;;  %v241_v63 = vld [vmem:[%s7124_s0 + $0x700] sm:$0xff]  ;;  %v459_v1 = vld [vmem:[%s7124_s0 + $0xdd0] sm:$0xff] }
  0x17   :  { %710 = vmatprep.subr.mxu1 %v277_v41  ;;  %550 = vmatpush1.msra.mxu0 %v52_v42  ;;  %v234_v2 = vld [vmem:[%s7124_s0 + $0x6c8] sm:$0xff]  ;;  %v228_v4 = vld [vmem:[%s7124_s0 + $0x698] sm:$0xff]  ;;  %v227_v6 = vld [vmem:[%s7124_s0 + $0x690] sm:$0xff] }
  0x18   :  { %711 = vmatpush1.msra.mxu1 %v276_v43  ;;  %551 = vmatprep.subr.mxu0 %v46_v44  ;;  %v458_v3 = vld [vmem:[%s7124_s0 + $0xdc8] sm:$0xff]  ;;  %v452_v5 = vld [vmem:[%s7124_s0 + $0xd98] sm:$0xff]  ;;  %v451_v7 = vld [vmem:[%s7124_s0 + $0xd90] sm:$0xff] }
  0x19   :  { %712 = vmatprep.subr.mxu1 %v270_v45  ;;  %552 = vmatpush1.msra.mxu0 %v45_v46  ;;  %v221_v8 = vld [vmem:[%s7124_s0 + $0x660] sm:$0xff]  ;;  %v220_v10 = vld [vmem:[%s7124_s0 + $0x658] sm:$0xff]  ;;  %v214_v12 = vld [vmem:[%s7124_s0 + $0x628] sm:$0xff] }
  0x1a   :  { %713 = vmatpush1.msra.mxu1 %v269_v47  ;;  %553 = vmatprep.subr.mxu0 %v39_v48  ;;  %v445_v9 = vld [vmem:[%s7124_s0 + $0xd60] sm:$0xff]  ;;  %v444_v11 = vld [vmem:[%s7124_s0 + $0xd58] sm:$0xff]  ;;  %v438_v13 = vld [vmem:[%s7124_s0 + $0xd28] sm:$0xff] }
  0x1b   :  { %714 = vmatprep.subr.mxu1 %v263_v49  ;;  %554 = vmatpush1.msra.mxu0 %v38_v50  ;;  %v213_v14 = vld [vmem:[%s7124_s0 + $0x620] sm:$0xff]  ;;  %v207_v16 = vld [vmem:[%s7124_s0 + $0x5f0] sm:$0xff]  ;;  %v206_v18 = vld [vmem:[%s7124_s0 + $0x5e8] sm:$0xff] }
  0x1c   :  { %715 = vmatpush1.msra.mxu1 %v262_v51  ;;  %555 = vmatprep.subr.mxu0 %v32_v52  ;;  %v437_v15 = vld [vmem:[%s7124_s0 + $0xd20] sm:$0xff]  ;;  %v431_v17 = vld [vmem:[%s7124_s0 + $0xcf0] sm:$0xff]  ;;  %v430_v19 = vld [vmem:[%s7124_s0 + $0xce8] sm:$0xff] }
  0x1d   :  { %716 = vmatprep.subr.mxu1 %v256_v53  ;;  %556 = vmatpush1.msra.mxu0 %v31_v54  ;;  %v200_v20 = vld [vmem:[%s7124_s0 + $0x5b8] sm:$0xff]  ;;  %v199_v22 = vld [vmem:[%s7124_s0 + $0x5b0] sm:$0xff]  ;;  %v193_v24 = vld [vmem:[%s7124_s0 + $0x580] sm:$0xff] }
  0x1e   :  { %717 = vmatpush1.msra.mxu1 %v255_v55  ;;  %557 = vmatprep.subr.mxu0 %v25_v56  ;;  %v424_v21 = vld [vmem:[%s7124_s0 + $0xcb8] sm:$0xff]  ;;  %v423_v23 = vld [vmem:[%s7124_s0 + $0xcb0] sm:$0xff]  ;;  %v417_v25 = vld [vmem:[%s7124_s0 + $0xc80] sm:$0xff] }
  0x1f   :  { %718 = vmatprep.subr.mxu1 %v249_v57  ;;  %558 = vmatpush1.msra.mxu0 %v24_v58  ;;  %v192_v26 = vld [vmem:[%s7124_s0 + $0x578] sm:$0xff]  ;;  %v186_v28 = vld [vmem:[%s7124_s0 + $0x548] sm:$0xff]  ;;  %v185_v30 = vld [vmem:[%s7124_s0 + $0x540] sm:$0xff] }
  0x20   :  { %719 = vmatpush1.msra.mxu1 %v248_v59  ;;  %559 = vmatprep.subr.mxu0 %v18_v60  ;;  %v416_v27 = vld [vmem:[%s7124_s0 + $0xc78] sm:$0xff]  ;;  %v410_v29 = vld [vmem:[%s7124_s0 + $0xc48] sm:$0xff]  ;;  %v409_v31 = vld [vmem:[%s7124_s0 + $0xc40] sm:$0xff] }
  0x21   :  { %720 = vmatprep.subr.mxu1 %v242_v61  ;;  %560 = vmatpush1.msra.mxu0 %v17_v62  ;;  %v179_v32 = vld [vmem:[%s7124_s0 + $0x510] sm:$0xff]  ;;  %v178_v34 = vld [vmem:[%s7124_s0 + $0x508] sm:$0xff]  ;;  %v172_v36 = vld [vmem:[%s7124_s0 + $0x4d8] sm:$0xff] }
  0x22   :  { %721 = vmatpush1.msra.mxu1 %v241_v63  ;;  %561 = vmatprep.subr.mxu0 %v235_v0  ;;  %v403_v33 = vld [vmem:[%s7124_s0 + $0xc10] sm:$0xff]  ;;  %v402_v35 = vld [vmem:[%s7124_s0 + $0xc08] sm:$0xff]  ;;  %v396_v37 = vld [vmem:[%s7124_s0 + $0xbd8] sm:$0xff] }
  0x23   :  { %722 = vmatprep.subr.mxu1 %v459_v1  ;;  %562 = vmatpush2.msra.mxu0 %v234_v2  ;;  %v171_v38 = vld [vmem:[%s7124_s0 + $0x4d0] sm:$0xff]  ;;  %v165_v40 = vld [vmem:[%s7124_s0 + $0x4a0] sm:$0xff]  ;;  %v164_v42 = vld [vmem:[%s7124_s0 + $0x498] sm:$0xff] }
  0x24   :  { %723 = vmatpush2.msra.mxu1 %v458_v3  ;;  %563 = vmatprep.subr.mxu0 %v228_v4  ;;  %v395_v39 = vld [vmem:[%s7124_s0 + $0xbd0] sm:$0xff]  ;;  %v389_v41 = vld [vmem:[%s7124_s0 + $0xba0] sm:$0xff]  ;;  %v388_v43 = vld [vmem:[%s7124_s0 + $0xb98] sm:$0xff] }
  0x25   :  { %724 = vmatprep.subr.mxu1 %v452_v5  ;;  %564 = vmatpush2.msra.mxu0 %v227_v6  ;;  %v158_v44 = vld [vmem:[%s7124_s0 + $0x468] sm:$0xff]  ;;  %v157_v46 = vld [vmem:[%s7124_s0 + $0x460] sm:$0xff]  ;;  %v151_v48 = vld [vmem:[%s7124_s0 + $0x430] sm:$0xff] }
  0x26   :  { %725 = vmatpush2.msra.mxu1 %v451_v7  ;;  %565 = vmatprep.subr.mxu0 %v221_v8  ;;  %v382_v45 = vld [vmem:[%s7124_s0 + $0xb68] sm:$0xff]  ;;  %v381_v47 = vld [vmem:[%s7124_s0 + $0xb60] sm:$0xff]  ;;  %v375_v49 = vld [vmem:[%s7124_s0 + $0xb30] sm:$0xff] }
  0x27   :  { %726 = vmatprep.subr.mxu1 %v445_v9  ;;  %566 = vmatpush2.msra.mxu0 %v220_v10  ;;  %v150_v50 = vld [vmem:[%s7124_s0 + $0x428] sm:$0xff]  ;;  %v144_v52 = vld [vmem:[%s7124_s0 + $0x3f8] sm:$0xff]  ;;  %v143_v54 = vld [vmem:[%s7124_s0 + $0x3f0] sm:$0xff] }
  0x28   :  { %727 = vmatpush2.msra.mxu1 %v444_v11  ;;  %567 = vmatprep.subr.mxu0 %v214_v12  ;;  %v374_v51 = vld [vmem:[%s7124_s0 + $0xb28] sm:$0xff]  ;;  %v368_v53 = vld [vmem:[%s7124_s0 + $0xaf8] sm:$0xff]  ;;  %v367_v55 = vld [vmem:[%s7124_s0 + $0xaf0] sm:$0xff] }
  0x29   :  { %728 = vmatprep.subr.mxu1 %v438_v13  ;;  %568 = vmatpush2.msra.mxu0 %v213_v14  ;;  %v137_v56 = vld [vmem:[%s7124_s0 + $0x3c0] sm:$0xff]  ;;  %v136_v58 = vld [vmem:[%s7124_s0 + $0x3b8] sm:$0xff]  ;;  %v130_v60 = vld [vmem:[%s7124_s0 + $0x388] sm:$0xff] }
  0x2a   :  { %729 = vmatpush2.msra.mxu1 %v437_v15  ;;  %569 = vmatprep.subr.mxu0 %v207_v16  ;;  %v361_v57 = vld [vmem:[%s7124_s0 + $0xac0] sm:$0xff]  ;;  %v360_v59 = vld [vmem:[%s7124_s0 + $0xab8] sm:$0xff]  ;;  %v354_v61 = vld [vmem:[%s7124_s0 + $0xa88] sm:$0xff] }
  0x2b   :  { %730 = vmatprep.subr.mxu1 %v431_v17  ;;  %570 = vmatpush2.msra.mxu0 %v206_v18  ;;  %v129_v62 = vld [vmem:[%s7124_s0 + $0x380] sm:$0xff]  ;;  %v3579_v63 = vld [vmem:[%s7125_s1 + $0x8] sm:$0xff]  ;;  %v3587_v1 = vld [vmem:[%s7125_s1 + $0x18] sm:$0xff] }
  0x2c   :  { %731 = vmatpush2.msra.mxu1 %v430_v19  ;;  %571 = vmatprep.subr.mxu0 %v200_v20  ;;  %v353_v0 = vld [vmem:[%s7124_s0 + $0xa80] sm:$0xff]  ;;  %v3597_v3 = vld [vmem:[%s7125_s1 + $0x10] sm:$0xff]  ;;  %v124_v6 = vld [vmem:[%s7124_s0 + $0x358] sm:$0xff] }
  0x2d   :  { %732 = vmatprep.subr.mxu1 %v424_v21  ;;  %572 = vmatpush2.msra.mxu0 %v199_v22  ;;  %v3592_v2 = vld [vmem:[%s7125_s1] sm:$0xff]  ;;  %v348_v7 = vld [vmem:[%s7124_s0 + $0xa58] sm:$0xff]  ;;  %v118_v8 = vld [vmem:[%s7124_s0 + $0x328] sm:$0xff] }
  0x2e   :  { %733 = vmatpush2.msra.mxu1 %v423_v23  ;;  %573 = vmatprep.subr.mxu0 %v193_v24  ;;  %v125_v4 = vld [vmem:[%s7124_s0 + $0x360] sm:$0xff]  ;;  %v342_v9 = vld [vmem:[%s7124_s0 + $0xa28] sm:$0xff]  ;;  %v3629_v11 = vld [vmem:[%s7125_s1 + $0x38] sm:$0xff] }
  0x2f   :  { %734 = vmatprep.subr.mxu1 %v417_v25  ;;  %574 = vmatpush2.msra.mxu0 %v192_v26  ;;  %v349_v5 = vld [vmem:[%s7124_s0 + $0xa60] sm:$0xff]  ;;  %v3624_v10 = vld [vmem:[%s7125_s1 + $0x28] sm:$0xff]  ;;  %v3645_v15 = vld [vmem:[%s7125_s1 + $0x30] sm:$0xff] }
  0x30   :  { %735 = vmatpush2.msra.mxu1 %v416_v27  ;;  %575 = vmatprep.subr.mxu0 %v186_v28  ;;  %v117_v12 = vld [vmem:[%s7124_s0 + $0x320] sm:$0xff]  ;;  %v111_v16 = vld [vmem:[%s7124_s0 + $0x2f0] sm:$0xff]  ;;  %v110_v18 = vld [vmem:[%s7124_s0 + $0x2e8] sm:$0xff] }
  0x31   :  { %736 = vmatprep.subr.mxu1 %v410_v29  ;;  %576 = vmatpush2.msra.mxu0 %v185_v30  ;;  %v341_v13 = vld [vmem:[%s7124_s0 + $0xa20] sm:$0xff]  ;;  %v335_v17 = vld [vmem:[%s7124_s0 + $0x9f0] sm:$0xff]  ;;  %v334_v19 = vld [vmem:[%s7124_s0 + $0x9e8] sm:$0xff] }
  0x32   :  { %737 = vmatpush2.msra.mxu1 %v409_v31  ;;  %577 = vmatprep.subr.mxu0 %v179_v32  ;;  %v3640_v14 = vld [vmem:[%s7125_s1 + $0x20] sm:$0xff]  ;;  %v104_v20 = vld [vmem:[%s7124_s0 + $0x2b8] sm:$0xff]  ;;  %v3672_v22 = vld [vmem:[%s7125_s1 + $0x48] sm:$0xff] }
  0x33   :  { %738 = vmatprep.subr.mxu1 %v403_v33  ;;  %578 = vmatpush2.msra.mxu0 %v178_v34  ;;  %v328_v21 = vld [vmem:[%s7124_s0 + $0x9b8] sm:$0xff]  ;;  %v103_v24 = vld [vmem:[%s7124_s0 + $0x2b0] sm:$0xff]  ;;  %v3688_v26 = vld [vmem:[%s7125_s1 + $0x40] sm:$0xff] }
  0x34   :  { %739 = vmatpush2.msra.mxu1 %v402_v35  ;;  %579 = vmatprep.subr.mxu0 %v172_v36  ;;  %v3677_v23 = vld [vmem:[%s7125_s1 + $0x58] sm:$0xff]  ;;  %v327_v25 = vld [vmem:[%s7124_s0 + $0x9b0] sm:$0xff]  ;;  %v97_v28 = vld [vmem:[%s7124_s0 + $0x280] sm:$0xff] }
  0x35   :  { %740 = vmatprep.subr.mxu1 %v396_v37  ;;  %580 = vmatpush2.msra.mxu0 %v171_v38  ;;  %v3693_v27 = vld [vmem:[%s7125_s1 + $0x50] sm:$0xff]  ;;  %v321_v29 = vld [vmem:[%s7124_s0 + $0x980] sm:$0xff]  ;;  %v96_v30 = vld [vmem:[%s7124_s0 + $0x278] sm:$0xff] }
  0x36   :  { %741 = vmatpush2.msra.mxu1 %v395_v39  ;;  %581 = vmatprep.subr.mxu0 %v165_v40  ;;  %v320_v31 = vld [vmem:[%s7124_s0 + $0x978] sm:$0xff]  ;;  %v90_v32 = vld [vmem:[%s7124_s0 + $0x248] sm:$0xff]  ;;  %v89_v36 = vld [vmem:[%s7124_s0 + $0x240] sm:$0xff] }
  0x37   :  { %742 = vmatprep.subr.mxu1 %v389_v41  ;;  %582 = vmatpush2.msra.mxu0 %v164_v42  ;;  %v314_v33 = vld [vmem:[%s7124_s0 + $0x948] sm:$0xff]  ;;  %v3725_v35 = vld [vmem:[%s7125_s1 + $0x78] sm:$0xff]  ;;  %v313_v37 = vld [vmem:[%s7124_s0 + $0x940] sm:$0xff] }
  0x38   :  { %743 = vmatpush2.msra.mxu1 %v388_v43  ;;  %583 = vmatprep.subr.mxu0 %v158_v44  ;;  %v3720_v34 = vld [vmem:[%s7125_s1 + $0x68] sm:$0xff]  ;;  %v3736_v38 = vld [vmem:[%s7125_s1 + $0x60] sm:$0xff]  ;;  %v3741_v39 = vld [vmem:[%s7125_s1 + $0x70] sm:$0xff] }
  0x39   :  { %744 = vmatprep.subr.mxu1 %v382_v45  ;;  %584 = vmatpush2.msra.mxu0 %v157_v46  ;;  %v83_v40 = vld [vmem:[%s7124_s0 + $0x210] sm:$0xff]  ;;  %v82_v42 = vld [vmem:[%s7124_s0 + $0x208] sm:$0xff]  ;;  %v76_v44 = vld [vmem:[%s7124_s0 + $0x1d8] sm:$0xff] }
  0x3a   :  { %745 = vmatpush2.msra.mxu1 %v381_v47  ;;  %585 = vmatprep.subr.mxu0 %v151_v48  ;;  %v307_v41 = vld [vmem:[%s7124_s0 + $0x910] sm:$0xff]  ;;  %v306_v43 = vld [vmem:[%s7124_s0 + $0x908] sm:$0xff]  ;;  %v300_v45 = vld [vmem:[%s7124_s0 + $0x8d8] sm:$0xff] }
  0x3b   :  { %746 = vmatprep.subr.mxu1 %v375_v49  ;;  %586 = vmatpush2.msra.mxu0 %v150_v50  ;;  %v3768_v46 = vld [vmem:[%s7125_s1 + $0x88] sm:$0xff]  ;;  %v3773_v47 = vld [vmem:[%s7125_s1 + $0x98] sm:$0xff]  ;;  %v75_v48 = vld [vmem:[%s7124_s0 + $0x1d0] sm:$0xff] }
  0x3c   :  { %747 = vmatpush2.msra.mxu1 %v374_v51  ;;  %587 = vmatprep.subr.mxu0 %v144_v52  ;;  %v299_v49 = vld [vmem:[%s7124_s0 + $0x8d0] sm:$0xff]  ;;  %v3784_v50 = vld [vmem:[%s7125_s1 + $0x80] sm:$0xff] }
  0x3d   :  { %748 = vmatprep.subr.mxu1 %v368_v53  ;;  %588 = vmatpush2.msra.mxu0 %v143_v54  ;;  %v3789_v51 = vld [vmem:[%s7125_s1 + $0x90] sm:$0xff]  ;;  %v69_v52 = vld [vmem:[%s7124_s0 + $0x1a0] sm:$0xff]  ;;  %v68_v54 = vld [vmem:[%s7124_s0 + $0x198] sm:$0xff] }
  0x3e   :  { %749 = vmatpush2.msra.mxu1 %v367_v55  ;;  %589 = vmatprep.subr.mxu0 %v137_v56  ;;  %v293_v53 = vld [vmem:[%s7124_s0 + $0x8a0] sm:$0xff]  ;;  %v292_v55 = vld [vmem:[%s7124_s0 + $0x898] sm:$0xff]  ;;  %v62_v56 = vld [vmem:[%s7124_s0 + $0x168] sm:$0xff] }
  0x3f   :  { %750 = vmatprep.subr.mxu1 %v361_v57  ;;  %590 = vmatpush2.msra.mxu0 %v136_v58  ;;  %v286_v57 = vld [vmem:[%s7124_s0 + $0x868] sm:$0xff] }
  0x40   :  { %751 = vmatpush2.msra.mxu1 %v360_v59  ;;  %591 = vmatprep.subr.mxu0 %v130_v60  ;;  %v3816_v58 = vld [vmem:[%s7125_s1 + $0xa8] sm:$0xff]  ;;  %v3821_v59 = vld [vmem:[%s7125_s1 + $0xb8] sm:$0xff]  ;;  %v61_v60 = vld [vmem:[%s7124_s0 + $0x160] sm:$0xff] }
  0x41   :  { %752 = vmatprep.subr.mxu1 %v354_v61  ;;  %592 = vmatpush2.msra.mxu0 %v129_v62  ;;  %v285_v61 = vld [vmem:[%s7124_s0 + $0x860] sm:$0xff] }
  0x42   :  { %593 = vmatprep.mubr.f32.mxu0 %v3579_v63  ;;  %753 = vmatpush2.msra.mxu1 %v353_v0  ;;  %v3832_v62 = vld [vmem:[%s7125_s1 + $0xa0] sm:$0xff]  ;;  %v3837_v0 = vld [vmem:[%s7125_s1 + $0xb0] sm:$0xff] }
  0x43   :  { %754 = vmatprep.mubr.f32.mxu1 %v3587_v1  ;;  %594 = vmatmul.mubr.f32.vlgmr.msra.gmra.mxu0 %v3592_v2 }
  0x44   :  { %755 = vmatmul.mubr.f32.vlgmr.msra.gmra.mxu1 %v3597_v3  ;;  %851 = vmatprep.subr.mxu0 %v125_v4  ;;  %v55_v4 = vld [vmem:[%s7124_s0 + $0x130] sm:$0xff] }
  0x45   :  { %1012 = vmatprep.subr.mxu1 %v349_v5  ;;  %852 = vmatpush1.msra.mxu0 %v124_v6  ;;  %v279_v5 = vld [vmem:[%s7124_s0 + $0x830] sm:$0xff]  ;;  %v54_v6 = vld [vmem:[%s7124_s0 + $0x128] sm:$0xff] }
  0x46   :  { %1013 = vmatpush1.msra.mxu1 %v348_v7  ;;  %853 = vmatprep.subr.mxu0 %v118_v8  ;;  %v278_v7 = vld [vmem:[%s7124_s0 + $0x828] sm:$0xff]  ;;  %v48_v8 = vld [vmem:[%s7124_s0 + $0xf8] sm:$0xff] }
  0x47   :  { %1014 = vmatprep.subr.mxu1 %v342_v9  ;;  %599 = vmatprep.mubr.f32.mxu0 %v3624_v10  ;;  %v272_v9 = vld [vmem:[%s7124_s0 + $0x7f8] sm:$0xff] }
  0x48   :  { %760 = vmatprep.mubr.f32.mxu1 %v3629_v11  ;;  %854 = vmatpush1.msra.mxu0 %v117_v12  ;;  %v3864_v12 = vld [vmem:[%s7125_s1 + $0xc8] sm:$0xff] }
  0x49   :  { %1015 = vmatpush1.msra.mxu1 %v341_v13  ;;  %600 = vmatmul.mubr.f32.gmra.mxu0 %v3640_v14  ;;  %v3869_v13 = vld [vmem:[%s7125_s1 + $0xd8] sm:$0xff] }
  0x4a   :  { %761 = vmatmul.mubr.f32.gmra.mxu1 %v3645_v15  ;;  %855 = vmatprep.subr.mxu0 %v111_v16  ;;  %v47_v16 = vld [vmem:[%s7124_s0 + $0xf0] sm:$0xff] }
  0x4b   :  { %1016 = vmatprep.subr.mxu1 %v335_v17  ;;  %856 = vmatpush1.msra.mxu0 %v110_v18  ;;  %v271_v17 = vld [vmem:[%s7124_s0 + $0x7f0] sm:$0xff]  ;;  %v3880_v18 = vld [vmem:[%s7125_s1 + $0xc0] sm:$0xff] }
  0x4c   :  { %1017 = vmatpush1.msra.mxu1 %v334_v19  ;;  %857 = vmatprep.subr.mxu0 %v104_v20  ;;  %v3885_v19 = vld [vmem:[%s7125_s1 + $0xd0] sm:$0xff]  ;;  %v41_v20 = vld [vmem:[%s7124_s0 + $0xc0] sm:$0xff] }
  0x4d   :  { %1018 = vmatprep.subr.mxu1 %v328_v21  ;;  %605 = vmatprep.mubr.f32.mxu0 %v3672_v22  ;;  %v265_v21 = vld [vmem:[%s7124_s0 + $0x7c0] sm:$0xff] }
  0x4e   :  { %766 = vmatprep.mubr.f32.mxu1 %v3677_v23  ;;  %858 = vmatpush1.msra.mxu0 %v103_v24  ;;  %v40_v24 = vld [vmem:[%s7124_s0 + $0xb8] sm:$0xff] }
  0x4f   :  { %1019 = vmatpush1.msra.mxu1 %v327_v25  ;;  %606 = vmatmul.mubr.f32.gmra.mxu0 %v3688_v26  ;;  %v264_v25 = vld [vmem:[%s7124_s0 + $0x7b8] sm:$0xff] }
  0x50   :  { %767 = vmatmul.mubr.f32.gmra.mxu1 %v3693_v27  ;;  %859 = vmatprep.subr.mxu0 %v97_v28  ;;  %v34_v28 = vld [vmem:[%s7124_s0 + $0x88] sm:$0xff] }
  0x51   :  { %1020 = vmatprep.subr.mxu1 %v321_v29  ;;  %860 = vmatpush1.msra.mxu0 %v96_v30  ;;  %v258_v29 = vld [vmem:[%s7124_s0 + $0x788] sm:$0xff] }
  0x52   :  { %1021 = vmatpush1.msra.mxu1 %v320_v31  ;;  %861 = vmatprep.subr.mxu0 %v90_v32  ;;  %v3912_v30 = vld [vmem:[%s7125_s1 + $0xe8] sm:$0xff]  ;;  %v3917_v31 = vld [vmem:[%s7125_s1 + $0xf8] sm:$0xff]  ;;  %v33_v32 = vld [vmem:[%s7124_s0 + $0x80] sm:$0xff] }
  0x53   :  { %1022 = vmatprep.subr.mxu1 %v314_v33  ;;  %611 = vmatprep.mubr.f32.mxu0 %v3720_v34  ;;  %v257_v33 = vld [vmem:[%s7124_s0 + $0x780] sm:$0xff] }
  0x54   :  { %772 = vmatprep.mubr.f32.mxu1 %v3725_v35  ;;  %862 = vmatpush1.msra.mxu0 %v89_v36  ;;  %v3928_v36 = vld [vmem:[%s7125_s1 + $0xe0] sm:$0xff] }
  0x55   :  { %1023 = vmatpush1.msra.mxu1 %v313_v37  ;;  %612 = vmatmul.mubr.f32.gmra.mxu0 %v3736_v38  ;;  %v3933_v37 = vld [vmem:[%s7125_s1 + $0xf0] sm:$0xff] }
  0x56   :  { %773 = vmatmul.mubr.f32.gmra.mxu1 %v3741_v39  ;;  %863 = vmatprep.subr.mxu0 %v83_v40  ;;  %v27_v40 = vld [vmem:[%s7124_s0 + $0x50] sm:$0xff] }
  0x57   :  { %1024 = vmatprep.subr.mxu1 %v307_v41  ;;  %864 = vmatpush1.msra.mxu0 %v82_v42  ;;  %v251_v41 = vld [vmem:[%s7124_s0 + $0x750] sm:$0xff]  ;;  %v26_v42 = vld [vmem:[%s7124_s0 + $0x48] sm:$0xff] }
  0x58   :  { %1025 = vmatpush1.msra.mxu1 %v306_v43  ;;  %865 = vmatprep.subr.mxu0 %v76_v44  ;;  %v250_v43 = vld [vmem:[%s7124_s0 + $0x748] sm:$0xff]  ;;  %v20_v44 = vld [vmem:[%s7124_s0 + $0x18] sm:$0xff] }
  0x59   :  { %1026 = vmatprep.subr.mxu1 %v300_v45  ;;  %617 = vmatprep.mubr.f32.mxu0 %v3768_v46  ;;  %v244_v45 = vld [vmem:[%s7124_s0 + $0x718] sm:$0xff] }
  0x5a   :  { %778 = vmatprep.mubr.f32.mxu1 %v3773_v47  ;;  %866 = vmatpush1.msra.mxu0 %v75_v48  ;;  %v3960_v48 = vld [vmem:[%s7125_s1 + $0x108] sm:$0xff] }
  0x5b   :  { %1027 = vmatpush1.msra.mxu1 %v299_v49  ;;  %618 = vmatmul.mubr.f32.gmra.mxu0 %v3784_v50  ;;  %v3965_v49 = vld [vmem:[%s7125_s1 + $0x118] sm:$0xff] }
  0x5c   :  { %779 = vmatmul.mubr.f32.gmra.mxu1 %v3789_v51  ;;  %867 = vmatprep.subr.mxu0 %v69_v52  ;;  %v19_v52 = vld [vmem:[%s7124_s0 + $0x10] sm:$0xff] }
  0x5d   :  { %1028 = vmatprep.subr.mxu1 %v293_v53  ;;  %868 = vmatpush1.msra.mxu0 %v68_v54  ;;  %v243_v53 = vld [vmem:[%s7124_s0 + $0x710] sm:$0xff]  ;;  %v3976_v54 = vld [vmem:[%s7125_s1 + $0x100] sm:$0xff] }
  0x5e   :  { %1029 = vmatpush1.msra.mxu1 %v292_v55  ;;  %869 = vmatprep.subr.mxu0 %v62_v56  ;;  %v3981_v55 = vld [vmem:[%s7125_s1 + $0x110] sm:$0xff]  ;;  %v237_v56 = vld [vmem:[%s7124_s0 + $0x6e0] sm:$0xff] }
  0x5f   :  { %1030 = vmatprep.subr.mxu1 %v286_v57  ;;  %623 = vmatprep.mubr.f32.mxu0 %v3816_v58  ;;  %v461_v57 = vld [vmem:[%s7124_s0 + $0xde0] sm:$0xff] }
  0x60   :  { %784 = vmatprep.mubr.f32.mxu1 %v3821_v59  ;;  %870 = vmatpush1.msra.mxu0 %v61_v60  ;;  %v236_v60 = vld [vmem:[%s7124_s0 + $0x6d8] sm:$0xff] }
  0x61   :  { %1031 = vmatpush1.msra.mxu1 %v285_v61  ;;  %624 = vmatmul.mubr.f32.gmra.mxu0 %v3832_v62  ;;  %v460_v61 = vld [vmem:[%s7124_s0 + $0xdd8] sm:$0xff] }
  0x62   :  { %785 = vmatmul.mubr.f32.gmra.mxu1 %v3837_v0  ;;  %871 = vmatprep.subr.mxu0 %v55_v4  ;;  %v230_v4 = vld [vmem:[%s7124_s0 + $0x6a8] sm:$0xff] }
  0x63   :  { %1032 = vmatprep.subr.mxu1 %v279_v5  ;;  %872 = vmatpush1.msra.mxu0 %v54_v6  ;;  %v454_v5 = vld [vmem:[%s7124_s0 + $0xda8] sm:$0xff] }
  0x64   :  { %1033 = vmatpush1.msra.mxu1 %v278_v7  ;;  %873 = vmatprep.subr.mxu0 %v48_v8  ;;  %v4008_v6 = vld [vmem:[%s7125_s1 + $0x128] sm:$0xff]  ;;  %v4013_v7 = vld [vmem:[%s7125_s1 + $0x138] sm:$0xff]  ;;  %v229_v8 = vld [vmem:[%s7124_s0 + $0x6a0] sm:$0xff] }
  0x65   :  { %1034 = vmatprep.subr.mxu1 %v272_v9  ;;  %629 = vmatprep.mubr.f32.mxu0 %v3864_v12  ;;  %v453_v9 = vld [vmem:[%s7124_s0 + $0xda0] sm:$0xff] }
  0x66   :  { %790 = vmatprep.mubr.f32.mxu1 %v3869_v13  ;;  %874 = vmatpush1.msra.mxu0 %v47_v16  ;;  %v4024_v16 = vld [vmem:[%s7125_s1 + $0x120] sm:$0xff] }
  0x67   :  { %1035 = vmatpush1.msra.mxu1 %v271_v17  ;;  %630 = vmatmul.mubr.f32.gmra.mxu0 %v3880_v18  ;;  %v4029_v17 = vld [vmem:[%s7125_s1 + $0x130] sm:$0xff] }
  0x68   :  { %791 = vmatmul.mubr.f32.gmra.mxu1 %v3885_v19  ;;  %875 = vmatprep.subr.mxu0 %v41_v20  ;;  %v223_v20 = vld [vmem:[%s7124_s0 + $0x670] sm:$0xff] }
  0x69   :  { %1036 = vmatprep.subr.mxu1 %v265_v21  ;;  %876 = vmatpush1.msra.mxu0 %v40_v24  ;;  %v447_v21 = vld [vmem:[%s7124_s0 + $0xd70] sm:$0xff]  ;;  %v222_v24 = vld [vmem:[%s7124_s0 + $0x668] sm:$0xff] }
  0x6a   :  { %1037 = vmatpush1.msra.mxu1 %v264_v25  ;;  %877 = vmatprep.subr.mxu0 %v34_v28  ;;  %v446_v25 = vld [vmem:[%s7124_s0 + $0xd68] sm:$0xff]  ;;  %v216_v28 = vld [vmem:[%s7124_s0 + $0x638] sm:$0xff] }
  0x6b   :  { %1038 = vmatprep.subr.mxu1 %v258_v29  ;;  %635 = vmatprep.mubr.f32.mxu0 %v3912_v30  ;;  %v440_v29 = vld [vmem:[%s7124_s0 + $0xd38] sm:$0xff] }
  0x6c   :  { %796 = vmatprep.mubr.f32.mxu1 %v3917_v31  ;;  %878 = vmatpush1.msra.mxu0 %v33_v32  ;;  %v4056_v32 = vld [vmem:[%s7125_s1 + $0x148] sm:$0xff] }
  0x6d   :  { %1039 = vmatpush1.msra.mxu1 %v257_v33  ;;  %636 = vmatmul.mubr.f32.gmra.mxu0 %v3928_v36  ;;  %v4061_v33 = vld [vmem:[%s7125_s1 + $0x158] sm:$0xff] }
  0x6e   :  { %797 = vmatmul.mubr.f32.gmra.mxu1 %v3933_v37  ;;  %879 = vmatprep.subr.mxu0 %v27_v40  ;;  %v215_v40 = vld [vmem:[%s7124_s0 + $0x630] sm:$0xff] }
  0x6f   :  { %1040 = vmatprep.subr.mxu1 %v251_v41  ;;  %880 = vmatpush1.msra.mxu0 %v26_v42  ;;  %v439_v41 = vld [vmem:[%s7124_s0 + $0xd30] sm:$0xff]  ;;  %v4072_v42 = vld [vmem:[%s7125_s1 + $0x140] sm:$0xff] }
  0x70   :  { %1041 = vmatpush1.msra.mxu1 %v250_v43  ;;  %881 = vmatprep.subr.mxu0 %v20_v44  ;;  %v4077_v43 = vld [vmem:[%s7125_s1 + $0x150] sm:$0xff]  ;;  %v209_v44 = vld [vmem:[%s7124_s0 + $0x600] sm:$0xff] }
  0x71   :  { %1042 = vmatprep.subr.mxu1 %v244_v45  ;;  %641 = vmatprep.mubr.f32.mxu0 %v3960_v48  ;;  %v433_v45 = vld [vmem:[%s7124_s0 + $0xd00] sm:$0xff] }
  0x72   :  { %802 = vmatprep.mubr.f32.mxu1 %v3965_v49  ;;  %882 = vmatpush1.msra.mxu0 %v19_v52  ;;  %v208_v52 = vld [vmem:[%s7124_s0 + $0x5f8] sm:$0xff] }
  0x73   :  { %1043 = vmatpush1.msra.mxu1 %v243_v53  ;;  %642 = vmatmul.mubr.f32.gmra.mxu0 %v3976_v54  ;;  %v432_v53 = vld [vmem:[%s7124_s0 + $0xcf8] sm:$0xff] }
  0x74   :  { %803 = vmatmul.mubr.f32.gmra.mxu1 %v3981_v55  ;;  %883 = vmatprep.subr.mxu0 %v237_v56  ;;  %v202_v56 = vld [vmem:[%s7124_s0 + $0x5c8] sm:$0xff] }
  0x75   :  { %1044 = vmatprep.subr.mxu1 %v461_v57  ;;  %884 = vmatpush2.msra.mxu0 %v236_v60  ;;  %v426_v57 = vld [vmem:[%s7124_s0 + $0xcc8] sm:$0xff] }
  0x76   :  { %1045 = vmatpush2.msra.mxu1 %v460_v61  ;;  %885 = vmatprep.subr.mxu0 %v230_v4  ;;  %v4104_v60 = vld [vmem:[%s7125_s1 + $0x168] sm:$0xff]  ;;  %v4109_v61 = vld [vmem:[%s7125_s1 + $0x178] sm:$0xff]  ;;  %v201_v4 = vld [vmem:[%s7124_s0 + $0x5c0] sm:$0xff] }
  0x77   :  { %1046 = vmatprep.subr.mxu1 %v454_v5  ;;  %647 = vmatprep.mubr.f32.mxu0 %v4008_v6  ;;  %v425_v5 = vld [vmem:[%s7124_s0 + $0xcc0] sm:$0xff] }
  0x78   :  { %808 = vmatprep.mubr.f32.mxu1 %v4013_v7  ;;  %886 = vmatpush2.msra.mxu0 %v229_v8  ;;  %v4120_v8 = vld [vmem:[%s7125_s1 + $0x160] sm:$0xff] }
  0x79   :  { %1047 = vmatpush2.msra.mxu1 %v453_v9  ;;  %648 = vmatmul.mubr.f32.gmra.mxu0 %v4024_v16  ;;  %v4125_v9 = vld [vmem:[%s7125_s1 + $0x170] sm:$0xff] }
  0x7a   :  { %809 = vmatmul.mubr.f32.gmra.mxu1 %v4029_v17  ;;  %887 = vmatprep.subr.mxu0 %v223_v20  ;;  %v195_v20 = vld [vmem:[%s7124_s0 + $0x590] sm:$0xff] }
  0x7b   :  { %1048 = vmatprep.subr.mxu1 %v447_v21  ;;  %888 = vmatpush2.msra.mxu0 %v222_v24  ;;  %v419_v21 = vld [vmem:[%s7124_s0 + $0xc90] sm:$0xff]  ;;  %v194_v24 = vld [vmem:[%s7124_s0 + $0x588] sm:$0xff] }
  0x7c   :  { %1049 = vmatpush2.msra.mxu1 %v446_v25  ;;  %889 = vmatprep.subr.mxu0 %v216_v28  ;;  %v418_v25 = vld [vmem:[%s7124_s0 + $0xc88] sm:$0xff]  ;;  %v188_v28 = vld [vmem:[%s7124_s0 + $0x558] sm:$0xff] }
  0x7d   :  { %1050 = vmatprep.subr.mxu1 %v440_v29  ;;  %653 = vmatprep.mubr.f32.mxu0 %v4056_v32  ;;  %v412_v29 = vld [vmem:[%s7124_s0 + $0xc58] sm:$0xff] }
  0x7e   :  { %814 = vmatprep.mubr.f32.mxu1 %v4061_v33  ;;  %890 = vmatpush2.msra.mxu0 %v215_v40  ;;  %v4152_v40 = vld [vmem:[%s7125_s1 + $0x188] sm:$0xff] }
  0x7f   :  { %1051 = vmatpush2.msra.mxu1 %v439_v41  ;;  %654 = vmatmul.mubr.f32.gmra.mxu0 %v4072_v42  ;;  %v4157_v41 = vld [vmem:[%s7125_s1 + $0x198] sm:$0xff] }
  0x80   :  { %815 = vmatmul.mubr.f32.gmra.mxu1 %v4077_v43  ;;  %891 = vmatprep.subr.mxu0 %v209_v44  ;;  %v187_v44 = vld [vmem:[%s7124_s0 + $0x550] sm:$0xff] }
  0x81   :  { %1052 = vmatprep.subr.mxu1 %v433_v45  ;;  %892 = vmatpush2.msra.mxu0 %v208_v52  ;;  %v411_v45 = vld [vmem:[%s7124_s0 + $0xc50] sm:$0xff]  ;;  %v4168_v52 = vld [vmem:[%s7125_s1 + $0x180] sm:$0xff] }
  0x82   :  { %1053 = vmatpush2.msra.mxu1 %v432_v53  ;;  %893 = vmatprep.subr.mxu0 %v202_v56  ;;  %v4173_v53 = vld [vmem:[%s7125_s1 + $0x190] sm:$0xff]  ;;  %v181_v56 = vld [vmem:[%s7124_s0 + $0x520] sm:$0xff] }
  0x83   :  { %1054 = vmatprep.subr.mxu1 %v426_v57  ;;  %659 = vmatprep.mubr.f32.mxu0 %v4104_v60  ;;  %v405_v57 = vld [vmem:[%s7124_s0 + $0xc20] sm:$0xff] }
  0x84   :  { %820 = vmatprep.mubr.f32.mxu1 %v4109_v61  ;;  %894 = vmatpush2.msra.mxu0 %v201_v4  ;;  %v180_v4 = vld [vmem:[%s7124_s0 + $0x518] sm:$0xff] }
  0x85   :  { %1055 = vmatpush2.msra.mxu1 %v425_v5  ;;  %660 = vmatmul.mubr.f32.gmra.mxu0 %v4120_v8  ;;  %v404_v5 = vld [vmem:[%s7124_s0 + $0xc18] sm:$0xff] }
  0x86   :  { %821 = vmatmul.mubr.f32.gmra.mxu1 %v4125_v9  ;;  %895 = vmatprep.subr.mxu0 %v195_v20  ;;  %v174_v20 = vld [vmem:[%s7124_s0 + $0x4e8] sm:$0xff] }
  0x87   :  { %1056 = vmatprep.subr.mxu1 %v419_v21  ;;  %896 = vmatpush2.msra.mxu0 %v194_v24  ;;  %v398_v21 = vld [vmem:[%s7124_s0 + $0xbe8] sm:$0xff] }
  0x88   :  { %1057 = vmatpush2.msra.mxu1 %v418_v25  ;;  %897 = vmatprep.subr.mxu0 %v188_v28  ;;  %v4200_v24 = vld [vmem:[%s7125_s1 + $0x1a8] sm:$0xff]  ;;  %v4205_v25 = vld [vmem:[%s7125_s1 + $0x1b8] sm:$0xff]  ;;  %v173_v28 = vld [vmem:[%s7124_s0 + $0x4e0] sm:$0xff] }
  0x89   :  { %1058 = vmatprep.subr.mxu1 %v412_v29  ;;  %665 = vmatprep.mubr.f32.mxu0 %v4152_v40  ;;  %v397_v29 = vld [vmem:[%s7124_s0 + $0xbe0] sm:$0xff] }
  0x8a   :  { %826 = vmatprep.mubr.f32.mxu1 %v4157_v41  ;;  %898 = vmatpush2.msra.mxu0 %v187_v44  ;;  %v4216_v44 = vld [vmem:[%s7125_s1 + $0x1a0] sm:$0xff] }
  0x8b   :  { %1059 = vmatpush2.msra.mxu1 %v411_v45  ;;  %666 = vmatmul.mubr.f32.gmra.mxu0 %v4168_v52  ;;  %v4221_v45 = vld [vmem:[%s7125_s1 + $0x1b0] sm:$0xff] }
  0x8c   :  { %827 = vmatmul.mubr.f32.gmra.mxu1 %v4173_v53  ;;  %899 = vmatprep.subr.mxu0 %v181_v56  ;;  %7302 = vst [vmem:[#allocation2_spill] sm:$0xff] %v4221_v45  ;;  %v167_v56 = vld [vmem:[%s7124_s0 + $0x4b0] sm:$0xff] }
  0x8d   :  { %1060 = vmatprep.subr.mxu1 %v405_v57  ;;  %900 = vmatpush2.msra.mxu0 %v180_v4  ;;  %v391_v57 = vld [vmem:[%s7124_s0 + $0xbb0] sm:$0xff]  ;;  %v166_v4 = vld [vmem:[%s7124_s0 + $0x4a8] sm:$0xff] }
  0x8e   :  { %1061 = vmatpush2.msra.mxu1 %v404_v5  ;;  %901 = vmatprep.subr.mxu0 %v174_v20  ;;  %v390_v5 = vld [vmem:[%s7124_s0 + $0xba8] sm:$0xff]  ;;  %v160_v20 = vld [vmem:[%s7124_s0 + $0x478] sm:$0xff] }
  0x8f   :  { %1062 = vmatprep.subr.mxu1 %v398_v21  ;;  %671 = vmatprep.mubr.f32.mxu0 %v4200_v24  ;;  %v384_v21 = vld [vmem:[%s7124_s0 + $0xb78] sm:$0xff] }
  0x90   :  { %832 = vmatprep.mubr.f32.mxu1 %v4205_v25  ;;  %902 = vmatpush2.msra.mxu0 %v173_v28  ;;  %v4248_v28 = vld [vmem:[%s7125_s1 + $0x1c8] sm:$0xff] }
  0x91   :  { %1063 = vmatpush2.msra.mxu1 %v397_v29  ;;  %672 = vmatmul.mubr.f32.gmra.mxu0 %v4216_v44  ;;  %7303 = vst [vmem:[#allocation3_spill] sm:$0xff] %v4248_v28  ;;  %v4253_v29 = vld [vmem:[%s7125_s1 + $0x1d8] sm:$0xff] }
  0x92   :  { %833 = vmatmul.mubr.f32.gmra.mxu1 %v4221_v45  ;;  %903 = vmatprep.subr.mxu0 %v167_v56  ;;  %7304 = vst [vmem:[#allocation4_spill] sm:$0xff] %v4253_v29  ;;  %v159_v45 = vld [vmem:[%s7124_s0 + $0x470] sm:$0xff] }
  0x93   :  { %1064 = vmatprep.subr.mxu1 %v391_v57  ;;  %904 = vmatpush2.msra.mxu0 %v166_v4  ;;  %v383_v56 = vld [vmem:[%s7124_s0 + $0xb70] sm:$0xff]  ;;  %v4264_v57 = vld [vmem:[%s7125_s1 + $0x1c0] sm:$0xff] }
  0x94   :  { %1065 = vmatpush2.msra.mxu1 %v390_v5  ;;  %905 = vmatprep.subr.mxu0 %v160_v20  ;;  %7305 = vst [vmem:[#allocation5_spill] sm:$0xff] %v4264_v57  ;;  %v4269_v4 = vld [vmem:[%s7125_s1 + $0x1d0] sm:$0xff]  ;;  %v153_v5 = vld [vmem:[%s7124_s0 + $0x440] sm:$0xff] }
  0x95   :  { %1066 = vmatprep.subr.mxu1 %v384_v21  ;;  %7306 = vst [vmem:[#allocation6_spill] sm:$0xff] %v4269_v4  ;;  %677 = vmatprep.mubr.f32.mxu0 %v4248_v28  ;;  %v377_v20 = vld [vmem:[%s7124_s0 + $0xb40] sm:$0xff]  ;;  %v152_v21 = vld [vmem:[%s7124_s0 + $0x438] sm:$0xff] }
  0x96   :  { %838 = vmatprep.mubr.f32.mxu1 %v4253_v29  ;;  %906 = vmatpush2.msra.mxu0 %v159_v45  ;;  %v376_v28 = vld [vmem:[%s7124_s0 + $0xb38] sm:$0xff]  ;;  %v146_v29 = vld [vmem:[%s7124_s0 + $0x408] sm:$0xff] }
  0x97   :  { %1067 = vmatpush2.msra.mxu1 %v383_v56  ;;  %678 = vmatmul.mubr.f32.gmra.mxu0 %v4264_v57  ;;  %v370_v45 = vld [vmem:[%s7124_s0 + $0xb08] sm:$0xff]  ;;  %v4301_v57 = vld [vmem:[%s7125_s1 + $0x1f8] sm:$0xff] }
  0x98   :  { %839 = vmatmul.mubr.f32.gmra.mxu1 %v4269_v4  ;;  %907 = vmatprep.subr.mxu0 %v153_v5  ;;  %v4296_v56 = vld [vmem:[%s7125_s1 + $0x1e8] sm:$0xff]  ;;  %7308 = vst [vmem:[#allocation8_spill] sm:$0xff] %v4301_v57  ;;  %v145_v4 = vld [vmem:[%s7124_s0 + $0x400] sm:$0xff] }
  0x99   :  { %1068 = vmatprep.subr.mxu1 %v377_v20  ;;  %7307 = vst [vmem:[#allocation7_spill] sm:$0xff] %v4296_v56  ;;  %908 = vmatpush2.msra.mxu0 %v152_v21  ;;  %v369_v5 = vld [vmem:[%s7124_s0 + $0xb00] sm:$0xff]  ;;  %v4317_v21 = vld [vmem:[%s7125_s1 + $0x1f0] sm:$0xff] }
  0x9a   :  { %1069 = vmatpush2.msra.mxu1 %v376_v28  ;;  %909 = vmatprep.subr.mxu0 %v146_v29  ;;  %v4312_v20 = vld [vmem:[%s7125_s1 + $0x1e0] sm:$0xff]  ;;  %7309 = vst [vmem:[#allocation9_spill] sm:$0xff] %v4317_v21  ;;  %v139_v28 = vld [vmem:[%s7124_s0 + $0x3d0] sm:$0xff] }
  0x9b   :  { %1070 = vmatprep.subr.mxu1 %v370_v45  ;;  %683 = vmatprep.mubr.f32.mxu0 %v4296_v56  ;;  %v363_v29 = vld [vmem:[%s7124_s0 + $0xad0] sm:$0xff]  ;;  %v138_v45 = vld [vmem:[%s7124_s0 + $0x3c8] sm:$0xff] }
  0x9c   :  { %844 = vmatprep.mubr.f32.mxu1 %v4301_v57  ;;  %910 = vmatpush2.msra.mxu0 %v145_v4  ;;  %v362_v56 = vld [vmem:[%s7124_s0 + $0xac8] sm:$0xff]  ;;  %v132_v57 = vld [vmem:[%s7124_s0 + $0x398] sm:$0xff] }
  0x9d   :  { %1071 = vmatpush2.msra.mxu1 %v369_v5  ;;  %684 = vmatmul.mubr.f32.gmra.mxu0 %v4312_v20  ;;  %v356_v4 = vld [vmem:[%s7124_s0 + $0xa98] sm:$0xff]  ;;  %v131_v5 = vld [vmem:[%s7124_s0 + $0x390] sm:$0xff] }
  0x9e   :  { %845 = vmatmul.mubr.f32.gmra.mxu1 %v4317_v21  ;;  %911 = vmatprep.subr.mxu0 %v139_v28  ;;  %v355_v21 = vld [vmem:[%s7124_s0 + $0xa90] sm:$0xff] }
  0x9f   :  { %1072 = vmatprep.subr.mxu1 %v363_v29  ;;  %912 = vmatpush2.msra.mxu0 %v138_v45  ;;  %v127_v28 = vld [vmem:[%s7124_s0 + $0x370] sm:$0xff]  ;;  %v337_v45 = vld [vmem:[%s7124_s0 + $0xa00] sm:$0xff] }
  0xa0   :  { %1073 = vmatpush2.msra.mxu1 %v362_v56  ;;  %913 = vmatprep.subr.mxu0 %v132_v57  ;;  %v351_v29 = vld [vmem:[%s7124_s0 + $0xa70] sm:$0xff]  ;;  %v126_v56 = vld [vmem:[%s7124_s0 + $0x368] sm:$0xff] }
  0xa1   :  { %1074 = vmatprep.subr.mxu1 %v356_v4  ;;  %914 = vmatpush2.msra.mxu0 %v131_v5  ;;  %v350_v57 = vld [vmem:[%s7124_s0 + $0xa68] sm:$0xff]  ;;  %v112_v4 = vld [vmem:[%s7124_s0 + $0x2f8] sm:$0xff] }
  0xa2   :  { %915 = vmatprep.mubr.f32.mxu0 %v3579_v63  ;;  %1075 = vmatpush2.msra.mxu1 %v355_v21  ;;  %v120_v63 = vld [vmem:[%s7124_s0 + $0x338] sm:$0xff]  ;;  %v119_v21 = vld [vmem:[%s7124_s0 + $0x330] sm:$0xff]  ;;  %v330_v5 = vld [vmem:[%s7124_s0 + $0x9c8] sm:$0xff] }
  0xa3   :  { %1076 = vmatprep.mubr.f32.mxu1 %v3587_v1  ;;  %916 = vmatmul.mubr.f32.vlgmr.msra.gmra.mxu0 %v3592_v2  ;;  %v344_v1 = vld [vmem:[%s7124_s0 + $0xa38] sm:$0xff]  ;;  %v343_v2 = vld [vmem:[%s7124_s0 + $0xa30] sm:$0xff] }
  0xa4   :  { %1077 = vmatmul.mubr.f32.vlgmr.msra.gmra.mxu1 %v3597_v3  ;;  %1173 = vmatprep.subr.mxu0 %v127_v28  ;;  %v113_v3 = vld [vmem:[%s7124_s0 + $0x300] sm:$0xff] }
  0xa5   :  { %1334 = vmatprep.subr.mxu1 %v351_v29  ;;  %1174 = vmatpush1.msra.mxu0 %v126_v56  ;;  %v105_v28 = vld [vmem:[%s7124_s0 + $0x2c0] sm:$0xff]  ;;  %v323_v29 = vld [vmem:[%s7124_s0 + $0x990] sm:$0xff]  ;;  %v98_v56 = vld [vmem:[%s7124_s0 + $0x288] sm:$0xff] }
  0xa6   :  { %1335 = vmatpush1.msra.mxu1 %v350_v57  ;;  %1175 = vmatprep.subr.mxu0 %v120_v63  ;;  %v316_v57 = vld [vmem:[%s7124_s0 + $0x958] sm:$0xff]  ;;  %v91_v63 = vld [vmem:[%s7124_s0 + $0x250] sm:$0xff] }
  0xa7   :  { %1336 = vmatprep.subr.mxu1 %v344_v1  ;;  %921 = vmatprep.mubr.f32.mxu0 %v3624_v10  ;;  %v336_v10 = vld [vmem:[%s7124_s0 + $0x9f8] sm:$0xff]  ;;  %v309_v1 = vld [vmem:[%s7124_s0 + $0x920] sm:$0xff] }
  0xa8   :  { %1082 = vmatprep.mubr.f32.mxu1 %v3629_v11  ;;  %1176 = vmatpush1.msra.mxu0 %v119_v21  ;;  %v106_v11 = vld [vmem:[%s7124_s0 + $0x2c8] sm:$0xff]  ;;  %v84_v21 = vld [vmem:[%s7124_s0 + $0x218] sm:$0xff] }
  0xa9   :  { %1337 = vmatpush1.msra.mxu1 %v343_v2  ;;  %922 = vmatmul.mubr.f32.gmra.mxu0 %v3640_v14  ;;  %v329_v14 = vld [vmem:[%s7124_s0 + $0x9c0] sm:$0xff]  ;;  %v302_v2 = vld [vmem:[%s7124_s0 + $0x8e8] sm:$0xff] }
  0xaa   :  { %1083 = vmatmul.mubr.f32.gmra.mxu1 %v3645_v15  ;;  %1177 = vmatprep.subr.mxu0 %v113_v3  ;;  %v99_v15 = vld [vmem:[%s7124_s0 + $0x290] sm:$0xff]  ;;  %v77_v3 = vld [vmem:[%s7124_s0 + $0x1e0] sm:$0xff] }
  0xab   :  { %1338 = vmatprep.subr.mxu1 %v337_v45  ;;  %1178 = vmatpush1.msra.mxu0 %v112_v4  ;;  %v295_v45 = vld [vmem:[%s7124_s0 + $0x8b0] sm:$0xff]  ;;  %v70_v4 = vld [vmem:[%s7124_s0 + $0x1a8] sm:$0xff] }
  0xac   :  { %1339 = vmatpush1.msra.mxu1 %v336_v10  ;;  %1179 = vmatprep.subr.mxu0 %v106_v11  ;;  %v288_v10 = vld [vmem:[%s7124_s0 + $0x878] sm:$0xff]  ;;  %v63_v11 = vld [vmem:[%s7124_s0 + $0x170] sm:$0xff] }
  0xad   :  { %1340 = vmatprep.subr.mxu1 %v330_v5  ;;  %927 = vmatprep.mubr.f32.mxu0 %v3672_v22  ;;  %v322_v22 = vld [vmem:[%s7124_s0 + $0x988] sm:$0xff]  ;;  %v281_v5 = vld [vmem:[%s7124_s0 + $0x840] sm:$0xff] }
  0xae   :  { %1088 = vmatprep.mubr.f32.mxu1 %v3677_v23  ;;  %1180 = vmatpush1.msra.mxu0 %v105_v28  ;;  %v92_v23 = vld [vmem:[%s7124_s0 + $0x258] sm:$0xff] }
  0xaf   :  { %1341 = vmatpush1.msra.mxu1 %v329_v14  ;;  %928 = vmatmul.mubr.f32.gmra.mxu0 %v3688_v26  ;;  %v315_v26 = vld [vmem:[%s7124_s0 + $0x950] sm:$0xff]  ;;  %v56_v28 = vld [vmem:[%s7124_s0 + $0x138] sm:$0xff]  ;;  %v274_v14 = vld [vmem:[%s7124_s0 + $0x808] sm:$0xff] }
  0xb0   :  { %1089 = vmatmul.mubr.f32.gmra.mxu1 %v3693_v27  ;;  %1181 = vmatprep.subr.mxu0 %v99_v15  ;;  %v85_v27 = vld [vmem:[%s7124_s0 + $0x220] sm:$0xff] }
  0xb1   :  { %1342 = vmatprep.subr.mxu1 %v323_v29  ;;  %1182 = vmatpush1.msra.mxu0 %v98_v56  ;;  %v49_v15 = vld [vmem:[%s7124_s0 + $0x100] sm:$0xff]  ;;  %v267_v29 = vld [vmem:[%s7124_s0 + $0x7d0] sm:$0xff]  ;;  %v42_v56 = vld [vmem:[%s7124_s0 + $0xc8] sm:$0xff] }
  0xb2   :  { %1343 = vmatpush1.msra.mxu1 %v322_v22  ;;  %1183 = vmatprep.subr.mxu0 %v92_v23  ;;  %v260_v22 = vld [vmem:[%s7124_s0 + $0x798] sm:$0xff]  ;;  %v35_v23 = vld [vmem:[%s7124_s0 + $0x90] sm:$0xff] }
  0xb3   :  { %1344 = vmatprep.subr.mxu1 %v316_v57  ;;  %933 = vmatprep.mubr.f32.mxu0 %v3720_v34  ;;  %v308_v34 = vld [vmem:[%s7124_s0 + $0x918] sm:$0xff]  ;;  %v253_v57 = vld [vmem:[%s7124_s0 + $0x760] sm:$0xff] }
  0xb4   :  { %1094 = vmatprep.mubr.f32.mxu1 %v3725_v35  ;;  %1184 = vmatpush1.msra.mxu0 %v91_v63  ;;  %v78_v35 = vld [vmem:[%s7124_s0 + $0x1e8] sm:$0xff]  ;;  %v28_v63 = vld [vmem:[%s7124_s0 + $0x58] sm:$0xff] }
  0xb5   :  { %1345 = vmatpush1.msra.mxu1 %v315_v26  ;;  %934 = vmatmul.mubr.f32.gmra.mxu0 %v3736_v38  ;;  %v301_v38 = vld [vmem:[%s7124_s0 + $0x8e0] sm:$0xff]  ;;  %v246_v26 = vld [vmem:[%s7124_s0 + $0x728] sm:$0xff] }
  0xb6   :  { %1095 = vmatmul.mubr.f32.gmra.mxu1 %v3741_v39  ;;  %1185 = vmatprep.subr.mxu0 %v85_v27  ;;  %v71_v39 = vld [vmem:[%s7124_s0 + $0x1b0] sm:$0xff]  ;;  %v21_v27 = vld [vmem:[%s7124_s0 + $0x20] sm:$0xff] }
  0xb7   :  { %1346 = vmatprep.subr.mxu1 %v309_v1  ;;  %1186 = vmatpush1.msra.mxu0 %v84_v21  ;;  %v463_v1 = vld [vmem:[%s7124_s0 + $0xdf0] sm:$0xff]  ;;  %v238_v21 = vld [vmem:[%s7124_s0 + $0x6e8] sm:$0xff] }
  0xb8   :  { %1347 = vmatpush1.msra.mxu1 %v308_v34  ;;  %1187 = vmatprep.subr.mxu0 %v78_v35  ;;  %v456_v34 = vld [vmem:[%s7124_s0 + $0xdb8] sm:$0xff]  ;;  %v231_v35 = vld [vmem:[%s7124_s0 + $0x6b0] sm:$0xff] }
  0xb9   :  { %1348 = vmatprep.subr.mxu1 %v302_v2  ;;  %939 = vmatprep.mubr.f32.mxu0 %v3768_v46  ;;  %v294_v46 = vld [vmem:[%s7124_s0 + $0x8a8] sm:$0xff]  ;;  %v449_v2 = vld [vmem:[%s7124_s0 + $0xd80] sm:$0xff] }
  0xba   :  { %1100 = vmatprep.mubr.f32.mxu1 %v3773_v47  ;;  %1188 = vmatpush1.msra.mxu0 %v77_v3  ;;  %v64_v47 = vld [vmem:[%s7124_s0 + $0x178] sm:$0xff] }
  0xbb   :  { %1349 = vmatpush1.msra.mxu1 %v301_v38  ;;  %940 = vmatmul.mubr.f32.gmra.mxu0 %v3784_v50  ;;  %v287_v50 = vld [vmem:[%s7124_s0 + $0x870] sm:$0xff]  ;;  %v224_v3 = vld [vmem:[%s7124_s0 + $0x678] sm:$0xff]  ;;  %v442_v38 = vld [vmem:[%s7124_s0 + $0xd48] sm:$0xff] }
  0xbc   :  { %1101 = vmatmul.mubr.f32.gmra.mxu1 %v3789_v51  ;;  %1189 = vmatprep.subr.mxu0 %v71_v39  ;;  %v57_v51 = vld [vmem:[%s7124_s0 + $0x140] sm:$0xff] }
  0xbd   :  { %1350 = vmatprep.subr.mxu1 %v295_v45  ;;  %1190 = vmatpush1.msra.mxu0 %v70_v4  ;;  %v217_v39 = vld [vmem:[%s7124_s0 + $0x640] sm:$0xff]  ;;  %v435_v45 = vld [vmem:[%s7124_s0 + $0xd10] sm:$0xff]  ;;  %v210_v4 = vld [vmem:[%s7124_s0 + $0x608] sm:$0xff] }
  0xbe   :  { %1351 = vmatpush1.msra.mxu1 %v294_v46  ;;  %1191 = vmatprep.subr.mxu0 %v64_v47  ;;  %v428_v46 = vld [vmem:[%s7124_s0 + $0xcd8] sm:$0xff]  ;;  %v203_v47 = vld [vmem:[%s7124_s0 + $0x5d0] sm:$0xff] }
  0xbf   :  { %1352 = vmatprep.subr.mxu1 %v288_v10  ;;  %945 = vmatprep.mubr.f32.mxu0 %v3816_v58  ;;  %v280_v58 = vld [vmem:[%s7124_s0 + $0x838] sm:$0xff]  ;;  %v421_v10 = vld [vmem:[%s7124_s0 + $0xca0] sm:$0xff] }
  0xc0   :  { %1106 = vmatprep.mubr.f32.mxu1 %v3821_v59  ;;  %1192 = vmatpush1.msra.mxu0 %v63_v11  ;;  %v50_v59 = vld [vmem:[%s7124_s0 + $0x108] sm:$0xff]  ;;  %v196_v11 = vld [vmem:[%s7124_s0 + $0x598] sm:$0xff] }
  0xc1   :  { %1353 = vmatpush1.msra.mxu1 %v287_v50  ;;  %946 = vmatmul.mubr.f32.gmra.mxu0 %v3832_v62  ;;  %v273_v62 = vld [vmem:[%s7124_s0 + $0x800] sm:$0xff]  ;;  %v414_v50 = vld [vmem:[%s7124_s0 + $0xc68] sm:$0xff] }
  0xc2   :  { %1107 = vmatmul.mubr.f32.gmra.mxu1 %v3837_v0  ;;  %1193 = vmatprep.subr.mxu0 %v57_v51  ;;  %v43_v0 = vld [vmem:[%s7124_s0 + $0xd0] sm:$0xff]  ;;  %v189_v51 = vld [vmem:[%s7124_s0 + $0x560] sm:$0xff] }
  0xc3   :  { %1354 = vmatprep.subr.mxu1 %v281_v5  ;;  %1194 = vmatpush1.msra.mxu0 %v56_v28  ;;  %v407_v5 = vld [vmem:[%s7124_s0 + $0xc30] sm:$0xff]  ;;  %v182_v28 = vld [vmem:[%s7124_s0 + $0x528] sm:$0xff] }
  0xc4   :  { %1355 = vmatpush1.msra.mxu1 %v280_v58  ;;  %1195 = vmatprep.subr.mxu0 %v50_v59  ;;  %v400_v58 = vld [vmem:[%s7124_s0 + $0xbf8] sm:$0xff]  ;;  %v175_v59 = vld [vmem:[%s7124_s0 + $0x4f0] sm:$0xff] }
  0xc5   :  { %1356 = vmatprep.subr.mxu1 %v274_v14  ;;  %951 = vmatprep.mubr.f32.mxu0 %v3864_v12  ;;  %v266_v12 = vld [vmem:[%s7124_s0 + $0x7c8] sm:$0xff]  ;;  %v393_v14 = vld [vmem:[%s7124_s0 + $0xbc0] sm:$0xff] }
  0xc6   :  { %1112 = vmatprep.mubr.f32.mxu1 %v3869_v13  ;;  %1196 = vmatpush1.msra.mxu0 %v49_v15  ;;  %v36_v13 = vld [vmem:[%s7124_s0 + $0x98] sm:$0xff] }
  0xc7   :  { %1357 = vmatpush1.msra.mxu1 %v273_v62  ;;  %952 = vmatmul.mubr.f32.gmra.mxu0 %v3880_v18  ;;  %v259_v18 = vld [vmem:[%s7124_s0 + $0x790] sm:$0xff]  ;;  %v168_v15 = vld [vmem:[%s7124_s0 + $0x4b8] sm:$0xff]  ;;  %v162_v62 = vld [vmem:[%s7124_s0 + $0x488] sm:$0xff] }
  0xc8   :  { %1113 = vmatmul.mubr.f32.gmra.mxu1 %v3885_v19  ;;  %1197 = vmatprep.subr.mxu0 %v43_v0  ;;  %v29_v19 = vld [vmem:[%s7124_s0 + $0x60] sm:$0xff]  ;;  %v386_v0 = vld [vmem:[%s7124_s0 + $0xb88] sm:$0xff] }
  0xc9   :  { %1358 = vmatprep.subr.mxu1 %v267_v29  ;;  %1198 = vmatpush1.msra.mxu0 %v42_v56  ;;  %v161_v29 = vld [vmem:[%s7124_s0 + $0x480] sm:$0xff]  ;;  %v7311_v56 = vld [vmem:[#allocation3_spill] sm:$0xff] }
  0xca   :  { %1359 = vmatpush1.msra.mxu1 %v266_v12  ;;  %1199 = vmatprep.subr.mxu0 %v36_v13  ;;  %v7312_v12 = vld [vmem:[#allocation4_spill] sm:$0xff] }
  0xcb   :  { %1360 = vmatprep.subr.mxu1 %v260_v22  ;;  %957 = vmatprep.mubr.f32.mxu0 %v3912_v30  ;;  %v252_v30 = vld [vmem:[%s7124_s0 + $0x758] sm:$0xff]  ;;  %v155_v13 = vld [vmem:[%s7124_s0 + $0x450] sm:$0xff] }
  0xcc   :  { %1118 = vmatprep.mubr.f32.mxu1 %v3917_v31  ;;  %1200 = vmatpush1.msra.mxu0 %v35_v23  ;;  %v22_v31 = vld [vmem:[%s7124_s0 + $0x28] sm:$0xff]  ;;  %v379_v22 = vld [vmem:[%s7124_s0 + $0xb50] sm:$0xff] }
  0xcd   :  { %1361 = vmatpush1.msra.mxu1 %v259_v18  ;;  %958 = vmatmul.mubr.f32.gmra.mxu0 %v3928_v36  ;;  %v245_v36 = vld [vmem:[%s7124_s0 + $0x720] sm:$0xff]  ;;  %v154_v23 = vld [vmem:[%s7124_s0 + $0x448] sm:$0xff] }
  0xce   :  { %1119 = vmatmul.mubr.f32.gmra.mxu1 %v3933_v37  ;;  %1201 = vmatprep.subr.mxu0 %v29_v19  ;;  %v239_v37 = vld [vmem:[%s7124_s0 + $0x6f0] sm:$0xff]  ;;  %v378_v18 = vld [vmem:[%s7124_s0 + $0xb48] sm:$0xff]  ;;  %v7313_v19 = vld [vmem:[#allocation5_spill] sm:$0xff] }
  0xcf   :  { %1362 = vmatprep.subr.mxu1 %v253_v57  ;;  %1202 = vmatpush1.msra.mxu0 %v28_v63  ;;  %v7314_v57 = vld [vmem:[#allocation6_spill] sm:$0xff]  ;;  %v148_v63 = vld [vmem:[%s7124_s0 + $0x418] sm:$0xff] }
  0xd0   :  { %1363 = vmatpush1.msra.mxu1 %v252_v30  ;;  %1203 = vmatprep.subr.mxu0 %v22_v31  ;;  %v372_v30 = vld [vmem:[%s7124_s0 + $0xb18] sm:$0xff]  ;;  %v147_v31 = vld [vmem:[%s7124_s0 + $0x410] sm:$0xff] }
  0xd1   :  { %1364 = vmatprep.subr.mxu1 %v246_v26  ;;  %963 = vmatprep.mubr.f32.mxu0 %v3960_v48  ;;  %v462_v48 = vld [vmem:[%s7124_s0 + $0xde8] sm:$0xff]  ;;  %v371_v26 = vld [vmem:[%s7124_s0 + $0xb10] sm:$0xff] }
  0xd2   :  { %1124 = vmatprep.mubr.f32.mxu1 %v3965_v49  ;;  %1204 = vmatpush1.msra.mxu0 %v21_v27  ;;  %v232_v49 = vld [vmem:[%s7124_s0 + $0x6b8] sm:$0xff]  ;;  %v7315_v27 = vld [vmem:[#allocation7_spill] sm:$0xff] }
  0xd3   :  { %1365 = vmatpush1.msra.mxu1 %v245_v36  ;;  %964 = vmatmul.mubr.f32.gmra.mxu0 %v3976_v54  ;;  %v455_v54 = vld [vmem:[%s7124_s0 + $0xdb0] sm:$0xff] }
  0xd4   :  { %1125 = vmatmul.mubr.f32.gmra.mxu1 %v3981_v55  ;;  %1205 = vmatprep.subr.mxu0 %v239_v37  ;;  %v225_v55 = vld [vmem:[%s7124_s0 + $0x680] sm:$0xff]  ;;  %v7316_v36 = vld [vmem:[#allocation8_spill] sm:$0xff] }
  0xd5   :  { %1366 = vmatprep.subr.mxu1 %v463_v1  ;;  %1206 = vmatpush2.msra.mxu0 %v238_v21  ;;  %v141_v37 = vld [vmem:[%s7124_s0 + $0x3e0] sm:$0xff]  ;;  %v140_v21 = vld [vmem:[%s7124_s0 + $0x3d8] sm:$0xff] }
  0xd6   :  { %1367 = vmatpush2.msra.mxu1 %v462_v48  ;;  %1207 = vmatprep.subr.mxu0 %v232_v49  ;;  %v365_v1 = vld [vmem:[%s7124_s0 + $0xae0] sm:$0xff]  ;;  %v364_v48 = vld [vmem:[%s7124_s0 + $0xad8] sm:$0xff] }
  0xd7   :  { %1368 = vmatprep.subr.mxu1 %v456_v34  ;;  %969 = vmatprep.mubr.f32.mxu0 %v4008_v6  ;;  %v448_v6 = vld [vmem:[%s7124_s0 + $0xd78] sm:$0xff]  ;;  %v134_v34 = vld [vmem:[%s7124_s0 + $0x3a8] sm:$0xff] }
  0xd8   :  { %1130 = vmatprep.mubr.f32.mxu1 %v4013_v7  ;;  %1208 = vmatpush2.msra.mxu0 %v231_v35  ;;  %v218_v7 = vld [vmem:[%s7124_s0 + $0x648] sm:$0xff]  ;;  %v7317_v49 = vld [vmem:[#allocation9_spill] sm:$0xff] }
  0xd9   :  { %1369 = vmatpush2.msra.mxu1 %v455_v54  ;;  %970 = vmatmul.mubr.f32.gmra.mxu0 %v4024_v16  ;;  %v441_v16 = vld [vmem:[%s7124_s0 + $0xd40] sm:$0xff]  ;;  %v358_v35 = vld [vmem:[%s7124_s0 + $0xaa8] sm:$0xff] }
  0xda   :  { %1131 = vmatmul.mubr.f32.gmra.mxu1 %v4029_v17  ;;  %1209 = vmatprep.subr.mxu0 %v225_v55  ;;  %v211_v17 = vld [vmem:[%s7124_s0 + $0x610] sm:$0xff]  ;;  %v133_v54 = vld [vmem:[%s7124_s0 + $0x3a0] sm:$0xff]  ;;  %v4798_v55 = vld [vmem:[%s7125_s1 + $0x8] sm:$0xff] }
  0xdb   :  { %1370 = vmatprep.subr.mxu1 %v449_v2  ;;  %1210 = vmatpush2.msra.mxu0 %v224_v3  ;;  %v240_v2 = vld [vmem:[%s7124_s0 + $0x6f8] sm:$0xff] }
  0xdc   :  { %1371 = vmatpush2.msra.mxu1 %v448_v6  ;;  %1211 = vmatprep.subr.mxu0 %v218_v7  ;;  %v464_v3 = vld [vmem:[%s7124_s0 + $0xdf8] sm:$0xff] }
  0xdd   :  { %1372 = vmatprep.subr.mxu1 %v442_v38  ;;  %975 = vmatprep.mubr.f32.mxu0 %v4056_v32  ;;  %v434_v32 = vld [vmem:[%s7124_s0 + $0xd08] sm:$0xff]  ;;  %v4810_v6 = vld [vmem:[%s7125_s1 + $0x18] sm:$0xff] }
  0xde   :  { %1136 = vmatprep.mubr.f32.mxu1 %v4061_v33  ;;  %1212 = vmatpush2.msra.mxu0 %v217_v39  ;;  %v204_v33 = vld [vmem:[%s7124_s0 + $0x5d8] sm:$0xff]  ;;  %v4822_v39 = vld [vmem:[%s7125_s1] sm:$0xff] }
  0xdf   :  { %1373 = vmatpush2.msra.mxu1 %v441_v16  ;;  %976 = vmatmul.mubr.f32.gmra.mxu0 %v4072_v42  ;;  %v427_v42 = vld [vmem:[%s7124_s0 + $0xcd0] sm:$0xff]  ;;  %v128_v7 = vld [vmem:[%s7124_s0 + $0x378] sm:$0xff] }
  0xe0   :  { %1137 = vmatmul.mubr.f32.gmra.mxu1 %v4077_v43  ;;  %1213 = vmatprep.subr.mxu0 %v211_v17  ;;  %v197_v43 = vld [vmem:[%s7124_s0 + $0x5a0] sm:$0xff]  ;;  %v352_v38 = vld [vmem:[%s7124_s0 + $0xa78] sm:$0xff]  ;;  %v4828_v16 = vld [vmem:[%s7125_s1 + $0x10] sm:$0xff] }
  0xe1   :  { %1374 = vmatprep.subr.mxu1 %v435_v45  ;;  %1214 = vmatpush2.msra.mxu0 %v210_v4 }
  0xe2   :  { %1375 = vmatpush2.msra.mxu1 %v434_v32  ;;  %1215 = vmatprep.subr.mxu0 %v204_v33  ;;  %v233_v32 = vld [vmem:[%s7124_s0 + $0x6c0] sm:$0xff] }
  0xe3   :  { %1376 = vmatprep.subr.mxu1 %v428_v46  ;;  %981 = vmatprep.mubr.f32.mxu0 %v4104_v60  ;;  %v420_v60 = vld [vmem:[%s7124_s0 + $0xc98] sm:$0xff]  ;;  %v457_v33 = vld [vmem:[%s7124_s0 + $0xdc0] sm:$0xff] }
  0xe4   :  { %1142 = vmatprep.mubr.f32.mxu1 %v4109_v61  ;;  %1216 = vmatpush2.msra.mxu0 %v203_v47  ;;  %v190_v61 = vld [vmem:[%s7124_s0 + $0x568] sm:$0xff] }
  0xe5   :  { %1377 = vmatpush2.msra.mxu1 %v427_v42  ;;  %982 = vmatmul.mubr.f32.gmra.mxu0 %v4120_v8  ;;  %v413_v8 = vld [vmem:[%s7124_s0 + $0xc60] sm:$0xff]  ;;  %v4846_v42 = vld [vmem:[%s7125_s1 + $0x28] sm:$0xff] }
  0xe6   :  { %1143 = vmatmul.mubr.f32.gmra.mxu1 %v4125_v9  ;;  %1217 = vmatprep.subr.mxu0 %v197_v43  ;;  %v183_v9 = vld [vmem:[%s7124_s0 + $0x530] sm:$0xff]  ;;  %v4852_v43 = vld [vmem:[%s7125_s1 + $0x38] sm:$0xff] }
  0xe7   :  { %1378 = vmatprep.subr.mxu1 %v421_v10  ;;  %1218 = vmatpush2.msra.mxu0 %v196_v11  ;;  %v121_v10 = vld [vmem:[%s7124_s0 + $0x340] sm:$0xff] }
  0xe8   :  { %1379 = vmatpush2.msra.mxu1 %v420_v60  ;;  %1219 = vmatprep.subr.mxu0 %v190_v61  ;;  %v345_v11 = vld [vmem:[%s7124_s0 + $0xa40] sm:$0xff]  ;;  %v4870_v61 = vld [vmem:[%s7125_s1 + $0x30] sm:$0xff] }
  0xe9   :  { %1380 = vmatprep.subr.mxu1 %v414_v50  ;;  %987 = vmatprep.mubr.f32.mxu0 %v4152_v40  ;;  %v406_v40 = vld [vmem:[%s7124_s0 + $0xc28] sm:$0xff]  ;;  %v4864_v60 = vld [vmem:[%s7125_s1 + $0x20] sm:$0xff] }
  0xea   :  { %1148 = vmatprep.mubr.f32.mxu1 %v4157_v41  ;;  %1220 = vmatpush2.msra.mxu0 %v189_v51  ;;  %v176_v41 = vld [vmem:[%s7124_s0 + $0x4f8] sm:$0xff]  ;;  %v226_v50 = vld [vmem:[%s7124_s0 + $0x688] sm:$0xff] }
  0xeb   :  { %1381 = vmatpush2.msra.mxu1 %v413_v8  ;;  %988 = vmatmul.mubr.f32.gmra.mxu0 %v4168_v52  ;;  %v399_v52 = vld [vmem:[%s7124_s0 + $0xbf0] sm:$0xff]  ;;  %v450_v51 = vld [vmem:[%s7124_s0 + $0xd88] sm:$0xff] }
  0xec   :  { %1149 = vmatmul.mubr.f32.gmra.mxu1 %v4173_v53  ;;  %1221 = vmatprep.subr.mxu0 %v183_v9  ;;  %v169_v53 = vld [vmem:[%s7124_s0 + $0x4c0] sm:$0xff] }
  0xed   :  { %1382 = vmatprep.subr.mxu1 %v407_v5  ;;  %1222 = vmatpush2.msra.mxu0 %v182_v28  ;;  %v4882_v5 = vld [vmem:[%s7125_s1 + $0x48] sm:$0xff]  ;;  %v4888_v28 = vld [vmem:[%s7125_s1 + $0x58] sm:$0xff] }
  0xee   :  { %1383 = vmatpush2.msra.mxu1 %v406_v40  ;;  %1223 = vmatprep.subr.mxu0 %v176_v41  ;;  %v114_v40 = vld [vmem:[%s7124_s0 + $0x308] sm:$0xff] }
  0xef   :  { %1384 = vmatprep.subr.mxu1 %v400_v58  ;;  %993 = vmatprep.mubr.f32.mxu0 %v4200_v24  ;;  %v392_v24 = vld [vmem:[%s7124_s0 + $0xbb8] sm:$0xff]  ;;  %v338_v41 = vld [vmem:[%s7124_s0 + $0xa08] sm:$0xff] }
  0xf0   :  { %1154 = vmatprep.mubr.f32.mxu1 %v4205_v25  ;;  %1224 = vmatpush2.msra.mxu0 %v175_v59  ;;  %v7310_v25 = vld [vmem:[#allocation2_spill] sm:$0xff] }
  0xf1   :  { %1385 = vmatpush2.msra.mxu1 %v399_v52  ;;  %994 = vmatmul.mubr.f32.gmra.mxu0 %v4216_v44  ;;  %v385_v44 = vld [vmem:[%s7124_s0 + $0xb80] sm:$0xff]  ;;  %v4908_v52 = vld [vmem:[%s7125_s1 + $0x50] sm:$0xff] }
  0xf2   :  { %1155 = vmatmul.mubr.f32.gmra.mxu1 %v7310_v25  ;;  %1225 = vmatprep.subr.mxu0 %v169_v53  ;;  %v4902_v59 = vld [vmem:[%s7125_s1 + $0x40] sm:$0xff]  ;;  %v4924_v25 = vld [vmem:[%s7125_s1 + $0x68] sm:$0xff] }
  0xf3   :  { %1386 = vmatprep.subr.mxu1 %v393_v14  ;;  %1226 = vmatpush2.msra.mxu0 %v168_v15  ;;  %v219_v15 = vld [vmem:[%s7124_s0 + $0x650] sm:$0xff] }
  0xf4   :  { %1387 = vmatpush2.msra.mxu1 %v392_v24  ;;  %1227 = vmatprep.subr.mxu0 %v162_v62  ;;  %v443_v24 = vld [vmem:[%s7124_s0 + $0xd50] sm:$0xff]  ;;  %v4930_v62 = vld [vmem:[%s7125_s1 + $0x78] sm:$0xff] }
  0xf5   :  { %1388 = vmatprep.subr.mxu1 %v386_v0  ;;  %999 = vmatprep.mubr.f32.mxu0 %v7311_v56  ;;  %v107_v0 = vld [vmem:[%s7124_s0 + $0x2d0] sm:$0xff] }
  0xf6   :  { %1160 = vmatprep.mubr.f32.mxu1 %v7312_v12  ;;  %1228 = vmatpush2.msra.mxu0 %v161_v29  ;;  %v331_v29 = vld [vmem:[%s7124_s0 + $0x9d0] sm:$0xff] }
  0xf7   :  { %1389 = vmatpush2.msra.mxu1 %v385_v44  ;;  %1000 = vmatmul.mubr.f32.gmra.mxu0 %v7313_v19  ;;  %v4942_v44 = vld [vmem:[%s7125_s1 + $0x60] sm:$0xff]  ;;  %v4948_v56 = vld [vmem:[%s7125_s1 + $0x70] sm:$0xff] }
  0xf8   :  { %1161 = vmatmul.mubr.f32.gmra.mxu1 %v7314_v57  ;;  %1229 = vmatprep.subr.mxu0 %v155_v13 }
  0xf9   :  { %1390 = vmatprep.subr.mxu1 %v379_v22  ;;  %1230 = vmatpush2.msra.mxu0 %v154_v23  ;;  %v212_v23 = vld [vmem:[%s7124_s0 + $0x618] sm:$0xff] }
  0xfa   :  { %1391 = vmatpush2.msra.mxu1 %v378_v18  ;;  %1231 = vmatprep.subr.mxu0 %v148_v63  ;;  %v436_v18 = vld [vmem:[%s7124_s0 + $0xd18] sm:$0xff]  ;;  %v4966_v63 = vld [vmem:[%s7125_s1 + $0x88] sm:$0xff] }
  0xfb   :  { %1392 = vmatprep.subr.mxu1 %v372_v30  ;;  %1005 = vmatprep.mubr.f32.mxu0 %v7315_v27  ;;  %v4972_v30 = vld [vmem:[%s7125_s1 + $0x98] sm:$0xff]  ;;  %v4984_v27 = vld [vmem:[%s7125_s1 + $0x80] sm:$0xff] }
  0xfc   :  { %1166 = vmatprep.mubr.f32.mxu1 %v7316_v36  ;;  %1232 = vmatpush2.msra.mxu0 %v147_v31  ;;  %v100_v31 = vld [vmem:[%s7124_s0 + $0x298] sm:$0xff]  ;;  %v4990_v36 = vld [vmem:[%s7125_s1 + $0x90] sm:$0xff] }
  0xfd   :  { %1393 = vmatpush2.msra.mxu1 %v371_v26  ;;  %1006 = vmatmul.mubr.f32.gmra.mxu0 %v4312_v20  ;;  %v357_v20 = vld [vmem:[%s7124_s0 + $0xaa0] sm:$0xff]  ;;  %v324_v26 = vld [vmem:[%s7124_s0 + $0x998] sm:$0xff] }
  0xfe   :  { %1167 = vmatmul.mubr.f32.gmra.mxu1 %v7317_v49  ;;  %1233 = vmatprep.subr.mxu0 %v141_v37  ;;  %v205_v37 = vld [vmem:[%s7124_s0 + $0x5e0] sm:$0xff]  ;;  %v5002_v49 = vld [vmem:[%s7125_s1 + $0xa8] sm:$0xff] }
  0xff   :  { %1394 = vmatprep.subr.mxu1 %v365_v1  ;;  %1234 = vmatpush2.msra.mxu0 %v140_v21  ;;  %v429_v1 = vld [vmem:[%s7124_s0 + $0xce0] sm:$0xff] }
 0x100   :  { %1395 = vmatpush2.msra.mxu1 %v364_v48  ;;  %1235 = vmatprep.subr.mxu0 %v134_v34  ;;  %v5008_v34 = vld [vmem:[%s7125_s1 + $0xb8] sm:$0xff] }
 0x101   :  { %1396 = vmatprep.subr.mxu1 %v358_v35  ;;  %1236 = vmatpush2.msra.mxu0 %v133_v54  ;;  %v93_v35 = vld [vmem:[%s7124_s0 + $0x260] sm:$0xff] }
 0x102   :  { %1237 = vmatprep.mubr.f32.mxu0 %v4798_v55  ;;  %1397 = vmatpush2.msra.mxu1 %v357_v20  ;;  %v317_v54 = vld [vmem:[%s7124_s0 + $0x960] sm:$0xff] }
 0x103   :  { %1398 = vmatprep.mubr.f32.mxu1 %v4810_v6  ;;  %1238 = vmatmul.mubr.f32.vlgmr.msra.gmra.mxu0 %v4822_v39  ;;  %v595_v17 = vpop.f32.mrf.mxu0 }
 0x104   :  { %1399 = vmatmul.mubr.f32.vlgmr.msra.gmra.mxu1 %v4828_v16  ;;  %v756_v45 = vpop.f32.mrf.mxu1  ;;  %2910 = vmatprep.subr.mxu0 %v240_v2  ;;  %v5022_v2 = vld [vmem:[%s7125_s1 + $0xa0] sm:$0xff] }
 0x105   :  { %2990 = vmatprep.subr.mxu1 %v464_v3  ;;  %v4831_v4 = vadd.f32 %v756_v45, %v595_v17  ;;  %2911 = vmatpush3.msra.mxu0 %v128_v7  ;;  %v4839_v46 = vpop.f32.mrf.mxu0  ;;  %v5028_v3 = vld [vmem:[%s7125_s1 + $0xb0] sm:$0xff]  ;;  %v198_v17 = vld [vmem:[%s7124_s0 + $0x5a8] sm:$0xff] }
 0x106   :  { %2991 = vmatpush3.msra.mxu1 %v352_v38  ;;  %7319 = vst [vmem:[#allocation3_spill] sm:$0xff] %v4839_v46  ;;  %v4841_v47 = vpop.f32.mrf.mxu1  ;;  %1243 = vmatprep.mubr.f32.mxu0 %v4846_v42  ;;  %v422_v45 = vld [vmem:[%s7124_s0 + $0xca8] sm:$0xff] }
 0x107   :  { %7318 = vst [vmem:[#allocation2_spill] sm:$0xff] %v4831_v4  ;;  %7320 = vst [vmem:[#allocation4_spill] sm:$0xff] %v4841_v47  ;;  %1404 = vmatprep.mubr.f32.mxu1 %v4852_v43  ;;  %1244 = vmatmul.mubr.f32.gmra.mxu0 %v4864_v60  ;;  %v5322_v46 = vld [vmem:[%s7125_s1 + $0x1a8] sm:$0xff] }
 0x108   :  { %1405 = vmatmul.mubr.f32.gmra.mxu1 %v4870_v61  ;;  %2912 = vmatprep.subr.mxu0 %v233_v32  ;;  %v5044_v32 = vld [vmem:[%s7125_s1 + $0xc8] sm:$0xff] }
 0x109   :  { %2992 = vmatprep.subr.mxu1 %v457_v33  ;;  %2913 = vmatpush3.msra.mxu0 %v121_v10  ;;  %v601_v8 = vpop.f32.mrf.mxu0  ;;  %v5050_v33 = vld [vmem:[%s7125_s1 + $0xd8] sm:$0xff]  ;;  %v86_v10 = vld [vmem:[%s7124_s0 + $0x228] sm:$0xff] }
 0x10a   :  { %2993 = vmatpush3.msra.mxu1 %v345_v11  ;;  %v762_v9 = vpop.f32.mrf.mxu1  ;;  %1249 = vmatprep.mubr.f32.mxu0 %v4882_v5  ;;  %v310_v11 = vld [vmem:[%s7124_s0 + $0x928] sm:$0xff] }
 0x10b   :  { %1410 = vmatprep.mubr.f32.mxu1 %v4888_v28  ;;  %v4897_v58 = vadd.f32 %v762_v9, %v601_v8  ;;  %1250 = vmatmul.mubr.f32.gmra.mxu0 %v4902_v59  ;;  %v4911_v53 = vpop.f32.mrf.mxu0 }
 0x10c   :  { %1411 = vmatmul.mubr.f32.gmra.mxu1 %v4908_v52  ;;  %7322 = vst [vmem:[#allocation6_spill] sm:$0xff] %v4911_v53  ;;  %v4913_v14 = vpop.f32.mrf.mxu1  ;;  %2914 = vmatprep.subr.mxu0 %v226_v50  ;;  %v5062_v50 = vld [vmem:[%s7125_s1 + $0xc0] sm:$0xff] }
 0x10d   :  { %7321 = vst [vmem:[#allocation5_spill] sm:$0xff] %v4897_v58  ;;  %7323 = vst [vmem:[#allocation7_spill] sm:$0xff] %v4913_v14  ;;  %2994 = vmatprep.subr.mxu1 %v450_v51  ;;  %2915 = vmatpush3.msra.mxu0 %v114_v40  ;;  %v5068_v51 = vld [vmem:[%s7125_s1 + $0xd0] sm:$0xff]  ;;  %v149_v14 = vld [vmem:[%s7124_s0 + $0x420] sm:$0xff] }
 0x10e   :  { %2995 = vmatpush3.msra.mxu1 %v338_v41  ;;  %1255 = vmatprep.mubr.f32.mxu0 %v4924_v25  ;;  %v191_v41 = vld [vmem:[%s7124_s0 + $0x570] sm:$0xff]  ;;  %v373_v53 = vld [vmem:[%s7124_s0 + $0xb20] sm:$0xff] }
 0x10f   :  { %1416 = vmatprep.mubr.f32.mxu1 %v4930_v62  ;;  %1256 = vmatmul.mubr.f32.gmra.mxu0 %v4942_v44  ;;  %v607_v12 = vpop.f32.mrf.mxu0 }
 0x110   :  { %1417 = vmatmul.mubr.f32.gmra.mxu1 %v4948_v56  ;;  %v768_v13 = vpop.f32.mrf.mxu1  ;;  %2916 = vmatprep.subr.mxu0 %v219_v15  ;;  %v415_v15 = vld [vmem:[%s7124_s0 + $0xc70] sm:$0xff] }
 0x111   :  { %2996 = vmatprep.subr.mxu1 %v443_v24  ;;  %v4951_v22 = vadd.f32 %v768_v13, %v607_v12  ;;  %2917 = vmatpush3.msra.mxu0 %v107_v0  ;;  %v4959_v19 = vpop.f32.mrf.mxu0  ;;  %v5092_v12 = vld [vmem:[%s7125_s1 + $0xf8] sm:$0xff]  ;;  %v79_v13 = vld [vmem:[%s7124_s0 + $0x1f0] sm:$0xff] }
 0x112   :  { %2997 = vmatpush3.msra.mxu1 %v331_v29  ;;  %7325 = vst [vmem:[#allocation9_spill] sm:$0xff] %v4959_v19  ;;  %v4961_v57 = vpop.f32.mrf.mxu1  ;;  %1261 = vmatprep.mubr.f32.mxu0 %v4966_v63  ;;  %v5086_v29 = vld [vmem:[%s7125_s1 + $0xe8] sm:$0xff] }
 0x113   :  { %7324 = vst [vmem:[#allocation8_spill] sm:$0xff] %v4951_v22  ;;  %7326 = vst [vmem:[#allocation10_spill] sm:$0xff] %v4961_v57  ;;  %1422 = vmatprep.mubr.f32.mxu1 %v4972_v30  ;;  %1262 = vmatmul.mubr.f32.gmra.mxu0 %v4984_v27 }
 0x114   :  { %1423 = vmatmul.mubr.f32.gmra.mxu1 %v4990_v36  ;;  %2918 = vmatprep.subr.mxu0 %v212_v23  ;;  %v303_v23 = vld [vmem:[%s7124_s0 + $0x8f0] sm:$0xff] }
 0x115   :  { %2998 = vmatprep.subr.mxu1 %v436_v18  ;;  %2919 = vmatpush3.msra.mxu0 %v100_v31  ;;  %v613_v21 = vpop.f32.mrf.mxu0  ;;  %v5104_v18 = vld [vmem:[%s7125_s1 + $0xe0] sm:$0xff]  ;;  %v5110_v31 = vld [vmem:[%s7125_s1 + $0xf0] sm:$0xff] }
 0x116   :  { %2999 = vmatpush3.msra.mxu1 %v324_v26  ;;  %v774_v48 = vpop.f32.mrf.mxu1  ;;  %1267 = vmatprep.mubr.f32.mxu0 %v5002_v49  ;;  %v184_v26 = vld [vmem:[%s7124_s0 + $0x538] sm:$0xff] }
 0x117   :  { %1428 = vmatprep.mubr.f32.mxu1 %v5008_v34  ;;  %v5017_v20 = vadd.f32 %v774_v48, %v613_v21  ;;  %1268 = vmatmul.mubr.f32.gmra.mxu0 %v5022_v2  ;;  %v5031_v7 = vpop.f32.mrf.mxu0  ;;  %v5122_v48 = vld [vmem:[%s7125_s1 + $0x108] sm:$0xff] }
 0x118   :  { %1429 = vmatmul.mubr.f32.gmra.mxu1 %v5028_v3  ;;  %7328 = vst [vmem:[#allocation12_spill] sm:$0xff] %v5031_v7  ;;  %v5033_v38 = vpop.f32.mrf.mxu1  ;;  %2920 = vmatprep.subr.mxu0 %v205_v37  ;;  %v408_v37 = vld [vmem:[%s7124_s0 + $0xc38] sm:$0xff]  ;;  %v5268_v7 = vld [vmem:[%s7125_s1 + $0x170] sm:$0xff] }
 0x119   :  { %7327 = vst [vmem:[#allocation11_spill] sm:$0xff] %v5017_v20  ;;  %7329 = vst [vmem:[#allocation13_spill] sm:$0xff] %v5033_v38  ;;  %3000 = vmatprep.subr.mxu1 %v429_v1  ;;  %2921 = vmatpush3.msra.mxu0 %v93_v35  ;;  %v5128_v35 = vld [vmem:[%s7125_s1 + $0x118] sm:$0xff]  ;;  %v5242_v20 = vld [vmem:[%s7125_s1 + $0x168] sm:$0xff] }
 0x11a   :  { %3001 = vmatpush3.msra.mxu1 %v317_v54  ;;  %1273 = vmatprep.mubr.f32.mxu0 %v5044_v32  ;;  %v72_v54 = vld [vmem:[%s7124_s0 + $0x1b8] sm:$0xff]  ;;  %v5262_v38 = vld [vmem:[%s7125_s1 + $0x160] sm:$0xff] }
 0x11b   :  { %1434 = vmatprep.mubr.f32.mxu1 %v5050_v33  ;;  %1274 = vmatmul.mubr.f32.gmra.mxu0 %v5062_v50  ;;  %v619_v8 = vpop.f32.mrf.mxu0 }
 0x11c   :  { %1435 = vmatmul.mubr.f32.gmra.mxu1 %v5068_v51  ;;  %v780_v9 = vpop.f32.mrf.mxu1  ;;  %2922 = vmatprep.subr.mxu0 %v198_v17  ;;  %v296_v17 = vld [vmem:[%s7124_s0 + $0x8b8] sm:$0xff] }
 0x11d   :  { %3002 = vmatprep.subr.mxu1 %v422_v45  ;;  %v5071_v40 = vadd.f32 %v780_v9, %v619_v8  ;;  %2923 = vmatpush3.msra.mxu0 %v86_v10  ;;  %v5079_v24 = vpop.f32.mrf.mxu0  ;;  %v5142_v10 = vld [vmem:[%s7125_s1 + $0x100] sm:$0xff] }
 0x11e   :  { %3003 = vmatpush3.msra.mxu1 %v310_v11  ;;  %7331 = vst [vmem:[#allocation15_spill] sm:$0xff] %v5079_v24  ;;  %v5081_v0 = vpop.f32.mrf.mxu1  ;;  %1279 = vmatprep.mubr.f32.mxu0 %v5086_v29  ;;  %v5148_v11 = vld [vmem:[%s7125_s1 + $0x110] sm:$0xff] }
 0x11f   :  { %7330 = vst [vmem:[#allocation14_spill] sm:$0xff] %v5071_v40  ;;  %7332 = vst [vmem:[#allocation16_spill] sm:$0xff] %v5081_v0  ;;  %1440 = vmatprep.mubr.f32.mxu1 %v5092_v12  ;;  %1280 = vmatmul.mubr.f32.gmra.mxu0 %v5104_v18 }
 0x120   :  { %1441 = vmatmul.mubr.f32.gmra.mxu1 %v5110_v31  ;;  %2924 = vmatprep.subr.mxu0 %v191_v41  ;;  %v177_v41 = vld [vmem:[%s7124_s0 + $0x500] sm:$0xff] }
 0x121   :  { %3004 = vmatprep.subr.mxu1 %v415_v15  ;;  %2925 = vmatpush3.msra.mxu0 %v79_v13  ;;  %v625_v1 = vpop.f32.mrf.mxu0  ;;  %v401_v15 = vld [vmem:[%s7124_s0 + $0xc00] sm:$0xff]  ;;  %v5164_v13 = vld [vmem:[%s7125_s1 + $0x128] sm:$0xff] }
 0x122   :  { %3005 = vmatpush3.msra.mxu1 %v303_v23  ;;  %v786_v21 = vpop.f32.mrf.mxu1  ;;  %1285 = vmatprep.mubr.f32.mxu0 %v5122_v48  ;;  %v5170_v23 = vld [vmem:[%s7125_s1 + $0x138] sm:$0xff] }
 0x123   :  { %1446 = vmatprep.mubr.f32.mxu1 %v5128_v35  ;;  %v5137_v45 = vadd.f32 %v786_v21, %v625_v1  ;;  %1286 = vmatmul.mubr.f32.gmra.mxu0 %v5142_v10  ;;  %v5151_v8 = vpop.f32.mrf.mxu0  ;;  %v5182_v1 = vld [vmem:[%s7125_s1 + $0x120] sm:$0xff]  ;;  %v5188_v21 = vld [vmem:[%s7125_s1 + $0x130] sm:$0xff] }
 0x124   :  { %1447 = vmatmul.mubr.f32.gmra.mxu1 %v5148_v11  ;;  %7334 = vst [vmem:[#allocation18_spill] sm:$0xff] %v5151_v8  ;;  %v5153_v9 = vpop.f32.mrf.mxu1  ;;  %2926 = vmatprep.subr.mxu0 %v184_v26  ;;  %v65_v26 = vld [vmem:[%s7124_s0 + $0x180] sm:$0xff]  ;;  %v394_v8 = vld [vmem:[%s7124_s0 + $0xbc8] sm:$0xff] }
 0x125   :  { %7333 = vst [vmem:[#allocation17_spill] sm:$0xff] %v5137_v45  ;;  %7335 = vst [vmem:[#allocation19_spill] sm:$0xff] %v5153_v9  ;;  %3006 = vmatprep.subr.mxu1 %v408_v37  ;;  %2927 = vmatpush3.msra.mxu0 %v72_v54  ;;  %v289_v37 = vld [vmem:[%s7124_s0 + $0x880] sm:$0xff]  ;;  %v170_v9 = vld [vmem:[%s7124_s0 + $0x4c8] sm:$0xff] }
 0x126   :  { %3007 = vmatpush3.msra.mxu1 %v296_v17  ;;  %1291 = vmatprep.mubr.f32.mxu0 %v5164_v13 }
 0x127   :  { %1452 = vmatprep.mubr.f32.mxu1 %v5170_v23  ;;  %1292 = vmatmul.mubr.f32.gmra.mxu0 %v5182_v1  ;;  %v631_v54 = vpop.f32.mrf.mxu0 }
 0x128   :  { %1453 = vmatmul.mubr.f32.gmra.mxu1 %v5188_v21  ;;  %v792_v17 = vpop.f32.mrf.mxu1  ;;  %2928 = vmatprep.subr.mxu0 %v177_v41  ;;  %v5206_v41 = vld [vmem:[%s7125_s1 + $0x148] sm:$0xff] }
 0x129   :  { %3008 = vmatprep.subr.mxu1 %v401_v15  ;;  %v5191_v45 = vadd.f32 %v792_v17, %v631_v54  ;;  %2929 = vmatpush3.msra.mxu0 %v65_v26  ;;  %v5199_v40 = vpop.f32.mrf.mxu0  ;;  %v5212_v15 = vld [vmem:[%s7125_s1 + $0x158] sm:$0xff]  ;;  %v58_v26 = vld [vmem:[%s7124_s0 + $0x148] sm:$0xff]  ;;  %v5224_v54 = vld [vmem:[%s7125_s1 + $0x140] sm:$0xff] }
 0x12a   :  { %3009 = vmatpush3.msra.mxu1 %v289_v37  ;;  %7337 = vst [vmem:[#allocation21_spill] sm:$0xff] %v5199_v40  ;;  %v5201_v0 = vpop.f32.mrf.mxu1  ;;  %1297 = vmatprep.mubr.f32.mxu0 %v5206_v41  ;;  %v282_v37 = vld [vmem:[%s7124_s0 + $0x848] sm:$0xff]  ;;  %v5230_v17 = vld [vmem:[%s7125_s1 + $0x150] sm:$0xff] }
 0x12b   :  { %7336 = vst [vmem:[#allocation20_spill] sm:$0xff] %v5191_v45  ;;  %7338 = vst [vmem:[#allocation22_spill] sm:$0xff] %v5201_v0  ;;  %1458 = vmatprep.mubr.f32.mxu1 %v5212_v15  ;;  %1298 = vmatmul.mubr.f32.gmra.mxu0 %v5224_v54  ;;  %v163_v45 = vld [vmem:[%s7124_s0 + $0x490] sm:$0xff] }
 0x12c   :  { %1459 = vmatmul.mubr.f32.gmra.mxu1 %v5230_v17  ;;  %2930 = vmatprep.subr.mxu0 %v170_v9  ;;  %v387_v0 = vld [vmem:[%s7124_s0 + $0xb90] sm:$0xff] }
 0x12d   :  { %3010 = vmatprep.subr.mxu1 %v394_v8  ;;  %2931 = vmatpush3.msra.mxu0 %v58_v26  ;;  %v637_v40 = vpop.f32.mrf.mxu0  ;;  %v5248_v8 = vld [vmem:[%s7125_s1 + $0x178] sm:$0xff]  ;;  %v51_v9 = vld [vmem:[%s7124_s0 + $0x110] sm:$0xff] }
 0x12e   :  { %3011 = vmatpush3.msra.mxu1 %v282_v37  ;;  %v798_v24 = vpop.f32.mrf.mxu1  ;;  %1303 = vmatprep.mubr.f32.mxu0 %v5242_v20  ;;  %v275_v26 = vld [vmem:[%s7124_s0 + $0x810] sm:$0xff] }
 0x12f   :  { %1464 = vmatprep.mubr.f32.mxu1 %v5248_v8  ;;  %v5257_v37 = vadd.f32 %v798_v24, %v637_v40  ;;  %1304 = vmatmul.mubr.f32.gmra.mxu0 %v5262_v38  ;;  %v5271_v22 = vpop.f32.mrf.mxu0  ;;  %v156_v40 = vld [vmem:[%s7124_s0 + $0x458] sm:$0xff] }
 0x130   :  { %1465 = vmatmul.mubr.f32.gmra.mxu1 %v5268_v7  ;;  %7340 = vst [vmem:[#allocation24_spill] sm:$0xff] %v5271_v22  ;;  %v5273_v57 = vpop.f32.mrf.mxu1  ;;  %2932 = vmatprep.subr.mxu0 %v163_v45  ;;  %v380_v24 = vld [vmem:[%s7124_s0 + $0xb58] sm:$0xff] }
 0x131   :  { %7339 = vst [vmem:[#allocation23_spill] sm:$0xff] %v5257_v37  ;;  %7341 = vst [vmem:[#allocation25_spill] sm:$0xff] %v5273_v57  ;;  %3012 = vmatprep.subr.mxu1 %v387_v0  ;;  %2933 = vmatpush3.msra.mxu0 %v51_v9  ;;  %v5284_v37 = vld [vmem:[%s7125_s1 + $0x188] sm:$0xff]  ;;  %v5290_v0 = vld [vmem:[%s7125_s1 + $0x198] sm:$0xff] }
 0x132   :  { %3013 = vmatpush3.msra.mxu1 %v275_v26  ;;  %1309 = vmatprep.mubr.f32.mxu0 %v5284_v37  ;;  %v44_v45 = vld [vmem:[%s7124_s0 + $0xd8] sm:$0xff]  ;;  %v5302_v26 = vld [vmem:[%s7125_s1 + $0x180] sm:$0xff]  ;;  %v5308_v57 = vld [vmem:[%s7125_s1 + $0x190] sm:$0xff] }
 0x133   :  { %1470 = vmatprep.mubr.f32.mxu1 %v5290_v0  ;;  %v268_v9 = vld [vmem:[%s7124_s0 + $0x7d8] sm:$0xff]  ;;  %1310 = vmatmul.mubr.f32.gmra.mxu0 %v5302_v26  ;;  %v643_v22 = vpop.f32.mrf.mxu0 }
 0x134   :  { %1471 = vmatmul.mubr.f32.gmra.mxu1 %v5308_v57  ;;  %v804_v19 = vpop.f32.mrf.mxu1  ;;  %2934 = vmatprep.subr.mxu0 %v156_v40  ;;  %v261_v40 = vld [vmem:[%s7124_s0 + $0x7a0] sm:$0xff] }
 0x135   :  { %3014 = vmatprep.subr.mxu1 %v380_v24  ;;  %v5311_v58 = vadd.f32 %v804_v19, %v643_v22  ;;  %2935 = vmatpush3.msra.mxu0 %v44_v45  ;;  %v645_v4 = vpop.f32.mrf.mxu0  ;;  %v5328_v22 = vld [vmem:[%s7125_s1 + $0x1b8] sm:$0xff]  ;;  %v37_v19 = vld [vmem:[%s7124_s0 + $0xa0] sm:$0xff] }
 0x136   :  { %3015 = vmatpush3.msra.mxu1 %v268_v9  ;;  %v806_v47 = vpop.f32.mrf.mxu1  ;;  %1315 = vmatprep.mubr.f32.mxu0 %v5322_v46  ;;  %7343 = vst [vmem:[#allocation27_spill] sm:$0xff] %v5328_v22  ;;  %v5342_v45 = vld [vmem:[%s7125_s1 + $0x1a0] sm:$0xff]  ;;  %v5348_v9 = vld [vmem:[%s7125_s1 + $0x1b0] sm:$0xff] }
 0x137   :  { %7342 = vst [vmem:[#allocation26_spill] sm:$0xff] %v5311_v58  ;;  %1476 = vmatprep.mubr.f32.mxu1 %v5328_v22  ;;  %v5337_v24 = vadd.f32 %v806_v47, %v645_v4  ;;  %7345 = vst [vmem:[#allocation29_spill] sm:$0xff] %v5342_v45  ;;  %1316 = vmatmul.mubr.f32.gmra.mxu0 %v5342_v45  ;;  %v142_v4 = vld [vmem:[%s7124_s0 + $0x3e8] sm:$0xff] }
 0x138   :  { %7346 = vst [vmem:[#allocation30_spill] sm:$0xff] %v5348_v9  ;;  %1477 = vmatmul.mubr.f32.gmra.mxu1 %v5348_v9  ;;  %2936 = vmatprep.subr.mxu0 %v149_v14  ;;  %v366_v47 = vld [vmem:[%s7124_s0 + $0xae8] sm:$0xff] }
 0x139   :  { %7344 = vst [vmem:[#allocation28_spill] sm:$0xff] %v5337_v24  ;;  %3016 = vmatprep.subr.mxu1 %v373_v53  ;;  %2937 = vmatpush3.msra.mxu0 %v37_v19  ;;  %v649_v24 = vpop.f32.mrf.mxu0  ;;  %v5360_v45 = vld [vmem:[%s7125_s1 + $0x1c8] sm:$0xff]  ;;  %v5366_v53 = vld [vmem:[%s7125_s1 + $0x1d8] sm:$0xff] }
 0x13a   :  { %3017 = vmatpush3.msra.mxu1 %v261_v40  ;;  %v810_v58 = vpop.f32.mrf.mxu1  ;;  %7347 = vst [vmem:[#allocation31_spill] sm:$0xff] %v5360_v45  ;;  %1321 = vmatprep.mubr.f32.mxu0 %v5360_v45  ;;  %7348 = vst [vmem:[#allocation32_spill] sm:$0xff] %v5366_v53  ;;  %v30_v14 = vld [vmem:[%s7124_s0 + $0x68] sm:$0xff]  ;;  %v5380_v45 = vld [vmem:[%s7125_s1 + $0x1c0] sm:$0xff] }
 0x13b   :  { %1482 = vmatprep.mubr.f32.mxu1 %v5366_v53  ;;  %v254_v19 = vld [vmem:[%s7124_s0 + $0x768] sm:$0xff]  ;;  %v5375_v40 = vadd.f32 %v810_v58, %v649_v24  ;;  %7350 = vst [vmem:[#allocation34_spill] sm:$0xff] %v5380_v45  ;;  %1322 = vmatmul.mubr.f32.gmra.mxu0 %v5380_v45  ;;  %v5386_v53 = vld [vmem:[%s7125_s1 + $0x1d0] sm:$0xff]  ;;  %v651_v9 = vpop.f32.mrf.mxu0 }
 0x13c   :  { %7351 = vst [vmem:[#allocation35_spill] sm:$0xff] %v5386_v53  ;;  %1483 = vmatmul.mubr.f32.gmra.mxu1 %v5386_v53  ;;  %v812_v22 = vpop.f32.mrf.mxu1  ;;  %2938 = vmatprep.subr.mxu0 %v142_v4  ;;  %v135_v24 = vld [vmem:[%s7124_s0 + $0x3b0] sm:$0xff]  ;;  %v5400_v53 = vld [vmem:[%s7125_s1 + $0x1e8] sm:$0xff] }
 0x13d   :  { %7349 = vst [vmem:[#allocation33_spill] sm:$0xff] %v5375_v40  ;;  %3018 = vmatprep.subr.mxu1 %v366_v47  ;;  %v5389_v58 = vadd.f32 %v812_v22, %v651_v9  ;;  %2939 = vmatpush3.msra.mxu0 %v30_v14  ;;  %v359_v40 = vld [vmem:[%s7124_s0 + $0xab0] sm:$0xff]  ;;  %7353 = vst [vmem:[#allocation37_spill] sm:$0xff] %v5400_v53  ;;  %v5406_v22 = vld [vmem:[%s7125_s1 + $0x1f8] sm:$0xff] }
 0x13e   :  { %3019 = vmatpush3.msra.mxu1 %v254_v19  ;;  %1327 = vmatprep.mubr.f32.mxu0 %v5400_v53  ;;  %7354 = vst [vmem:[#allocation38_spill] sm:$0xff] %v5406_v22  ;;  %v23_v9 = vld [vmem:[%s7124_s0 + $0x30] sm:$0xff]  ;;  %v5418_v47 = vld [vmem:[%s7125_s1 + $0x1e0] sm:$0xff] }
 0x13f   :  { %7352 = vst [vmem:[#allocation36_spill] sm:$0xff] %v5389_v58  ;;  %1488 = vmatprep.mubr.f32.mxu1 %v5406_v22  ;;  %v247_v4 = vld [vmem:[%s7124_s0 + $0x730] sm:$0xff]  ;;  %7355 = vst [vmem:[#allocation39_spill] sm:$0xff] %v5418_v47  ;;  %1328 = vmatmul.mubr.f32.gmra.mxu0 %v5418_v47  ;;  %v655_v19 = vpop.f32.mrf.mxu0 }
 0x140   :  { %v5424_v14 = vld [vmem:[%s7125_s1 + $0x1f0] sm:$0xff]  ;;  %v816_v58 = vpop.f32.mrf.mxu1  ;;  %2940 = vmatprep.subr.mxu0 %v135_v24  ;;  %3020 = vmatprep.subr.mxu1 %v359_v40 }
 0x141   :  { %1489 = vmatmul.mubr.f32.gmra.mxu1 %v5424_v14  ;;  %v5427_v22 = vadd.f32 %v816_v58, %v655_v19  ;;  %2941 = vmatpush3.msra.mxu0 %v23_v9  ;;  %v657_v53 = vpop.f32.mrf.mxu0  ;;  %v7378_v19 = vld [vmem:[#allocation32_spill] sm:$0xff] }
 0x142   :  { %3021 = vmatpush3.msra.mxu1 %v247_v4  ;;  %v818_v45 = vpop.f32.mrf.mxu1  ;;  %1559 = vmatprep.mubr.f32.mxu0 %v4798_v55  ;;  %v7377_v4 = vld [vmem:[#allocation31_spill] sm:$0xff] }
 0x143   :  { %7356 = vst [vmem:[#allocation40_spill] sm:$0xff] %v5427_v22  ;;  %1704 = vmatprep.mubr.f32.mxu1 %v4810_v6  ;;  %v5431_v47 = vadd.f32 %v818_v45, %v657_v53  ;;  %1560 = vmatmul.mubr.f32.vlgmr.msra.gmra.mxu0 %v4822_v39 }
 0x144   :  { %1564 = vmatprep.mubr.f32.mxu0 %v4846_v42 }
 0x145   :  { %7357 = vst [vmem:[#allocation41_spill] sm:$0xff] %v5431_v47  ;;  %1705 = vmatmul.mubr.f32.vlgmr.msra.gmra.mxu1 %v4828_v16  ;;  %v661_v40 = vpop.f32.mrf.mxu0 }
 0x146   :  { %1709 = vmatprep.mubr.f32.mxu1 %v4852_v43  ;;  %v822_v58 = vpop.f32.mrf.mxu1 }
 0x147   :  { %v5437_v24 = vadd.f32 %v822_v58, %v661_v40  ;;  %1565 = vmatmul.mubr.f32.gmra.mxu0 %v4864_v60  ;;  %v663_v55 = vpop.f32.mrf.mxu0 }
 0x148   :  { %v824_v6 = vpop.f32.mrf.mxu1  ;;  %1569 = vmatprep.mubr.f32.mxu0 %v4882_v5 }
 0x149   :  { %7358 = vst [vmem:[#allocation42_spill] sm:$0xff] %v5437_v24  ;;  %1710 = vmatmul.mubr.f32.gmra.mxu1 %v4870_v61  ;;  %v5443_v39 = vadd.f32 %v824_v6, %v663_v55  ;;  %v7381_v55 = vld [vmem:[#allocation37_spill] sm:$0xff]  ;;  %v7382_v6 = vld [vmem:[#allocation38_spill] sm:$0xff] }
 0x14a   :  { %1714 = vmatprep.mubr.f32.mxu1 %v4888_v28 }
 0x14b   :  { %7359 = vst [vmem:[#allocation43_spill] sm:$0xff] %v5443_v39  ;;  %1570 = vmatmul.mubr.f32.gmra.mxu0 %v4902_v59  ;;  %v667_v16 = vpop.f32.mrf.mxu0 }
 0x14c   :  { %v828_v42 = vpop.f32.mrf.mxu1  ;;  %1574 = vmatprep.mubr.f32.mxu0 %v4924_v25 }
 0x14d   :  { %1715 = vmatmul.mubr.f32.gmra.mxu1 %v4908_v52  ;;  %v5449_v43 = vadd.f32 %v828_v42, %v667_v16  ;;  %v669_v60 = vpop.f32.mrf.mxu0 }
 0x14e   :  { %1719 = vmatprep.mubr.f32.mxu1 %v4930_v62  ;;  %v830_v61 = vpop.f32.mrf.mxu1 }
 0x14f   :  { %7360 = vst [vmem:[#allocation44_spill] sm:$0xff] %v5449_v43  ;;  %v5451_v45 = vadd.f32 %v830_v61, %v669_v60  ;;  %1575 = vmatmul.mubr.f32.gmra.mxu0 %v4942_v44 }
 0x150   :  { %1579 = vmatprep.mubr.f32.mxu0 %v4966_v63 }
 0x151   :  { %7361 = vst [vmem:[#allocation45_spill] sm:$0xff] %v5451_v45  ;;  %1720 = vmatmul.mubr.f32.gmra.mxu1 %v4948_v56  ;;  %v673_v5 = vpop.f32.mrf.mxu0 }
 0x152   :  { %1724 = vmatprep.mubr.f32.mxu1 %v4972_v30  ;;  %v834_v28 = vpop.f32.mrf.mxu1 }
 0x153   :  { %v5457_v59 = vadd.f32 %v834_v28, %v673_v5  ;;  %1580 = vmatmul.mubr.f32.gmra.mxu0 %v4984_v27  ;;  %v675_v52 = vpop.f32.mrf.mxu0  ;;  %v7384_v5 = vld [vmem:[#allocation39_spill] sm:$0xff] }
 0x154   :  { %v836_v25 = vpop.f32.mrf.mxu1  ;;  %1584 = vmatprep.mubr.f32.mxu0 %v5002_v49 }
 0x155   :  { %7362 = vst [vmem:[#allocation46_spill] sm:$0xff] %v5457_v59  ;;  %1725 = vmatmul.mubr.f32.gmra.mxu1 %v4990_v36  ;;  %v5463_v62 = vadd.f32 %v836_v25, %v675_v52 }
 0x156   :  { %1729 = vmatprep.mubr.f32.mxu1 %v5008_v34 }
 0x157   :  { %7363 = vst [vmem:[#allocation47_spill] sm:$0xff] %v5463_v62  ;;  %1585 = vmatmul.mubr.f32.gmra.mxu0 %v5022_v2  ;;  %v679_v44 = vpop.f32.mrf.mxu0 }
 0x158   :  { %v840_v56 = vpop.f32.mrf.mxu1  ;;  %1589 = vmatprep.mubr.f32.mxu0 %v5044_v32 }
 0x159   :  { %1730 = vmatmul.mubr.f32.gmra.mxu1 %v5028_v3  ;;  %v5469_v63 = vadd.f32 %v840_v56, %v679_v44  ;;  %v681_v30 = vpop.f32.mrf.mxu0 }
 0x15a   :  { %1734 = vmatprep.mubr.f32.mxu1 %v5050_v33  ;;  %v842_v27 = vpop.f32.mrf.mxu1 }
 0x15b   :  { %7364 = vst [vmem:[#allocation48_spill] sm:$0xff] %v5469_v63  ;;  %v5471_v36 = vadd.f32 %v842_v27, %v681_v30  ;;  %1590 = vmatmul.mubr.f32.gmra.mxu0 %v5062_v50 }
 0x15c   :  { %1594 = vmatprep.mubr.f32.mxu0 %v5086_v29 }
 0x15d   :  { %7365 = vst [vmem:[#allocation49_spill] sm:$0xff] %v5471_v36  ;;  %1735 = vmatmul.mubr.f32.gmra.mxu1 %v5068_v51  ;;  %v685_v49 = vpop.f32.mrf.mxu0 }
 0x15e   :  { %1739 = vmatprep.mubr.f32.mxu1 %v5092_v12  ;;  %v846_v34 = vpop.f32.mrf.mxu1 }
 0x15f   :  { %v5477_v2 = vadd.f32 %v846_v34, %v685_v49  ;;  %1595 = vmatmul.mubr.f32.gmra.mxu0 %v5104_v18  ;;  %v687_v3 = vpop.f32.mrf.mxu0 }
 0x160   :  { %v848_v32 = vpop.f32.mrf.mxu1  ;;  %1599 = vmatprep.mubr.f32.mxu0 %v5122_v48 }
 0x161   :  { %7366 = vst [vmem:[#allocation50_spill] sm:$0xff] %v5477_v2  ;;  %1740 = vmatmul.mubr.f32.gmra.mxu1 %v5110_v31  ;;  %v5483_v33 = vadd.f32 %v848_v32, %v687_v3 }
 0x162   :  { %1744 = vmatprep.mubr.f32.mxu1 %v5128_v35 }
 0x163   :  { %7367 = vst [vmem:[#allocation51_spill] sm:$0xff] %v5483_v33  ;;  %1600 = vmatmul.mubr.f32.gmra.mxu0 %v5142_v10  ;;  %v917_v50 = vpop.f32.mrf.mxu0 }
 0x164   :  { %v1078_v51 = vpop.f32.mrf.mxu1  ;;  %1604 = vmatprep.mubr.f32.mxu0 %v5164_v13 }
 0x165   :  { %1745 = vmatmul.mubr.f32.gmra.mxu1 %v5148_v11  ;;  %v5489_v29 = vadd.f32 %v1078_v51, %v917_v50  ;;  %v919_v12 = vpop.f32.mrf.mxu0 }
 0x166   :  { %1749 = vmatprep.mubr.f32.mxu1 %v5170_v23  ;;  %v1080_v18 = vpop.f32.mrf.mxu1 }
 0x167   :  { %7368 = vst [vmem:[#allocation52_spill] sm:$0xff] %v5489_v29  ;;  %v5491_v31 = vadd.f32 %v1080_v18, %v919_v12  ;;  %1605 = vmatmul.mubr.f32.gmra.mxu0 %v5182_v1 }
 0x168   :  { %1609 = vmatprep.mubr.f32.mxu0 %v5206_v41 }
 0x169   :  { %7369 = vst [vmem:[#allocation53_spill] sm:$0xff] %v5491_v31  ;;  %1750 = vmatmul.mubr.f32.gmra.mxu1 %v5188_v21  ;;  %v923_v48 = vpop.f32.mrf.mxu0 }
 0x16a   :  { %1754 = vmatprep.mubr.f32.mxu1 %v5212_v15  ;;  %v1084_v35 = vpop.f32.mrf.mxu1 }
 0x16b   :  { %v5497_v10 = vadd.f32 %v1084_v35, %v923_v48  ;;  %1610 = vmatmul.mubr.f32.gmra.mxu0 %v5224_v54  ;;  %v925_v11 = vpop.f32.mrf.mxu0 }
 0x16c   :  { %v1086_v13 = vpop.f32.mrf.mxu1  ;;  %1614 = vmatprep.mubr.f32.mxu0 %v5242_v20  ;;  %v7373_v20 = vld [vmem:[#allocation27_spill] sm:$0xff] }
 0x16d   :  { %7370 = vst [vmem:[#allocation54_spill] sm:$0xff] %v5497_v10  ;;  %1755 = vmatmul.mubr.f32.gmra.mxu1 %v5230_v17  ;;  %v5503_v23 = vadd.f32 %v1086_v13, %v925_v11 }
 0x16e   :  { %1759 = vmatprep.mubr.f32.mxu1 %v5248_v8 }
 0x16f   :  { %7371 = vst [vmem:[#allocation55_spill] sm:$0xff] %v5503_v23  ;;  %1615 = vmatmul.mubr.f32.gmra.mxu0 %v5262_v38  ;;  %v929_v1 = vpop.f32.mrf.mxu0 }
 0x170   :  { %v1090_v21 = vpop.f32.mrf.mxu1  ;;  %1619 = vmatprep.mubr.f32.mxu0 %v5284_v37  ;;  %v7375_v37 = vld [vmem:[#allocation29_spill] sm:$0xff] }
 0x171   :  { %1760 = vmatmul.mubr.f32.gmra.mxu1 %v5268_v7  ;;  %v5509_v41 = vadd.f32 %v1090_v21, %v929_v1  ;;  %v931_v15 = vpop.f32.mrf.mxu0 }
 0x172   :  { %1764 = vmatprep.mubr.f32.mxu1 %v5290_v0  ;;  %v1092_v54 = vpop.f32.mrf.mxu1  ;;  %v7376_v0 = vld [vmem:[#allocation30_spill] sm:$0xff] }
 0x173   :  { %7372 = vst [vmem:[#allocation56_spill] sm:$0xff] %v5509_v41  ;;  %v5511_v17 = vadd.f32 %v1092_v54, %v931_v15  ;;  %1620 = vmatmul.mubr.f32.gmra.mxu0 %v5302_v26 }
 0x174   :  { %1624 = vmatprep.mubr.f32.mxu0 %v5322_v46  ;;  %v7380_v46 = vld [vmem:[#allocation35_spill] sm:$0xff] }
 0x175   :  { %1765 = vmatmul.mubr.f32.gmra.mxu1 %v5308_v57  ;;  %v935_v7 = vpop.f32.mrf.mxu0  ;;  %v7379_v57 = vld [vmem:[#allocation34_spill] sm:$0xff] }
 0x176   :  { %1769 = vmatprep.mubr.f32.mxu1 %v7373_v20  ;;  %v1096_v38 = vpop.f32.mrf.mxu1 }
 0x177   :  { %v5517_v8 = vadd.f32 %v1096_v38, %v935_v7  ;;  %1625 = vmatmul.mubr.f32.gmra.mxu0 %v7375_v37  ;;  %v937_v53 = vpop.f32.mrf.mxu0 }
 0x178   :  { %v1098_v9 = vpop.f32.mrf.mxu1  ;;  %1629 = vmatprep.mubr.f32.mxu0 %v7377_v4 }
 0x179   :  { %7374 = vst [vmem:[#allocation27_spill] sm:$0xff] %v5517_v8  ;;  %1770 = vmatmul.mubr.f32.gmra.mxu1 %v7376_v0  ;;  %v5523_v26 = vadd.f32 %v1098_v9, %v937_v53 }
 0x17a   :  { %1774 = vmatprep.mubr.f32.mxu1 %v7378_v19 }
 0x17b   :  { %1630 = vmatmul.mubr.f32.gmra.mxu0 %v7379_v57  ;;  %v941_v40 = vpop.f32.mrf.mxu0 }
 0x17c   :  { %v1102_v58 = vpop.f32.mrf.mxu1  ;;  %1634 = vmatprep.mubr.f32.mxu0 %v7381_v55 }
 0x17d   :  { %1775 = vmatmul.mubr.f32.gmra.mxu1 %v7380_v46  ;;  %v5529_v16 = vadd.f32 %v1102_v58, %v941_v40  ;;  %v943_v42 = vpop.f32.mrf.mxu0 }
 0x17e   :  { %1779 = vmatprep.mubr.f32.mxu1 %v7382_v6  ;;  %v1104_v60 = vpop.f32.mrf.mxu1 }
 0x17f   :  { %7383 = vst [vmem:[#allocation29_spill] sm:$0xff] %v5529_v16  ;;  %v5531_v61 = vadd.f32 %v1104_v60, %v943_v42  ;;  %1635 = vmatmul.mubr.f32.gmra.mxu0 %v7384_v5 }
 0x181   :  { %1780 = vmatmul.mubr.f32.gmra.mxu1 %v5424_v14  ;;  %v947_v28 = vpop.f32.mrf.mxu0 }
 0x182   :  { %v1108_v52 = vpop.f32.mrf.mxu1 }
 0x183   :  { %v5535_v25 = vadd.f32 %v1108_v52, %v947_v28  ;;  %v949_v44 = vpop.f32.mrf.mxu0 }
 0x184   :  { %v1110_v56 = vpop.f32.mrf.mxu1 }
 0x185   :  { %v5537_v30 = vadd.f32 %v1110_v56, %v949_v44 }
 0x187   :  { %v953_v27 = vpop.f32.mrf.mxu0 }
 0x188   :  { %v1114_v49 = vpop.f32.mrf.mxu1 }
 0x189   :  { %v5539_v34 = vadd.f32 %v1114_v49, %v953_v27  ;;  %v955_v3 = vpop.f32.mrf.mxu0 }
 0x18a   :  { %v1116_v32 = vpop.f32.mrf.mxu1 }
 0x18b   :  { %7385 = vst [vmem:[#allocation30_spill] sm:$0xff] %v5539_v34  ;;  %v5541_v50 = vadd.f32 %v1116_v32, %v955_v3 }
 0x18d   :  { %v959_v51 = vpop.f32.mrf.mxu0 }
 0x18e   :  { %v1120_v12 = vpop.f32.mrf.mxu1 }
 0x18f   :  { %v5543_v18 = vadd.f32 %v1120_v12, %v959_v51  ;;  %v961_v14 = vpop.f32.mrf.mxu0 }
 0x190   :  { %v1122_v48 = vpop.f32.mrf.mxu1 }
 0x191   :  { %7386 = vst [vmem:[#allocation31_spill] sm:$0xff] %v5543_v18  ;;  %v5545_v35 = vadd.f32 %v1122_v48, %v961_v14 }
 0x193   :  { %v965_v11 = vpop.f32.mrf.mxu0 }
 0x194   :  { %v1126_v13 = vpop.f32.mrf.mxu1 }
 0x195   :  { %v5547_v1 = vadd.f32 %v1126_v13, %v965_v11  ;;  %v967_v21 = vpop.f32.mrf.mxu0 }
 0x196   :  { %v1128_v15 = vpop.f32.mrf.mxu1 }
 0x197   :  { %v5549_v54 = vadd.f32 %v1128_v15, %v967_v21 }
 0x199   :  { %v971_v20 = vpop.f32.mrf.mxu0 }
 0x19a   :  { %v1132_v7 = vpop.f32.mrf.mxu1 }
 0x19b   :  { %v5551_v38 = vadd.f32 %v1132_v7, %v971_v20  ;;  %v973_v37 = vpop.f32.mrf.mxu0 }
 0x19c   :  { %v1134_v0 = vpop.f32.mrf.mxu1 }
 0x19d   :  { %v5553_v53 = vadd.f32 %v1134_v0, %v973_v37 }
 0x19f   :  { %v977_v9 = vpop.f32.mrf.mxu0 }
 0x1a0   :  { %v1138_v4 = vpop.f32.mrf.mxu1 }
 0x1a1   :  { %v5555_v19 = vadd.f32 %v1138_v4, %v977_v9  ;;  %v979_v57 = vpop.f32.mrf.mxu0 }
 0x1a2   :  { %v1140_v46 = vpop.f32.mrf.mxu1 }
 0x1a3   :  { %7387 = vst [vmem:[#allocation32_spill] sm:$0xff] %v5555_v19  ;;  %v5557_v40 = vadd.f32 %v1140_v46, %v979_v57 }
 0x1a5   :  { %7388 = vst [vmem:[#allocation34_spill] sm:$0xff] %v5557_v40  ;;  %v983_v58 = vpop.f32.mrf.mxu0 }
 0x1a6   :  { %v1144_v55 = vpop.f32.mrf.mxu1 }
 0x1a7   :  { %v5559_v6 = vadd.f32 %v1144_v55, %v983_v58  ;;  %v985_v42 = vpop.f32.mrf.mxu0 }
 0x1a8   :  { %v1146_v60 = vpop.f32.mrf.mxu1 }
 0x1a9   :  { %7389 = vst [vmem:[#allocation35_spill] sm:$0xff] %v5559_v6  ;;  %v5561_v5 = vadd.f32 %v1146_v60, %v985_v42 }
 0x1ab   :  { %7390 = vst [vmem:[#allocation37_spill] sm:$0xff] %v5561_v5  ;;  %v989_v28 = vpop.f32.mrf.mxu0 }
 0x1ac   :  { %v1150_v52 = vpop.f32.mrf.mxu1 }
 0x1ad   :  { %v5563_v44 = vadd.f32 %v1150_v52, %v989_v28  ;;  %v991_v56 = vpop.f32.mrf.mxu0 }
 0x1ae   :  { %v1152_v27 = vpop.f32.mrf.mxu1 }
 0x1af   :  { %7391 = vst [vmem:[#allocation38_spill] sm:$0xff] %v5563_v44  ;;  %v5565_v49 = vadd.f32 %v1152_v27, %v991_v56 }
 0x1b1   :  { %7392 = vst [vmem:[#allocation39_spill] sm:$0xff] %v5565_v49  ;;  %v995_v3 = vpop.f32.mrf.mxu0 }
 0x1b2   :  { %v1156_v32 = vpop.f32.mrf.mxu1 }
 0x1b3   :  { %v5567_v51 = vadd.f32 %v1156_v32, %v995_v3  ;;  %v997_v12 = vpop.f32.mrf.mxu0 }
 0x1b4   :  { %v1158_v14 = vpop.f32.mrf.mxu1 }
 0x1b5   :  { %7393 = vst [vmem:[#allocation57_spill] sm:$0xff] %v5567_v51  ;;  %v5569_v48 = vadd.f32 %v1158_v14, %v997_v12 }
 0x1b7   :  { %7394 = vst [vmem:[#allocation58_spill] sm:$0xff] %v5569_v48  ;;  %v1001_v11 = vpop.f32.mrf.mxu0 }
 0x1b8   :  { %v1162_v13 = vpop.f32.mrf.mxu1 }
 0x1b9   :  { %v5571_v21 = vadd.f32 %v1162_v13, %v1001_v11  ;;  %v1003_v15 = vpop.f32.mrf.mxu0 }
 0x1ba   :  { %v1164_v20 = vpop.f32.mrf.mxu1 }
 0x1bb   :  { %7395 = vst [vmem:[#allocation59_spill] sm:$0xff] %v5571_v21  ;;  %v5573_v7 = vadd.f32 %v1164_v20, %v1003_v15 }
 0x1bd   :  { %7396 = vst [vmem:[#allocation60_spill] sm:$0xff] %v5573_v7  ;;  %v1007_v37 = vpop.f32.mrf.mxu0 }
 0x1be   :  { %v1168_v0 = vpop.f32.mrf.mxu1 }
 0x1bf   :  { %v5575_v9 = vadd.f32 %v1168_v0, %v1007_v37  ;;  %v1009_v4 = vpop.f32.mrf.mxu0 }
 0x1c0   :  { %v1170_v57 = vpop.f32.mrf.mxu1 }
 0x1c1   :  { %7397 = vst [vmem:[#allocation61_spill] sm:$0xff] %v5575_v9  ;;  %v5577_v46 = vadd.f32 %v1170_v57, %v1009_v4 }
 0x1c3   :  { %7398 = vst [vmem:[#allocation62_spill] sm:$0xff] %v5577_v46  ;;  %v1239_v58 = vpop.f32.mrf.mxu0 }
 0x1c4   :  { %v1400_v55 = vpop.f32.mrf.mxu1 }
 0x1c5   :  { %v5579_v42 = vadd.f32 %v1400_v55, %v1239_v58  ;;  %v1241_v60 = vpop.f32.mrf.mxu0 }
 0x1c6   :  { %v1402_v28 = vpop.f32.mrf.mxu1 }
 0x1c7   :  { %v5581_v52 = vadd.f32 %v1402_v28, %v1241_v60  ;;  %v1245_v56 = vpop.f32.mrf.mxu0 }
 0x1c8   :  { %v1406_v27 = vpop.f32.mrf.mxu1 }
 0x1c9   :  { %v5583_v3 = vadd.f32 %v1406_v27, %v1245_v56  ;;  %v1247_v32 = vpop.f32.mrf.mxu0 }
 0x1ca   :  { %v1408_v12 = vpop.f32.mrf.mxu1 }
 0x1cb   :  { %7399 = vst [vmem:[#allocation63_spill] sm:$0xff] %v5583_v3  ;;  %v5585_v14 = vadd.f32 %v1408_v12, %v1247_v32  ;;  %v1251_v11 = vpop.f32.mrf.mxu0 }
 0x1cc   :  { %v1412_v13 = vpop.f32.mrf.mxu1 }
 0x1cd   :  { %v5587_v15 = vadd.f32 %v1412_v13, %v1251_v11  ;;  %v1253_v20 = vpop.f32.mrf.mxu0 }
 0x1ce   :  { %v1414_v37 = vpop.f32.mrf.mxu1 }
 0x1cf   :  { %v5589_v0 = vadd.f32 %v1414_v37, %v1253_v20  ;;  %v1257_v4 = vpop.f32.mrf.mxu0 }
 0x1d0   :  { %v1418_v57 = vpop.f32.mrf.mxu1 }
 0x1d1   :  { %v5591_v58 = vadd.f32 %v1418_v57, %v1257_v4  ;;  %v1259_v55 = vpop.f32.mrf.mxu0 }
 0x1d2   :  { %v1420_v60 = vpop.f32.mrf.mxu1 }
 0x1d3   :  { %v5593_v28 = vadd.f32 %v1420_v60, %v1259_v55  ;;  %v1263_v56 = vpop.f32.mrf.mxu0 }
 0x1d4   :  { %v1424_v27 = vpop.f32.mrf.mxu1 }
 0x1d5   :  { %v5595_v32 = vadd.f32 %v1424_v27, %v1263_v56  ;;  %v1265_v12 = vpop.f32.mrf.mxu0 }
 0x1d6   :  { %v1426_v46 = vpop.f32.mrf.mxu1 }
 0x1d7   :  { %v5597_v11 = vadd.f32 %v1426_v46, %v1265_v12  ;;  %v1269_v13 = vpop.f32.mrf.mxu0 }
 0x1d8   :  { %v1430_v9 = vpop.f32.mrf.mxu1 }
 0x1d9   :  { %v5599_v20 = vadd.f32 %v1430_v9, %v1269_v13  ;;  %v1271_v37 = vpop.f32.mrf.mxu0 }
 0x1da   :  { %v1432_v7 = vpop.f32.mrf.mxu1 }
 0x1db   :  { %v5601_v4 = vadd.f32 %v1432_v7, %v1271_v37  ;;  %v1275_v57 = vpop.f32.mrf.mxu0 }
 0x1dc   :  { %v1436_v33 = vpop.f32.mrf.mxu1 }
 0x1dd   :  { %v5603_v55 = vadd.f32 %v1436_v33, %v1275_v57  ;;  %v1277_v60 = vpop.f32.mrf.mxu0 }
 0x1de   :  { %v1438_v2 = vpop.f32.mrf.mxu1 }
 0x1df   :  { %v5605_v56 = vadd.f32 %v1438_v2, %v1277_v60  ;;  %v1281_v27 = vpop.f32.mrf.mxu0 }
 0x1e0   :  { %v1442_v21 = vpop.f32.mrf.mxu1 }
 0x1e1   :  { %v5607_v46 = vadd.f32 %v1442_v21, %v1281_v27  ;;  %v1283_v12 = vpop.f32.mrf.mxu0 }
 0x1e2   :  { %v1444_v48 = vpop.f32.mrf.mxu1 }
 0x1e3   :  { %v5609_v9 = vadd.f32 %v1444_v48, %v1283_v12  ;;  %v1287_v13 = vpop.f32.mrf.mxu0 }
 0x1e4   :  { %v1448_v36 = vpop.f32.mrf.mxu1 }
 0x1e5   :  { %v5611_v7 = vadd.f32 %v1448_v36, %v1287_v13  ;;  %v1289_v37 = vpop.f32.mrf.mxu0 }
 0x1e6   :  { %v1450_v63 = vpop.f32.mrf.mxu1 }
 0x1e7   :  { %v5613_v33 = vadd.f32 %v1450_v63, %v1289_v37  ;;  %v1293_v57 = vpop.f32.mrf.mxu0 }
 0x1e8   :  { %v1454_v51 = vpop.f32.mrf.mxu1 }
 0x1e9   :  { %v5615_v2 = vadd.f32 %v1454_v51, %v1293_v57  ;;  %v1295_v60 = vpop.f32.mrf.mxu0 }
 0x1ea   :  { %v1456_v49 = vpop.f32.mrf.mxu1 }
 0x1eb   :  { %7400 = vst [vmem:[#allocation64_spill] sm:$0xff] %v5615_v2  ;;  %v5617_v21 = vadd.f32 %v1456_v49, %v1295_v60  ;;  %v1299_v27 = vpop.f32.mrf.mxu0 }
 0x1ec   :  { %v1460_v62 = vpop.f32.mrf.mxu1 }
 0x1ed   :  { %7401 = vst [vmem:[#allocation65_spill] sm:$0xff] %v5617_v21  ;;  %v5619_v48 = vadd.f32 %v1460_v62, %v1299_v27  ;;  %v1301_v12 = vpop.f32.mrf.mxu0 }
 0x1ee   :  { %v1462_v59 = vpop.f32.mrf.mxu1 }
 0x1ef   :  { %7402 = vst [vmem:[#allocation66_spill] sm:$0xff] %v5619_v48  ;;  %v5621_v36 = vadd.f32 %v1462_v59, %v1301_v12  ;;  %v1305_v13 = vpop.f32.mrf.mxu0  ;;  %v7409_v12 = vld [vmem:[#allocation3_spill] sm:$0xff] }
 0x1f0   :  { %v1466_v44 = vpop.f32.mrf.mxu1 }
 0x1f1   :  { %7403 = vst [vmem:[#allocation67_spill] sm:$0xff] %v5621_v36  ;;  %v5623_v63 = vadd.f32 %v1466_v44, %v1305_v13  ;;  %v1307_v37 = vpop.f32.mrf.mxu0  ;;  %v7410_v36 = vld [vmem:[#allocation4_spill] sm:$0xff] }
 0x1f2   :  { %v1468_v5 = vpop.f32.mrf.mxu1  ;;  %v5635_v44 = vadd.f32 %v7410_v36, %v7409_v12 }
 0x1f3   :  { %7404 = vst [vmem:[#allocation68_spill] sm:$0xff] %v5623_v63  ;;  %v5625_v51 = vadd.f32 %v1468_v5, %v1307_v37  ;;  %v1311_v57 = vpop.f32.mrf.mxu0 }
 0x1f4   :  { %v1472_v45 = vpop.f32.mrf.mxu1  ;;  %7411 = vst [vmem:[#allocation3_spill] sm:$0xff] %v5635_v44 }
 0x1f5   :  { %7405 = vst [vmem:[#allocation69_spill] sm:$0xff] %v5625_v51  ;;  %v5627_v49 = vadd.f32 %v1472_v45, %v1311_v57  ;;  %v1313_v60 = vpop.f32.mrf.mxu0  ;;  %v7414_v57 = vld [vmem:[#allocation2_spill] sm:$0xff] }
 0x1f6   :  { %v1474_v21 = vpop.f32.mrf.mxu1 }
 0x1f7   :  { %7406 = vst [vmem:[#allocation70_spill] sm:$0xff] %v5627_v49  ;;  %v5629_v62 = vadd.f32 %v1474_v21, %v1313_v60  ;;  %v1317_v27 = vpop.f32.mrf.mxu0  ;;  %v1785_v21 = vadd.f32 %v5635_v44, %v7414_v57  ;;  %v7415_v60 = vld [vmem:[#allocation6_spill] sm:$0xff] }
 0x1f8   :  { %v1478_v48 = vpop.f32.mrf.mxu1 }
 0x1f9   :  { %7407 = vst [vmem:[#allocation71_spill] sm:$0xff] %v5629_v62  ;;  %v5631_v59 = vadd.f32 %v1478_v48, %v1317_v27  ;;  %v1319_v13 = vpop.f32.mrf.mxu0  ;;  %v7416_v62 = vld [vmem:[#allocation7_spill] sm:$0xff]  ;;  %v1786_v36 = vadd.f32 %v1785_v21, %v5489_v29 }
 0x1fa   :  { %v1480_v63 = vpop.f32.mrf.mxu1  ;;  %v5645_v49 = vadd.f32 %v7416_v62, %v7415_v60 }
 0x1fb   :  { %7408 = vst [vmem:[#allocation72_spill] sm:$0xff] %v5631_v59  ;;  %v5637_v5 = vadd.f32 %v1480_v63, %v1319_v13  ;;  %v1323_v37 = vpop.f32.mrf.mxu0 }
 0x1fc   :  { %v1484_v51 = vpop.f32.mrf.mxu1  ;;  %7417 = vst [vmem:[#allocation6_spill] sm:$0xff] %v5645_v49 }
 0x1fd   :  { %7412 = vst [vmem:[#allocation4_spill] sm:$0xff] %v5637_v5  ;;  %v5639_v45 = vadd.f32 %v1484_v51, %v1323_v37  ;;  %v1325_v48 = vpop.f32.mrf.mxu0  ;;  %v7420_v5 = vld [vmem:[#allocation5_spill] sm:$0xff] }
 0x1fe   :  { %v1486_v27 = vpop.f32.mrf.mxu1  ;;  %v1795_v51 = vadd.f32 %v5645_v49, %v7420_v5  ;;  %v7421_v37 = vld [vmem:[#allocation9_spill] sm:$0xff] }
 0x1ff   :  { %7413 = vst [vmem:[#allocation73_spill] sm:$0xff] %v5639_v45  ;;  %v5647_v59 = vadd.f32 %v1486_v27, %v1325_v48  ;;  %v1329_v12 = vpop.f32.mrf.mxu0  ;;  %v7422_v45 = vld [vmem:[#allocation10_spill] sm:$0xff]  ;;  %v1787_v48 = vadd.f32 %v1786_v36, %v5491_v31 }
 0x200   :  { %v5656_v44 = vadd.f32 %v7422_v45, %v7421_v37  ;;  %v1796_v27 = vadd.f32 %v1795_v51, %v5497_v10 }
 0x201   :  { %7418 = vst [vmem:[#allocation7_spill] sm:$0xff] %v5647_v59  ;;  %v1490_v63 = vpop.f32.mrf.mxu1  ;;  %v1331_v57 = vpop.f32.mrf.mxu0  ;;  %v7425_v59 = vld [vmem:[#allocation8_spill] sm:$0xff]  ;;  %v1788_v45 = vadd.f32 %v1787_v48, %v5579_v42 }
 0x202   :  { %v5650_v13 = vadd.f32 %v1490_v63, %v1329_v12  ;;  %7423 = vst [vmem:[#allocation9_spill] sm:$0xff] %v5656_v44  ;;  %v1804_v12 = vadd.f32 %v5656_v44, %v7425_v59  ;;  %v7426_v63 = vld [vmem:[#allocation12_spill] sm:$0xff]  ;;  %v7429_v44 = vld [vmem:[#allocation11_spill] sm:$0xff] }
 0x203   :  { %v1492_v62 = vpop.f32.mrf.mxu1  ;;  %v2942_v21 = vpop.f32.mrf.mxu0 }
 0x204   :  { %7419 = vst [vmem:[#allocation74_spill] sm:$0xff] %v5650_v13  ;;  %v5658_v60 = vadd.f32 %v1492_v62, %v1331_v57  ;;  %v7427_v13 = vld [vmem:[#allocation13_spill] sm:$0xff]  ;;  %v1797_v62 = vadd.f32 %v1796_v27, %v5503_v23  ;;  %v1805_v36 = vadd.f32 %v1804_v12, %v5509_v41  ;;  %v7435_v23 = vld [vmem:[#allocation19_spill] sm:$0xff] }
 0x205   :  { %v3022_v29 = vpop.f32.mrf.mxu1  ;;  %v5666_v49 = vadd.f32 %v7427_v13, %v7426_v63  ;;  %v2943_v37 = vpop.f32.mrf.mxu0  ;;  %v7430_v13 = vld [vmem:[#allocation15_spill] sm:$0xff]  ;;  %v7431_v63 = vld [vmem:[#allocation16_spill] sm:$0xff] }
 0x206   :  { %7424 = vst [vmem:[#allocation10_spill] sm:$0xff] %v5658_v60  ;;  %v2944_v43 = vadd.f32 %v2943_v37, %v2942_v21  ;;  %v5677_v60 = vadd.f32 %v7431_v63, %v7430_v13  ;;  %v1798_v48 = vadd.f32 %v1797_v62, %v5583_v3  ;;  %v7433_v63 = vld [vmem:[#allocation14_spill] sm:$0xff] }
 0x207   :  { %7428 = vst [vmem:[#allocation12_spill] sm:$0xff] %v5666_v49  ;;  %v3023_v5 = vpop.f32.mrf.mxu1  ;;  %v2945_v51 = vpop.f32.mrf.mxu0  ;;  %v1813_v59 = vadd.f32 %v5666_v49, %v7429_v44  ;;  %v7434_v3 = vld [vmem:[#allocation18_spill] sm:$0xff] }
 0x208   :  { %v3024_v57 = vadd.f32 %v3023_v5, %v3022_v29  ;;  %7432 = vst [vmem:[#allocation13_spill] sm:$0xff] %v5677_v60  ;;  %v1789_v5 = vadd.f32 %v1788_v45, %v5581_v52  ;;  %v1822_v62 = vadd.f32 %v5677_v60, %v7433_v63  ;;  %v5691_v45 = vadd.f32 %v7435_v23, %v7434_v3  ;;  %v7438_v63 = vld [vmem:[#allocation21_spill] sm:$0xff] }
 0x209   :  { %v3025_v10 = vpop.f32.mrf.mxu1  ;;  %v2946_v21 = vpop.f32.mrf.mxu0 }
 0x20a   :  { %v5671_v31 = vadd.f32 %v3024_v57, %v2944_v43  ;;  %v2947_v27 = vadd.f32 %v2946_v21, %v2945_v51  ;;  %v1806_v43 = vadd.f32 %v1805_v36, %v5511_v17  ;;  %v1814_v57 = vadd.f32 %v1813_v59, %v5517_v8  ;;  %7436 = vst [vmem:[#allocation15_spill] sm:$0xff] %v5691_v45  ;;  %v7439_v8 = vld [vmem:[#allocation22_spill] sm:$0xff] }
 0x20b   :  { %v3026_v29 = vpop.f32.mrf.mxu1  ;;  %v2948_v49 = vpop.f32.mrf.mxu0 }
 0x20c   :  { %v3027_v12 = vadd.f32 %v3026_v29, %v3025_v10  ;;  %v1791_v37 = vsel %vm1790_vm0, %v5671_v31, 0.0  ;;  %v1799_v10 = vadd.f32 %v1798_v48, %v5585_v14  ;;  %v1807_v51 = vadd.f32 %v1806_v43, %v5587_v15  ;;  %v7437_v48 = vld [vmem:[#allocation17_spill] sm:$0xff] }
 0x20d   :  { %v3028_v44 = vpop.f32.mrf.mxu1  ;;  %v1792_v41 = vadd.f32 %v1791_v37, %v1789_v5  ;;  %v2949_v21 = vpop.f32.mrf.mxu0  ;;  %v1831_v43 = vadd.f32 %v5691_v45, %v7437_v48 }
 0x20e   :  { %v5685_v13 = vadd.f32 %v3027_v12, %v2947_v27  ;;  %v2950_v59 = vadd.f32 %v2949_v21, %v2948_v49  ;;  %v1815_v27 = vadd.f32 %v1814_v57, %v5523_v26  ;;  %v1823_v12 = vadd.f32 %v1822_v62, %v5529_v16  ;;  %v7443_v16 = vld [vmem:[#allocation25_spill] sm:$0xff] }
 0x20f   :  { %v3029_v36 = vpop.f32.mrf.mxu1  ;;  %1793 = vadd.xlane.f32.xlu0 %v1792_v41  ;;  %v2951_v37 = vpop.f32.mrf.mxu0  ;;  %v5705_v41 = vadd.f32 %v7439_v8, %v7438_v63  ;;  %v1808_v57 = vadd.f32 %v1807_v51, %v5589_v0 }
 0x210   :  { %v3030_v29 = vadd.f32 %v3029_v36, %v3028_v44  ;;  %v1800_v5 = vsel %vm1790_vm0, %v5685_v13, 0.0  ;;  %v1816_v49 = vadd.f32 %v1815_v27, %v5591_v58  ;;  %v7441_v27 = vld [vmem:[#allocation20_spill] sm:$0xff] }
 0x211   :  { %v3031_v60 = vpop.f32.mrf.mxu1  ;;  %v1801_v23 = vadd.f32 %v1800_v5, %v1799_v10  ;;  %7440 = vst [vmem:[#allocation16_spill] sm:$0xff] %v5705_v41  ;;  %v2952_v44 = vpop.f32.mrf.mxu0  ;;  %v1840_v48 = vadd.f32 %v5705_v41, %v7441_v27 }
 0x212   :  { %v5699_v3 = vadd.f32 %v3030_v29, %v2950_v59  ;;  %v2953_v62 = vadd.f32 %v2952_v44, %v2951_v37  ;;  %v1824_v59 = vadd.f32 %v1823_v12, %v5531_v61  ;;  %v1832_v29 = vadd.f32 %v1831_v43, %v5535_v25 }
 0x213   :  { %v3032_v21 = vpop.f32.mrf.mxu1  ;;  %1802 = vadd.xlane.f32.xlu0 %v1801_v23  ;;  %v2954_v5 = vpop.f32.mrf.mxu0  ;;  %v7442_v23 = vld [vmem:[#allocation24_spill] sm:$0xff] }
 0x214   :  { %v3033_v36 = vadd.f32 %v3032_v21, %v3031_v60  ;;  %v1809_v10 = vsel %vm1790_vm0, %v5699_v3, 0.0  ;;  %v5719_v51 = vadd.f32 %v7443_v16, %v7442_v23  ;;  %v1817_v60 = vadd.f32 %v1816_v49, %v5593_v28  ;;  %v7445_v49 = vld [vmem:[#allocation23_spill] sm:$0xff] }
 0x215   :  { %v3034_v45 = vpop.f32.mrf.mxu1  ;;  %v1810_v8 = vadd.f32 %v1809_v10, %v1808_v57  ;;  %v1825_v37 = vadd.f32 %v1824_v59, %v5595_v32  ;;  %v2955_v44 = vpop.f32.mrf.mxu0 }
 0x216   :  { %v5713_v63 = vadd.f32 %v3033_v36, %v2953_v62  ;;  %7444 = vst [vmem:[#allocation18_spill] sm:$0xff] %v5719_v51  ;;  %v2956_v43 = vadd.f32 %v2955_v44, %v2954_v5  ;;  %v1833_v62 = vadd.f32 %v1832_v29, %v5537_v30  ;;  %v1841_v36 = vadd.f32 %v1840_v48, %v5539_v34 }
 0x217   :  { %v3035_v12 = vpop.f32.mrf.mxu1  ;;  %1811 = vadd.xlane.f32.xlu1 %v1810_v8  ;;  %v2957_v10 = vpop.f32.mrf.mxu0  ;;  %v1849_v59 = vadd.f32 %v5719_v51, %v7445_v49  ;;  %v1826_v27 = vadd.f32 %v1825_v37, %v5597_v11  ;;  %v7446_v37 = vld [vmem:[#allocation26_spill] sm:$0xff]  ;;  %v7447_v49 = vld [vmem:[#allocation28_spill] sm:$0xff] }
 0x218   :  { %v3036_v21 = vadd.f32 %v3035_v12, %v3034_v45  ;;  %v1818_v57 = vsel %vm1790_vm0, %v5713_v63, 0.0  ;;  %v1834_v5 = vadd.f32 %v1833_v62, %v5599_v20  ;;  %v1842_v29 = vadd.f32 %v1841_v36, %v5541_v50 }
 0x219   :  { %v3037_v41 = vpop.f32.mrf.mxu1  ;;  %v1819_v16 = vadd.f32 %v1818_v57, %v1817_v60  ;;  %v2958_v45 = vpop.f32.mrf.mxu0  ;;  %v1850_v60 = vadd.f32 %v1849_v59, %v5543_v18  ;;  %v1858_v62 = vadd.f32 %v7447_v49, %v7446_v37  ;;  %v7449_v37 = vld [vmem:[#allocation36_spill] sm:$0xff] }
 0x21a   :  { %v5727_v23 = vadd.f32 %v3036_v21, %v2956_v43  ;;  %v2959_v44 = vadd.f32 %v2958_v45, %v2957_v10  ;;  %v1835_v34 = vadd.f32 %v1834_v5, %v5601_v4  ;;  %v1843_v10 = vadd.f32 %v1842_v29, %v5603_v55  ;;  %v7448_v5 = vld [vmem:[#allocation33_spill] sm:$0xff] }
 0x21b   :  { %v3038_v8 = vpop.f32.mrf.mxu1  ;;  %1820 = vadd.xlane.f32.xlu1 %v1819_v16  ;;  %v2960_v43 = vpop.f32.mrf.mxu0  ;;  %v1851_v59 = vadd.f32 %v1850_v60, %v5545_v35  ;;  %v1867_v29 = vadd.f32 %v7449_v37, %v7448_v5 }
 0x21c   :  { %v3039_v12 = vadd.f32 %v3038_v8, %v3037_v41  ;;  %v1827_v48 = vsel %vm1790_vm0, %v5727_v23, 0.0  ;;  %v1844_v18 = vadd.f32 %v1843_v10, %v5605_v56  ;;  %v1876_v10 = vadd.f32 %v5431_v47, %v5427_v22 }
 0x21d   :  { %v3040_v21 = vpop.f32.mrf.mxu1  ;;  %v1828_v57 = vadd.f32 %v1827_v48, %v1826_v27  ;;  %v2961_v41 = vpop.f32.mrf.mxu0  ;;  %v1859_v27 = vadd.f32 %v1858_v62, %v5547_v1 }
 0x21e   :  { %v5737_v51 = vadd.f32 %v3039_v12, %v2959_v44  ;;  %v2962_v45 = vadd.f32 %v2961_v41, %v2960_v43  ;;  %v1852_v43 = vadd.f32 %v1851_v59, %v5607_v46 }
 0x21f   :  { %v3041_v16 = vpop.f32.mrf.mxu1  ;;  %1829 = vadd.xlane.f32.xlu0 %v1828_v57  ;;  %v2963_v44 = vpop.f32.mrf.mxu0  ;;  %v1860_v62 = vadd.f32 %v1859_v27, %v5549_v54 }
 0x220   :  { %v3042_v8 = vadd.f32 %v3041_v16, %v3040_v21  ;;  %v1836_v36 = vsel %vm1790_vm0, %v5737_v51, 0.0  ;;  %v1853_v59 = vadd.f32 %v1852_v43, %v5609_v9  ;;  %v1885_v43 = vadd.f32 %v5443_v39, %v5437_v24  ;;  %v7452_v24 = vld [vmem:[#allocation45_spill] sm:$0xff] }
 0x221   :  { %v3043_v12 = vpop.f32.mrf.mxu1  ;;  %v1837_v48 = vadd.f32 %v1836_v36, %v1835_v34  ;;  %v2964_v21 = vpop.f32.mrf.mxu0  ;;  %v1868_v34 = vadd.f32 %v1867_v29, %v5551_v38 }
 0x222   :  { %v5747_v49 = vadd.f32 %v3042_v8, %v2962_v45  ;;  %v2965_v41 = vadd.f32 %v2964_v21, %v2963_v44  ;;  %v1861_v44 = vadd.f32 %v1860_v62, %v5611_v7 }
 0x223   :  { %v3044_v57 = vpop.f32.mrf.mxu1  ;;  %1838 = vadd.xlane.f32.xlu1 %v1837_v48  ;;  %v2966_v45 = vpop.f32.mrf.mxu0  ;;  %v1869_v29 = vadd.f32 %v1868_v34, %v5553_v53 }
 0x224   :  { %v3045_v16 = vadd.f32 %v3044_v57, %v3043_v12  ;;  %v1845_v60 = vsel %vm1790_vm0, %v5747_v49, 0.0  ;;  %v1862_v62 = vadd.f32 %v1861_v44, %v5613_v33  ;;  %v7451_v44 = vld [vmem:[#allocation44_spill] sm:$0xff] }
 0x225   :  { %v3046_v8 = vpop.f32.mrf.mxu1  ;;  %v1846_v36 = vadd.f32 %v1845_v60, %v1844_v18  ;;  %v2967_v12 = vpop.f32.mrf.mxu0  ;;  %v1877_v18 = vadd.f32 %v1876_v10, %v5555_v19  ;;  %v7453_v19 = vld [vmem:[#allocation65_spill] sm:$0xff] }
 0x226   :  { %v5757_v37 = vadd.f32 %v3045_v16, %v2965_v41  ;;  %v2968_v21 = vadd.f32 %v2967_v12, %v2966_v45  ;;  %v1870_v45 = vadd.f32 %v1869_v29, %v5615_v2  ;;  %v1894_v29 = vadd.f32 %v7452_v24, %v7451_v44  ;;  %v7459_v44 = vld [vmem:[#allocation47_spill] sm:$0xff] }
 0x227   :  { %v3047_v48 = vpop.f32.mrf.mxu1  ;;  %1847 = vadd.xlane.f32.xlu0 %v1846_v36  ;;  %v2969_v41 = vpop.f32.mrf.mxu0  ;;  %v1878_v10 = vadd.f32 %v1877_v18, %v5557_v40 }
 0x228   :  { %v3048_v57 = vadd.f32 %v3047_v48, %v3046_v8  ;;  %v1854_v27 = vsel %vm1790_vm0, %v5757_v37, 0.0  ;;  %v1871_v22 = vadd.f32 %v1870_v45, %v7453_v19  ;;  %v7458_v45 = vld [vmem:[#allocation46_spill] sm:$0xff] }
 0x229   :  { %v3049_v16 = vpop.f32.mrf.mxu1  ;;  %v1855_v60 = vadd.f32 %v1854_v27, %v1853_v59  ;;  %v2970_v8 = vpop.f32.mrf.mxu0  ;;  %v1886_v59 = vadd.f32 %v1885_v43, %v5559_v6  ;;  %v7455_v43 = vld [vmem:[#allocation37_spill] sm:$0xff] }
 0x22a   :  { %v5767_v47 = vadd.f32 %v3048_v57, %v2968_v21  ;;  %v2971_v12 = vadd.f32 %v2970_v8, %v2969_v41 }
 0x22b   :  { %v3050_v36 = vpop.f32.mrf.mxu1  ;;  %1856 = vadd.xlane.f32.xlu1 %v1855_v60  ;;  %v2972_v21 = vpop.f32.mrf.mxu0  ;;  %v7454_v60 = vld [vmem:[#allocation66_spill] sm:$0xff]  ;;  %v1887_v6 = vadd.f32 %v1886_v59, %v7455_v43 }
 0x22c   :  { %v3051_v48 = vadd.f32 %v3050_v36, %v3049_v16  ;;  %v1863_v34 = vsel %vm1790_vm0, %v5767_v47, 0.0  ;;  %v1879_v41 = vadd.f32 %v1878_v10, %v7454_v60  ;;  %v1903_v10 = vadd.f32 %v7459_v44, %v7458_v45  ;;  %v7460_v60 = vld [vmem:[#allocation67_spill] sm:$0xff]  ;;  %v7466_v45 = vld [vmem:[#allocation49_spill] sm:$0xff] }
 0x22d   :  { %v3052_v57 = vpop.f32.mrf.mxu1  ;;  %v1864_v27 = vadd.f32 %v1863_v34, %v1862_v62  ;;  %v2973_v16 = vpop.f32.mrf.mxu0  ;;  %v7456_v62 = vld [vmem:[#allocation38_spill] sm:$0xff] }
 0x22e   :  { %v5777_v39 = vadd.f32 %v3051_v48, %v2971_v12  ;;  %v2974_v36 = vadd.f32 %v2973_v16, %v2972_v21  ;;  %v1895_v12 = vadd.f32 %v1894_v29, %v7456_v62  ;;  %v1880_v19 = vadd.f32 %v1879_v41, %v7460_v60  ;;  %v7462_v29 = vld [vmem:[#allocation39_spill] sm:$0xff]  ;;  %v7465_v41 = vld [vmem:[#allocation48_spill] sm:$0xff] }
 0x22f   :  { %v3053_v8 = vpop.f32.mrf.mxu1  ;;  %1865 = vadd.xlane.f32.xlu0 %v1864_v27  ;;  %v2975_v48 = vpop.f32.mrf.mxu0  ;;  %v7461_v27 = vld [vmem:[#allocation68_spill] sm:$0xff] }
 0x230   :  { %7450 = vst [vmem:[#allocation19_spill] sm:$0xff] %v5777_v39  ;;  %v3054_v2 = vadd.f32 %v3053_v8, %v3052_v57  ;;  %v1872_v18 = vsel %vm1790_vm0, %v5777_v39, 0.0  ;;  %v1888_v21 = vadd.f32 %v1887_v6, %v7461_v27  ;;  %v1896_v62 = vadd.f32 %v1895_v12, %v7462_v29  ;;  %v7467_v27 = vld [vmem:[#allocation69_spill] sm:$0xff] }
 0x231   :  { %v3055_v34 = vpop.f32.mrf.mxu1  ;;  %v1873_v40 = vadd.f32 %v1872_v18, %v1871_v22  ;;  %v2976_v57 = vpop.f32.mrf.mxu0  ;;  %v7463_v22 = vld [vmem:[#allocation57_spill] sm:$0xff]  ;;  %v1912_v6 = vadd.f32 %v7466_v45, %v7465_v41  ;;  %v7472_v41 = vld [vmem:[#allocation51_spill] sm:$0xff] }
 0x232   :  { %v5787_v24 = vadd.f32 %v3054_v2, %v2974_v36  ;;  %v2977_v8 = vadd.f32 %v2976_v57, %v2975_v48  ;;  %v1904_v2 = vadd.f32 %v1903_v10, %v7463_v22  ;;  %v1889_v60 = vadd.f32 %v1888_v21, %v7467_v27  ;;  %v7469_v10 = vld [vmem:[#allocation58_spill] sm:$0xff] }
 0x233   :  { %v3056_v16 = vpop.f32.mrf.mxu1  ;;  %1874 = vadd.xlane.f32.xlu1 %v1873_v40  ;;  %v2978_v36 = vpop.f32.mrf.mxu0  ;;  %v7468_v40 = vld [vmem:[#allocation70_spill] sm:$0xff] }
 0x234   :  { %7457 = vst [vmem:[#allocation21_spill] sm:$0xff] %v5787_v24  ;;  %v3057_v39 = vadd.f32 %v3056_v16, %v3055_v34  ;;  %v1881_v59 = vsel %vm1790_vm0, %v5787_v24, 0.0  ;;  %v1897_v48 = vadd.f32 %v1896_v62, %v7468_v40  ;;  %v1905_v22 = vadd.f32 %v1904_v2, %v7469_v10  ;;  %v7471_v21 = vld [vmem:[#allocation50_spill] sm:$0xff]  ;;  %v7473_v40 = vld [vmem:[#allocation71_spill] sm:$0xff] }
 0x235   :  { %v3058_v18 = vpop.f32.mrf.mxu1  ;;  %v1882_v43 = vadd.f32 %v1881_v59, %v1880_v19  ;;  %v2979_v34 = vpop.f32.mrf.mxu0  ;;  %v7470_v19 = vld [vmem:[#allocation59_spill] sm:$0xff]  ;;  %v1921_v62 = vadd.f32 %v7472_v41, %v7471_v21 }
 0x236   :  { %v5797_v44 = vadd.f32 %v3057_v39, %v2977_v8  ;;  %v2980_v16 = vadd.f32 %v2979_v34, %v2978_v36  ;;  %v1913_v39 = vadd.f32 %v1912_v6, %v7470_v19  ;;  %v1898_v27 = vadd.f32 %v1897_v48, %v7473_v40  ;;  %v7475_v6 = vld [vmem:[#allocation60_spill] sm:$0xff] }
 0x237   :  { %v3059_v57 = vpop.f32.mrf.mxu1  ;;  %1883 = vadd.xlane.f32.xlu0 %v1882_v43  ;;  %v2981_v8 = vpop.f32.mrf.mxu0  ;;  %v7474_v43 = vld [vmem:[#allocation72_spill] sm:$0xff] }
 0x238   :  { %7464 = vst [vmem:[#allocation22_spill] sm:$0xff] %v5797_v44  ;;  %v3060_v24 = vadd.f32 %v3059_v57, %v3058_v18  ;;  %v1890_v12 = vsel %vm1790_vm0, %v5797_v44, 0.0  ;;  %v1906_v36 = vadd.f32 %v1905_v22, %v7474_v43  ;;  %v1914_v19 = vadd.f32 %v1913_v39, %v7475_v6  ;;  %v7477_v48 = vld [vmem:[#allocation4_spill] sm:$0xff]  ;;  %v7478_v22 = vld [vmem:[#allocation73_spill] sm:$0xff]  ;;  %v7479_v39 = vld [vmem:[#allocation62_spill] sm:$0xff] }
 0x239   :  { %v3061_v59 = vpop.f32.mrf.mxu1  ;;  %v1891_v29 = vadd.f32 %v1890_v12, %v1889_v60  ;;  %v2982_v18 = vpop.f32.mrf.mxu0  ;;  %v7476_v60 = vld [vmem:[#allocation61_spill] sm:$0xff] }
 0x23a   :  { %v5807_v45 = vadd.f32 %v3060_v24, %v2980_v16  ;;  %v2983_v57 = vadd.f32 %v2982_v18, %v2981_v8  ;;  %v1922_v24 = vadd.f32 %v1921_v62, %v7476_v60  ;;  %v1907_v21 = vadd.f32 %v1906_v36, %v7477_v48  ;;  %v7481_v36 = vld [vmem:[#allocation74_spill] sm:$0xff] }
 0x23b   :  { %v3062_v34 = vpop.f32.mrf.mxu1  ;;  %1892 = vadd.xlane.f32.xlu1 %v1891_v29  ;;  %v2984_v16 = vpop.f32.mrf.mxu0  ;;  %v1915_v43 = vadd.f32 %v1914_v19, %v7478_v22 }
 0x23c   :  { %v3063_v44 = vadd.f32 %v3062_v34, %v3061_v59  ;;  %v1899_v2 = vsel %vm1790_vm0, %v5807_v45, 0.0  ;;  %v1923_v34 = vadd.f32 %v1922_v24, %v7479_v39  ;;  %v7483_v24 = vld [vmem:[#allocation10_spill] sm:$0xff] }
 0x23d   :  { %v3064_v12 = vpop.f32.mrf.mxu1  ;;  %v1900_v10 = vadd.f32 %v1899_v2, %v1898_v27  ;;  %v2985_v40 = vpop.f32.mrf.mxu0 }
 0x23e   :  { %v5817_v41 = vadd.f32 %v3063_v44, %v2983_v57  ;;  %v2986_v8 = vadd.f32 %v2985_v40, %v2984_v16  ;;  %v7480_v44 = vld [vmem:[#allocation7_spill] sm:$0xff]  ;;  %v1924_v2 = vadd.f32 %v1923_v34, %v7481_v36 }
 0x23f   :  { %v3065_v29 = vpop.f32.mrf.mxu1  ;;  %1901 = vadd.xlane.f32.xlu0 %v1900_v10  ;;  %v2987_v62 = vpop.f32.mrf.mxu0  ;;  %v1916_v57 = vadd.f32 %v1915_v43, %v7480_v44 }
 0x240   :  { %v3066_v59 = vadd.f32 %v3065_v29, %v3064_v12  ;;  %v1908_v18 = vsel %vm1790_vm0, %v5817_v41, 0.0  ;;  %v1925_v39 = vadd.f32 %v1924_v2, %v7483_v24  ;;  %v7507_v24 = vld [vmem:[#allocation9_spill] sm:$0xff] }
 0x241   :  { %v3067_v60 = vpop.f32.mrf.mxu1  ;;  %v1909_v6 = vadd.f32 %v1908_v18, %v1907_v21  ;;  %v2988_v19 = vpop.f32.mrf.mxu0  ;;  %v7486_v18 = vld [vmem:[#allocation3_spill] sm:$0xff] }
 0x242   :  { %v5824_v27 = vadd.f32 %v3066_v59, %v2986_v8  ;;  %v2989_v10 = vadd.f32 %v2988_v19, %v2987_v62  ;;  %v3169_v8 = vmov 0   ;;  %v7488_v62 = vld [vmem:[#allocation52_spill] sm:$0xff]  ;;  %v7490_v19 = vld [vmem:[#allocation53_spill] sm:$0xff] }
 0x243   :  { %v3068_v22 = vpop.f32.mrf.mxu1  ;;  %1910 = vadd.xlane.f32.xlu1 %v1909_v6  ;;  %3072 = vset.pattern.permute.xlu0 %v3169_v8 }
 0x244   :  { %v3069_v40 = vadd.f32 %v3068_v22, %v3067_v60  ;;  %v1917_v16 = vsel %vm1790_vm0, %v5824_v27, 0.0  ;;  %3071 = vset.pattern.permute.xlu1 %v3169_v8  ;;  %v7484_v60 = vld [vmem:[#allocation2_spill] sm:$0xff] }
 0x245   :  { %v1918_v12 = vadd.f32 %v1917_v16, %v1916_v57 }
 0x246   :  { %v5830_v29 = vadd.f32 %v3069_v40, %v2989_v10 }
 0x247   :  { %1919 = vadd.xlane.f32.xlu0 %v1918_v12 }
 0x248   :  { %7482 = vst [vmem:[#allocation24_spill] sm:$0xff] %v5830_v29  ;;  %v1926_v21 = vsel %vm1790_vm0, %v5830_v29, 0.0 }
 0x249   :  { %v1927_v43 = vadd.f32 %v1926_v21, %v1925_v39 }
 0x24b   :  { %1928 = vadd.xlane.f32.xlu1 %v1927_v43 }
 0x298   :  { %v1794_v6 = vpop.xlane.xlu0 %1793 }
 0x299   :  { %v1930_v59 = vmul.f32 0.0012755102, %v1794_v6 }
 0x29b   :  { %v5836_v22 = vsub.f32 %v7484_v60, %v1930_v59  ;;  %v5839_v34 = vsub.f32 %v7486_v18, %v1930_v59  ;;  %v5842_v57 = vsub.f32 %v7488_v62, %v1930_v59  ;;  %v5845_v10 = vsub.f32 %v7490_v19, %v1930_v59  ;;  %v7495_v60 = vld [vmem:[#allocation5_spill] sm:$0xff] }
 0x29c   :  { %v1803_v2 = vpop.xlane.xlu0 %1802  ;;  %v5848_v40 = vsub.f32 %v5671_v31, %v1930_v59  ;;  %v5855_v21 = vsub.f32 %v5579_v42, %v1930_v59  ;;  %v5858_v43 = vsub.f32 %v5581_v52, %v1930_v59  ;;  %v7497_v31 = vld [vmem:[#allocation6_spill] sm:$0xff] }
 0x29d   :  { %7485 = vst [vmem:[#allocation25_spill] sm:$0xff] %v5836_v22  ;;  %7487 = vst [vmem:[#allocation33_spill] sm:$0xff] %v5839_v34  ;;  %v1931_v39 = vmul.f32 0.0012755102, %v1803_v2  ;;  %v2058_v16 = vmul.f32 %v5836_v22, %v5836_v22  ;;  %v2059_v12 = vmul.f32 %v5839_v34, %v5839_v34  ;;  %v2060_v8 = vmul.f32 %v5842_v57, %v5842_v57  ;;  %v7499_v34 = vld [vmem:[#allocation54_spill] sm:$0xff] }
 0x29e   :  { %7489 = vst [vmem:[#allocation4_spill] sm:$0xff] %v5842_v57  ;;  %7491 = vst [vmem:[#allocation7_spill] sm:$0xff] %v5845_v10  ;;  %v2061_v19 = vmul.f32 %v5845_v10, %v5845_v10  ;;  %v2064_v52 = vmul.f32 %v5848_v40, %v5848_v40  ;;  %v7501_v57 = vld [vmem:[#allocation63_spill] sm:$0xff] }
 0x29f   :  { %7492 = vst [vmem:[#allocation2_spill] sm:$0xff] %v5848_v40  ;;  %7493 = vst [vmem:[#allocation3_spill] sm:$0xff] %v5855_v21  ;;  %v2170_v6 = vadd.f32 %v2059_v12, %v2058_v16  ;;  %v5863_v18 = vsub.f32 %v7495_v60, %v1931_v39  ;;  %v5866_v62 = vsub.f32 %v7497_v31, %v1931_v39  ;;  %v7500_v60 = vld [vmem:[#allocation55_spill] sm:$0xff] }
 0x2a0   :  { %7494 = vst [vmem:[#allocation52_spill] sm:$0xff] %v5858_v43  ;;  %v1812_v2 = vpop.xlane.xlu1 %1811  ;;  %v5871_v42 = vsub.f32 %v7499_v34, %v1931_v39  ;;  %v2062_v12 = vmul.f32 %v5855_v21, %v5855_v21  ;;  %v5880_v31 = vsub.f32 %v7500_v60, %v1931_v39  ;;  %v5883_v29 = vsub.f32 %v7501_v57, %v1931_v39 }
 0x2a1   :  { %7496 = vst [vmem:[#allocation53_spill] sm:$0xff] %v5863_v18  ;;  %7498 = vst [vmem:[#allocation5_spill] sm:$0xff] %v5866_v62  ;;  %v1932_v22 = vmul.f32 0.0012755102, %v1812_v2  ;;  %v2171_v59 = vadd.f32 %v2170_v6, %v2060_v8  ;;  %v2065_v16 = vmul.f32 %v5863_v18, %v5863_v18  ;;  %v2066_v34 = vmul.f32 %v5866_v62, %v5866_v62  ;;  %v7504_v6 = vld [vmem:[#allocation8_spill] sm:$0xff] }
 0x2a2   :  { %7502 = vst [vmem:[#allocation6_spill] sm:$0xff] %v5883_v29  ;;  %v2063_v2 = vmul.f32 %v5858_v43, %v5858_v43  ;;  %v5890_v8 = vsub.f32 %v5685_v13, %v1931_v39  ;;  %v5896_v60 = vsub.f32 %v5585_v14, %v1931_v39  ;;  %v2067_v57 = vmul.f32 %v5871_v42, %v5871_v42  ;;  %v7509_v13 = vld [vmem:[#allocation56_spill] sm:$0xff] }
 0x2a3   :  { %v2172_v40 = vadd.f32 %v2171_v59, %v2061_v19  ;;  %v5893_v18 = vsub.f32 %v7504_v6, %v1932_v22  ;;  %v2179_v10 = vadd.f32 %v2066_v34, %v2065_v16  ;;  %v5901_v62 = vsub.f32 %v7507_v24, %v1932_v22 }
 0x2a4   :  { %7503 = vst [vmem:[#allocation54_spill] sm:$0xff] %v5890_v8  ;;  %v1821_v21 = vpop.xlane.xlu1 %1820  ;;  %7506 = vst [vmem:[#allocation63_spill] sm:$0xff] %v5896_v60  ;;  %v2175_v19 = vsel %vm1790_vm0, %v2064_v52, 0.0  ;;  %v5905_v59 = vsub.f32 %v7509_v13, %v1932_v22  ;;  %v2068_v6 = vmul.f32 %v5880_v31, %v5880_v31  ;;  %v2069_v14 = vmul.f32 %v5883_v29, %v5883_v29 }
 0x2a5   :  { %7505 = vst [vmem:[#allocation55_spill] sm:$0xff] %v5893_v18  ;;  %7508 = vst [vmem:[#allocation8_spill] sm:$0xff] %v5901_v62  ;;  %v1933_v36 = vmul.f32 0.0012755102, %v1821_v21  ;;  %v2173_v43 = vadd.f32 %v2172_v40, %v2062_v12  ;;  %v2180_v39 = vadd.f32 %v2179_v10, %v2067_v57  ;;  %v2072_v16 = vmul.f32 %v5893_v18, %v5893_v18  ;;  %v7511_v18 = vld [vmem:[#allocation11_spill] sm:$0xff] }
 0x2a6   :  { %v2071_v24 = vmul.f32 %v5890_v8, %v5890_v8  ;;  %v5916_v40 = vsub.f32 %v5511_v17, %v1932_v22  ;;  %v2073_v21 = vmul.f32 %v5901_v62, %v5901_v62  ;;  %v2070_v12 = vmul.f32 %v5896_v60, %v5896_v60  ;;  %v7513_v60 = vld [vmem:[#allocation12_spill] sm:$0xff] }
 0x2a7   :  { %v2174_v34 = vadd.f32 %v2173_v43, %v2063_v2  ;;  %v2181_v13 = vadd.f32 %v2180_v39, %v2068_v6  ;;  %v5923_v10 = vsub.f32 %v5587_v15, %v1932_v22  ;;  %v5926_v57 = vsub.f32 %v5699_v3, %v1932_v22  ;;  %v7515_v15 = vld [vmem:[#allocation27_spill] sm:$0xff] }
 0x2a8   :  { %v1830_v52 = vpop.xlane.xlu0 %1829  ;;  %v2074_v2 = vmul.f32 %v5905_v59, %v5905_v59  ;;  %v2188_v17 = vadd.f32 %v2073_v21, %v2072_v16  ;;  %v5931_v8 = vsub.f32 %v7511_v18, %v1933_v36  ;;  %v5934_v29 = vsub.f32 %v5589_v0, %v1932_v22 }
 0x2a9   :  { %7510 = vst [vmem:[#allocation9_spill] sm:$0xff] %v5926_v57  ;;  %v2176_v43 = vadd.f32 %v2175_v19, %v2174_v34  ;;  %v2182_v62 = vadd.f32 %v2181_v13, %v2069_v14  ;;  %v5937_v6 = vsub.f32 %v7513_v60, %v1933_v36  ;;  %v5940_v39 = vsub.f32 %v7515_v15, %v1933_v36 }
 0x2aa   :  { %7512 = vst [vmem:[#allocation56_spill] sm:$0xff] %v5931_v8  ;;  %v1934_v3 = vmul.f32 0.0012755102, %v1830_v52  ;;  %v2184_v19 = vsel %vm1790_vm0, %v2071_v24, 0.0  ;;  %v2075_v16 = vmul.f32 %v5916_v40, %v5916_v40  ;;  %v2189_v34 = vadd.f32 %v2188_v17, %v2074_v2 }
 0x2ab   :  { %7514 = vst [vmem:[#allocation11_spill] sm:$0xff] %v5937_v6  ;;  %2177 = vadd.xlane.f32.xlu0 %v2176_v43  ;;  %v2183_v18 = vadd.f32 %v2182_v62, %v2070_v12  ;;  %v2078_v14 = vmul.f32 %v5926_v57, %v5926_v57  ;;  %v2079_v0 = vmul.f32 %v5931_v8, %v5931_v8 }
 0x2ac   :  { %v2080_v22 = vmul.f32 %v5937_v6, %v5937_v6  ;;  %v1839_v60 = vpop.xlane.xlu1 %1838  ;;  %v2076_v21 = vmul.f32 %v5923_v10, %v5923_v10  ;;  %v2190_v52 = vadd.f32 %v2189_v34, %v2075_v16  ;;  %v5954_v24 = vsub.f32 %v5523_v26, %v1933_v36  ;;  %v7516_v6 = vld [vmem:[#allocation14_spill] sm:$0xff]  ;;  %v7518_v26 = vld [vmem:[#allocation13_spill] sm:$0xff] }
 0x2ad   :  { %v5957_v13 = vsub.f32 %v5713_v63, %v1933_v36  ;;  %v2185_v62 = vadd.f32 %v2184_v19, %v2183_v18  ;;  %v2077_v12 = vmul.f32 %v5934_v29, %v5934_v29  ;;  %v5962_v43 = vsub.f32 %v5591_v58, %v1933_v36  ;;  %v7520_v58 = vld [vmem:[#allocation29_spill] sm:$0xff] }
 0x2ae   :  { %v2081_v2 = vmul.f32 %v5940_v39, %v5940_v39  ;;  %v2191_v17 = vadd.f32 %v2190_v52, %v2076_v21  ;;  %v2197_v15 = vadd.f32 %v2080_v22, %v2079_v0  ;;  %v5967_v16 = vsub.f32 %v7516_v6, %v1934_v3 }
 0x2af   :  { %v5970_v34 = vsub.f32 %v7518_v26, %v1934_v3  ;;  %v1935_v63 = vmul.f32 0.0012755102, %v1839_v60  ;;  %2186 = vadd.xlane.f32.xlu1 %v2185_v62  ;;  %v2193_v19 = vsel %vm1790_vm0, %v2078_v14, 0.0  ;;  %v5974_v18 = vsub.f32 %v5593_v28, %v1933_v36  ;;  %v7522_v26 = vld [vmem:[#allocation17_spill] sm:$0xff] }
 0x2b0   :  { %7517 = vst [vmem:[#allocation12_spill] sm:$0xff] %v5967_v16  ;;  %v5977_v8 = vsub.f32 %v7520_v58, %v1934_v3  ;;  %v2192_v57 = vadd.f32 %v2191_v17, %v2077_v12  ;;  %v2082_v0 = vmul.f32 %v5954_v24, %v5954_v24  ;;  %v2085_v6 = vmul.f32 %v5957_v13, %v5957_v13  ;;  %v1848_v14 = vpop.xlane.xlu0 %1847 }
 0x2b1   :  { %7519 = vst [vmem:[#allocation27_spill] sm:$0xff] %v5970_v34  ;;  %v2198_v22 = vadd.f32 %v2197_v15, %v2081_v2  ;;  %v2083_v60 = vmul.f32 %v5962_v43, %v5962_v43  ;;  %v5986_v21 = vsub.f32 %v5531_v61, %v1934_v3  ;;  %v2086_v28 = vmul.f32 %v5967_v16, %v5967_v16 }
 0x2b2   :  { %7521 = vst [vmem:[#allocation14_spill] sm:$0xff] %v5977_v8  ;;  %v2087_v36 = vmul.f32 %v5970_v34, %v5970_v34  ;;  %v2194_v52 = vadd.f32 %v2193_v19, %v2192_v57  ;;  %v5993_v12 = vsub.f32 %v5595_v32, %v1934_v3  ;;  %v5996_v2 = vsub.f32 %v5727_v23, %v1934_v3  ;;  %v7523_v19 = vld [vmem:[#allocation15_spill] sm:$0xff] }
 0x2b3   :  { %v2199_v62 = vadd.f32 %v2198_v22, %v2082_v0  ;;  %v2084_v17 = vmul.f32 %v5974_v18, %v5974_v18  ;;  %v2088_v61 = vmul.f32 %v5977_v8, %v5977_v8  ;;  %v6003_v58 = vsub.f32 %v7522_v26, %v1935_v63 }
 0x2b4   :  { %v2206_v15 = vadd.f32 %v2087_v36, %v2086_v28  ;;  %2195 = vadd.xlane.f32.xlu0 %v2194_v52  ;;  %v2202_v57 = vsel %vm1790_vm0, %v2085_v6, 0.0  ;;  %v6007_v32 = vsub.f32 %v5597_v11, %v1934_v3  ;;  %v6010_v23 = vsub.f32 %v7523_v19, %v1935_v63  ;;  %v1857_v22 = vpop.xlane.xlu1 %1856 }
 0x2b5   :  { %v2200_v34 = vadd.f32 %v2199_v62, %v2083_v60  ;;  %v1936_v0 = vmul.f32 0.0012755102, %v1848_v14  ;;  %v2089_v16 = vmul.f32 %v5986_v21, %v5986_v21  ;;  %v6015_v28 = vsub.f32 %v5535_v25, %v1935_v63 }
 0x2b6   :  { %v2207_v8 = vadd.f32 %v2206_v15, %v2088_v61  ;;  %v2090_v60 = vmul.f32 %v5993_v12, %v5993_v12  ;;  %v2092_v11 = vmul.f32 %v5996_v2, %v5996_v2  ;;  %v2093_v3 = vmul.f32 %v6003_v58, %v6003_v58 }
 0x2b7   :  { %v2201_v36 = vadd.f32 %v2200_v34, %v2084_v17  ;;  %v6024_v14 = vsub.f32 %v5537_v30, %v1935_v63  ;;  %v6027_v52 = vsub.f32 %v5599_v20, %v1935_v63  ;;  %v2094_v25 = vmul.f32 %v6010_v23, %v6010_v23 }
 0x2b8   :  { %v2208_v6 = vadd.f32 %v2207_v8, %v2089_v16  ;;  %v1937_v34 = vmul.f32 0.0012755102, %v1857_v22  ;;  %v2091_v17 = vmul.f32 %v6007_v32, %v6007_v32  ;;  %v6034_v61 = vsub.f32 %v5737_v51, %v1935_v63  ;;  %v7526_v16 = vld [vmem:[#allocation20_spill] sm:$0xff] }
 0x2b9   :  { %7524 = vst [vmem:[#allocation13_spill] sm:$0xff] %v6027_v52  ;;  %v2203_v62 = vadd.f32 %v2202_v57, %v2201_v36  ;;  %v2095_v8 = vmul.f32 %v6015_v28, %v6015_v28  ;;  %v2215_v30 = vadd.f32 %v2094_v25, %v2093_v3  ;;  %v6039_v26 = vsub.f32 %v7526_v16, %v1936_v0  ;;  %v7529_v57 = vld [vmem:[#allocation16_spill] sm:$0xff]  ;;  %v7531_v36 = vld [vmem:[#allocation30_spill] sm:$0xff] }
 0x2ba   :  { %7525 = vst [vmem:[#allocation29_spill] sm:$0xff] %v6034_v61  ;;  %v2209_v15 = vadd.f32 %v2208_v6, %v2090_v60  ;;  %v2211_v20 = vsel %vm1790_vm0, %v2092_v11, 0.0  ;;  %v6043_v19 = vsub.f32 %v5601_v4, %v1935_v63  ;;  %v6046_v22 = vsub.f32 %v7529_v57, %v1936_v0  ;;  %v1866_v60 = vpop.xlane.xlu0 %1865 }
 0x2bb   :  { %7527 = vst [vmem:[#allocation17_spill] sm:$0xff] %v6039_v26  ;;  %2204 = vadd.xlane.f32.xlu1 %v2203_v62  ;;  %v6049_v51 = vsub.f32 %v7531_v36, %v1936_v0  ;;  %v2096_v3 = vmul.f32 %v6024_v14, %v6024_v14  ;;  %v2097_v25 = vmul.f32 %v6027_v52, %v6027_v52 }
 0x2bc   :  { %7528 = vst [vmem:[#allocation15_spill] sm:$0xff] %v6043_v19  ;;  %7530 = vst [vmem:[#allocation20_spill] sm:$0xff] %v6046_v22  ;;  %v2210_v6 = vadd.f32 %v2209_v15, %v2091_v17  ;;  %v2216_v62 = vadd.f32 %v2215_v30, %v2095_v8  ;;  %v2099_v11 = vmul.f32 %v6034_v61, %v6034_v61  ;;  %v1938_v8 = vmul.f32 0.0012755102, %v1866_v60  ;;  %v1875_v30 = vpop.xlane.xlu1 %1874 }
 0x2bd   :  { %7532 = vst [vmem:[#allocation16_spill] sm:$0xff] %v6049_v51  ;;  %v6058_v4 = vsub.f32 %v5541_v50, %v1936_v0  ;;  %v2100_v63 = vmul.f32 %v6039_v26, %v6039_v26  ;;  %v2101_v16 = vmul.f32 %v6046_v22, %v6046_v22  ;;  %v6065_v57 = vsub.f32 %v5603_v55, %v1936_v0 }
 0x2be   :  { %v2212_v17 = vadd.f32 %v2211_v20, %v2210_v6  ;;  %v2217_v15 = vadd.f32 %v2216_v62, %v2096_v3  ;;  %v6068_v36 = vsub.f32 %v5747_v49, %v1936_v0  ;;  %v2098_v50 = vmul.f32 %v6043_v19, %v6043_v19  ;;  %v7533_v6 = vld [vmem:[#allocation23_spill] sm:$0xff]  ;;  %v7534_v3 = vld [vmem:[#allocation18_spill] sm:$0xff] }
 0x2bf   :  { %v2102_v61 = vmul.f32 %v6049_v51, %v6049_v51  ;;  %v2224_v26 = vadd.f32 %v2101_v16, %v2100_v63  ;;  %v6075_v20 = vsub.f32 %v5605_v56, %v1936_v0  ;;  %v6078_v55 = vsub.f32 %v7533_v6, %v1937_v34  ;;  %v7535_v19 = vld [vmem:[#allocation31_spill] sm:$0xff] }
 0x2c0   :  { %2213 = vadd.xlane.f32.xlu0 %v2212_v17  ;;  %v2218_v52 = vadd.f32 %v2217_v15, %v2097_v25  ;;  %v6081_v49 = vsub.f32 %v7534_v3, %v1937_v34  ;;  %v2220_v60 = vsel %vm1790_vm0, %v2099_v11, 0.0  ;;  %v2103_v62 = vmul.f32 %v6058_v4, %v6058_v4  ;;  %v1884_v56 = vpop.xlane.xlu0 %1883 }
 0x2c1   :  { %v2225_v22 = vadd.f32 %v2224_v26, %v2102_v61  ;;  %v6087_v51 = vsub.f32 %v7535_v19, %v1937_v34  ;;  %v6089_v63 = vmul.f32 0.0012755102, %v1875_v30  ;;  %v2104_v0 = vmul.f32 %v6065_v57, %v6065_v57 }
 0x2c2   :  { %v2219_v25 = vadd.f32 %v2218_v52, %v2098_v50  ;;  %v2106_v16 = vmul.f32 %v6068_v36, %v6068_v36  ;;  %v6096_v11 = vsub.f32 %v5545_v35, %v1937_v34  ;;  %v2107_v61 = vmul.f32 %v6078_v55, %v6078_v55 }
 0x2c3   :  { %v2226_v17 = vadd.f32 %v2225_v22, %v2103_v62  ;;  %v2108_v26 = vmul.f32 %v6081_v49, %v6081_v49  ;;  %v2105_v52 = vmul.f32 %v6075_v20, %v6075_v20  ;;  %v6105_v15 = vsub.f32 %v5607_v46, %v1937_v34 }
 0x2c4   :  { %v2221_v19 = vadd.f32 %v2220_v60, %v2219_v25  ;;  %v6108_v30 = vsub.f32 %v5757_v37, %v1937_v34  ;;  %v6110_v22 = vmul.f32 0.0012755102, %v1884_v56  ;;  %v2109_v50 = vmul.f32 %v6087_v51, %v6087_v51  ;;  %v7536_v60 = vld [vmem:[#allocation26_spill] sm:$0xff]  ;;  %v7538_v25 = vld [vmem:[#allocation28_spill] sm:$0xff] }
 0x2c5   :  { %v2227_v35 = vadd.f32 %v2226_v17, %v2104_v0  ;;  %v2233_v6 = vadd.f32 %v2108_v26, %v2107_v61  ;;  %v6115_v3 = vsub.f32 %v5609_v9, %v1937_v34  ;;  %v6118_v62 = vsub.f32 %v7536_v60, %v1938_v8 }
 0x2c6   :  { %2222 = vadd.xlane.f32.xlu1 %v2221_v19  ;;  %v6121_v46 = vsub.f32 %v7538_v25, %v1938_v8  ;;  %v6124_v37 = vsub.f32 %v5547_v1, %v1938_v8  ;;  %v2229_v0 = vsel %vm1790_vm0, %v2106_v16, 0.0  ;;  %v2110_v17 = vmul.f32 %v6096_v11, %v6096_v11 }
 0x2c7   :  { %7537 = vst [vmem:[#allocation30_spill] sm:$0xff] %v6118_v62  ;;  %v2228_v56 = vadd.f32 %v2227_v35, %v2105_v52  ;;  %v2234_v61 = vadd.f32 %v2233_v6, %v2109_v50  ;;  %v2111_v9 = vmul.f32 %v6105_v15, %v6105_v15  ;;  %v2113_v34 = vmul.f32 %v6108_v30, %v6108_v30  ;;  %v1893_v52 = vpop.xlane.xlu1 %1892 }
 0x2c8   :  { %7539 = vst [vmem:[#allocation23_spill] sm:$0xff] %v6121_v46  ;;  %v2114_v26 = vmul.f32 %v6118_v62, %v6118_v62  ;;  %v2115_v1 = vmul.f32 %v6121_v46, %v6121_v46  ;;  %v1902_v16 = vpop.xlane.xlu0 %1901  ;;  %v6138_v60 = vsub.f32 %v5549_v54, %v1938_v8  ;;  %v6141_v50 = vsub.f32 %v5767_v47, %v1938_v8  ;;  %v7544_v47 = vld [vmem:[#allocation36_spill] sm:$0xff] }
 0x2c9   :  { %v2230_v19 = vadd.f32 %v2229_v0, %v2228_v56  ;;  %v2235_v35 = vadd.f32 %v2234_v61, %v2110_v17  ;;  %v2112_v6 = vmul.f32 %v6115_v3, %v6115_v3  ;;  %v6146_v25 = vsub.f32 %v5611_v7, %v1938_v8 }
 0x2ca   :  { %7540 = vst [vmem:[#allocation18_spill] sm:$0xff] %v6141_v50  ;;  %v6149_v62 = vsub.f32 %v5613_v33, %v1938_v8  ;;  %v2116_v56 = vmul.f32 %v6124_v37, %v6124_v37  ;;  %v2242_v17 = vadd.f32 %v2115_v1, %v2114_v26  ;;  %v6155_v54 = vsub.f32 %v7448_v5, %v6089_v63 }
 0x2cb   :  { %7541 = vst [vmem:[#allocation31_spill] sm:$0xff] %v6146_v25  ;;  %2231 = vadd.xlane.f32.xlu0 %v2230_v19  ;;  %v2236_v0 = vadd.f32 %v2235_v35, %v2111_v9  ;;  %v6159_v61 = vsub.f32 %v7544_v47, %v6089_v63  ;;  %v6161_v46 = vmul.f32 0.0012755102, %v1893_v52  ;;  %v2238_v7 = vsel %vm1790_vm0, %v2113_v34, 0.0  ;;  %v7550_v47 = vld [vmem:[#allocation64_spill] sm:$0xff] }
 0x2cc   :  { %7542 = vst [vmem:[#allocation26_spill] sm:$0xff] %v6149_v62  ;;  %7543 = vst [vmem:[#allocation28_spill] sm:$0xff] %v6155_v54  ;;  %v6164_v33 = vmul.f32 0.0012755102, %v1902_v16  ;;  %v6168_v8 = vsub.f32 %v5551_v38, %v6089_v63  ;;  %v2117_v26 = vmul.f32 %v6138_v60, %v6138_v60  ;;  %v2120_v5 = vmul.f32 %v6141_v50, %v6141_v50 }
 0x2cd   :  { %7545 = vst [vmem:[#allocation36_spill] sm:$0xff] %v6159_v61  ;;  %v2237_v9 = vadd.f32 %v2236_v0, %v2112_v6  ;;  %v2243_v1 = vadd.f32 %v2242_v17, %v2116_v56  ;;  %v2118_v19 = vmul.f32 %v6146_v25, %v6146_v25  ;;  %v6178_v34 = vsub.f32 %v5553_v53, %v6089_v63  ;;  %v1911_v0 = vpop.xlane.xlu1 %1910  ;;  %v7548_v56 = vld [vmem:[#allocation19_spill] sm:$0xff] }
 0x2ce   :  { %7546 = vst [vmem:[#allocation75_spill] sm:$0xff] %v6168_v8  ;;  %v2121_v52 = vmul.f32 %v6155_v54, %v6155_v54  ;;  %v2122_v38 = vmul.f32 %v6159_v61, %v6159_v61  ;;  %v2119_v16 = vmul.f32 %v6149_v62, %v6149_v62  ;;  %v6188_v17 = vsub.f32 %v7548_v56, %v6089_v63  ;;  %v7552_v61 = vld [vmem:[#allocation40_spill] sm:$0xff]  ;;  %v7556_v62 = vld [vmem:[#allocation41_spill] sm:$0xff] }
 0x2cf   :  { %7547 = vst [vmem:[#allocation76_spill] sm:$0xff] %v6178_v34  ;;  %v2239_v35 = vadd.f32 %v2238_v7, %v2237_v9  ;;  %v2244_v6 = vadd.f32 %v2243_v1, %v2117_v26  ;;  %v6192_v53 = vsub.f32 %v7550_v47, %v6089_v63  ;;  %v2123_v54 = vmul.f32 %v6168_v8, %v6168_v8  ;;  %v7554_v1 = vld [vmem:[#allocation65_spill] sm:$0xff] }
 0x2d0   :  { %7549 = vst [vmem:[#allocation19_spill] sm:$0xff] %v6188_v17  ;;  %v2251_v50 = vadd.f32 %v2122_v38, %v2121_v52  ;;  %v6198_v7 = vsub.f32 %v7552_v61, %v6110_v22  ;;  %v2247_v26 = vsel %vm1790_vm0, %v2120_v5, 0.0  ;;  %v6203_v56 = vsub.f32 %v7554_v1, %v6089_v63  ;;  %v7558_v61 = vld [vmem:[#allocation32_spill] sm:$0xff]  ;;  %v7560_v63 = vld [vmem:[#allocation34_spill] sm:$0xff] }
 0x2d1   :  { %7551 = vst [vmem:[#allocation64_spill] sm:$0xff] %v6192_v53  ;;  %2240 = vadd.xlane.f32.xlu1 %v2239_v35  ;;  %v2245_v9 = vadd.f32 %v2244_v6, %v2118_v19  ;;  %v6207_v47 = vsub.f32 %v7556_v62, %v6110_v22  ;;  %v6209_v25 = vmul.f32 0.0012755102, %v1911_v0  ;;  %v2124_v52 = vmul.f32 %v6178_v34, %v6178_v34 }
 0x2d2   :  { %7553 = vst [vmem:[#allocation40_spill] sm:$0xff] %v6198_v7  ;;  %7555 = vst [vmem:[#allocation65_spill] sm:$0xff] %v6203_v56  ;;  %v2252_v38 = vadd.f32 %v2251_v50, %v2123_v54  ;;  %v6215_v35 = vsub.f32 %v7558_v61, %v6110_v22  ;;  %v2127_v5 = vmul.f32 %v6188_v17, %v6188_v17  ;;  %v7562_v50 = vld [vmem:[#allocation21_spill] sm:$0xff] }
 0x2d3   :  { %7557 = vst [vmem:[#allocation41_spill] sm:$0xff] %v6207_v47  ;;  %v2246_v19 = vadd.f32 %v2245_v9, %v2119_v16  ;;  %v6221_v6 = vsub.f32 %v7560_v63, %v6110_v22  ;;  %v2128_v62 = vmul.f32 %v6198_v7, %v6198_v7  ;;  %v2125_v0 = vmul.f32 %v6192_v53, %v6192_v53  ;;  %v7564_v63 = vld [vmem:[#allocation66_spill] sm:$0xff]  ;;  %v7566_v7 = vld [vmem:[#allocation67_spill] sm:$0xff] }
 0x2d4   :  { %7559 = vst [vmem:[#allocation32_spill] sm:$0xff] %v6215_v35  ;;  %v2253_v1 = vadd.f32 %v2252_v38, %v2124_v52  ;;  %v6229_v54 = vsub.f32 %v7562_v50, %v6110_v22  ;;  %v2129_v16 = vmul.f32 %v6207_v47, %v6207_v47  ;;  %v2126_v61 = vmul.f32 %v6203_v56, %v6203_v56  ;;  %v7568_v53 = vld [vmem:[#allocation42_spill] sm:$0xff] }
 0x2d5   :  { %7561 = vst [vmem:[#allocation34_spill] sm:$0xff] %v6221_v6  ;;  %v2248_v9 = vadd.f32 %v2247_v26, %v2246_v19  ;;  %v6237_v17 = vsub.f32 %v7564_v63, %v6110_v22  ;;  %v6241_v34 = vsub.f32 %v7566_v7, %v6110_v22  ;;  %v2130_v38 = vmul.f32 %v6215_v35, %v6215_v35  ;;  %v7570_v63 = vld [vmem:[#allocation43_spill] sm:$0xff] }
 0x2d6   :  { %7563 = vst [vmem:[#allocation21_spill] sm:$0xff] %v6229_v54  ;;  %v2254_v52 = vadd.f32 %v2253_v1, %v2125_v0  ;;  %v2260_v50 = vadd.f32 %v2129_v16, %v2128_v62  ;;  %v6247_v47 = vsub.f32 %v7568_v53, %v6161_v46  ;;  %v2256_v26 = vsel %vm1790_vm0, %v2127_v5, 0.0  ;;  %v7572_v22 = vld [vmem:[#allocation35_spill] sm:$0xff]  ;;  %v7574_v1 = vld [vmem:[#allocation37_spill] sm:$0xff]  ;;  %v7576_v5 = vld [vmem:[#allocation68_spill] sm:$0xff] }
 0x2d7   :  { %7565 = vst [vmem:[#allocation66_spill] sm:$0xff] %v6237_v17  ;;  %7567 = vst [vmem:[#allocation67_spill] sm:$0xff] %v6241_v34  ;;  %2249 = vadd.xlane.f32.xlu0 %v2248_v9  ;;  %v2131_v19 = vmul.f32 %v6221_v6, %v6221_v6  ;;  %v6254_v56 = vsub.f32 %v7570_v63, %v6161_v46  ;;  %v6258_v7 = vsub.f32 %v7572_v22, %v6161_v46  ;;  %v7578_v63 = vld [vmem:[#allocation69_spill] sm:$0xff] }
 0x2d8   :  { %7569 = vst [vmem:[#allocation42_spill] sm:$0xff] %v6247_v47  ;;  %v2255_v0 = vadd.f32 %v2254_v52, %v2126_v61  ;;  %v2134_v62 = vmul.f32 %v6229_v54, %v6229_v54  ;;  %v2261_v53 = vadd.f32 %v2260_v50, %v2130_v38  ;;  %v6264_v16 = vsub.f32 %v7574_v1, %v6161_v46 }
 0x2d9   :  { %7571 = vst [vmem:[#allocation43_spill] sm:$0xff] %v6254_v56  ;;  %7573 = vst [vmem:[#allocation35_spill] sm:$0xff] %v6258_v7  ;;  %v6268_v9 = vsub.f32 %v7576_v5, %v6161_v46  ;;  %v6272_v6 = vsub.f32 %v7578_v63, %v6161_v46  ;;  %v2135_v22 = vmul.f32 %v6247_v47, %v6247_v47  ;;  %v7580_v5 = vld [vmem:[#allocation22_spill] sm:$0xff]  ;;  %v7582_v47 = vld [vmem:[#allocation44_spill] sm:$0xff] }
 0x2da   :  { %7575 = vst [vmem:[#allocation37_spill] sm:$0xff] %v6264_v16  ;;  %v2136_v61 = vmul.f32 %v6254_v56, %v6254_v56  ;;  %v2257_v52 = vadd.f32 %v2256_v26, %v2255_v0  ;;  %v2132_v38 = vmul.f32 %v6237_v17, %v6237_v17  ;;  %v2133_v50 = vmul.f32 %v6241_v34, %v6241_v34  ;;  %v7584_v56 = vld [vmem:[#allocation45_spill] sm:$0xff] }
 0x2db   :  { %7577 = vst [vmem:[#allocation68_spill] sm:$0xff] %v6268_v9  ;;  %7579 = vst [vmem:[#allocation69_spill] sm:$0xff] %v6272_v6  ;;  %v2262_v1 = vadd.f32 %v2261_v53, %v2131_v19  ;;  %v6284_v54 = vsub.f32 %v7580_v5, %v6161_v46  ;;  %v2137_v63 = vmul.f32 %v6258_v7, %v6258_v7  ;;  %v2265_v0 = vsel %vm1790_vm0, %v2134_v62, 0.0  ;;  %v7586_v19 = vld [vmem:[#allocation38_spill] sm:$0xff]  ;;  %v7588_v62 = vld [vmem:[#allocation39_spill] sm:$0xff]  ;;  %v1920_v5 = vpop.xlane.xlu0 %1919 }
 0x2dc   :  { %v2269_v35 = vadd.f32 %v2136_v61, %v2135_v22  ;;  %v6290_v8 = vsub.f32 %v7582_v47, %v6164_v33  ;;  %2258 = vadd.xlane.f32.xlu1 %v2257_v52  ;;  %v6295_v34 = vsub.f32 %v7584_v56, %v6164_v33  ;;  %v6299_v46 = vsub.f32 %v7586_v19, %v6164_v33 }
 0x2dd   :  { %7581 = vst [vmem:[#allocation22_spill] sm:$0xff] %v6284_v54  ;;  %v2263_v26 = vadd.f32 %v2262_v1, %v2132_v38  ;;  %v2138_v53 = vmul.f32 %v6264_v16, %v6264_v16  ;;  %v2139_v22 = vmul.f32 %v6268_v9, %v6268_v9  ;;  %v2140_v47 = vmul.f32 %v6272_v6, %v6272_v6  ;;  %v7590_v16 = vld [vmem:[#allocation70_spill] sm:$0xff] }
 0x2de   :  { %7583 = vst [vmem:[#allocation44_spill] sm:$0xff] %v6290_v8  ;;  %7585 = vst [vmem:[#allocation45_spill] sm:$0xff] %v6295_v34  ;;  %v2270_v61 = vadd.f32 %v2269_v35, %v2137_v63  ;;  %v6309_v38 = vsub.f32 %v7588_v62, %v6164_v33  ;;  %v2142_v56 = vmul.f32 %v6290_v8, %v6290_v8  ;;  %v7592_v35 = vld [vmem:[#allocation71_spill] sm:$0xff] }
 0x2df   :  { %7587 = vst [vmem:[#allocation38_spill] sm:$0xff] %v6299_v46  ;;  %v2264_v52 = vadd.f32 %v2263_v26, %v2133_v50  ;;  %v2143_v1 = vmul.f32 %v6295_v34, %v6295_v34  ;;  %v2141_v19 = vmul.f32 %v6284_v54, %v6284_v54  ;;  %v6319_v6 = vsub.f32 %v7590_v16, %v6164_v33  ;;  %v7597_v16 = vld [vmem:[#allocation47_spill] sm:$0xff] }
 0x2e0   :  { %7589 = vst [vmem:[#allocation39_spill] sm:$0xff] %v6309_v38  ;;  %v2271_v9 = vadd.f32 %v2270_v61, %v2138_v53  ;;  %v6323_v50 = vsub.f32 %v7592_v35, %v6164_v33  ;;  %v6327_v26 = vsub.f32 %v5807_v45, %v6164_v33  ;;  %v2144_v62 = vmul.f32 %v6299_v46, %v6299_v46  ;;  %v7595_v53 = vld [vmem:[#allocation46_spill] sm:$0xff]  ;;  %v7599_v35 = vld [vmem:[#allocation57_spill] sm:$0xff] }
 0x2e1   :  { %7591 = vst [vmem:[#allocation70_spill] sm:$0xff] %v6319_v6  ;;  %v2266_v63 = vadd.f32 %v2265_v0, %v2264_v52  ;;  %v2278_v34 = vadd.f32 %v2143_v1, %v2142_v56  ;;  %v6333_v61 = vsub.f32 %v7595_v53, %v6209_v25  ;;  %v6337_v54 = vsub.f32 %v7597_v16, %v6209_v25 }
 0x2e2   :  { %7593 = vst [vmem:[#allocation71_spill] sm:$0xff] %v6323_v50  ;;  %7594 = vst [vmem:[#allocation77_spill] sm:$0xff] %v6327_v26  ;;  %v2272_v8 = vadd.f32 %v2271_v9, %v2139_v22  ;;  %v6341_v0 = vsub.f32 %v7599_v35, %v6209_v25  ;;  %v1944_v52 = vmul.f32 0.0012755102, %v1920_v5  ;;  %v2145_v45 = vmul.f32 %v6309_v38, %v6309_v38  ;;  %v7601_v5 = vld [vmem:[#allocation58_spill] sm:$0xff] }
 0x2e3   :  { %7596 = vst [vmem:[#allocation46_spill] sm:$0xff] %v6333_v61  ;;  %7598 = vst [vmem:[#allocation47_spill] sm:$0xff] %v6337_v54  ;;  %2267 = vadd.xlane.f32.xlu0 %v2266_v63  ;;  %v2279_v33 = vadd.f32 %v2278_v34, %v2144_v62  ;;  %v2274_v9 = vsel %vm1790_vm0, %v2141_v19, 0.0  ;;  %v2146_v22 = vmul.f32 %v6319_v6, %v6319_v6  ;;  %v7603_v19 = vld [vmem:[#allocation72_spill] sm:$0xff] }
 0x2e4   :  { %7600 = vst [vmem:[#allocation57_spill] sm:$0xff] %v6341_v0  ;;  %v2273_v56 = vadd.f32 %v2272_v8, %v2140_v47  ;;  %v2149_v1 = vmul.f32 %v6333_v61, %v6333_v61  ;;  %v2147_v53 = vmul.f32 %v6323_v50, %v6323_v50  ;;  %v6354_v63 = vsub.f32 %v7601_v5, %v6209_v25  ;;  %v7607_v5 = vld [vmem:[#allocation49_spill] sm:$0xff] }
 0x2e5   :  { %v2280_v16 = vadd.f32 %v2279_v33, %v2145_v45  ;;  %v2150_v34 = vmul.f32 %v6337_v54, %v6337_v54  ;;  %v2148_v47 = vmul.f32 %v6327_v26, %v6327_v26  ;;  %v6362_v62 = vsub.f32 %v7603_v19, %v6209_v25  ;;  %v7605_v33 = vld [vmem:[#allocation48_spill] sm:$0xff] }
 0x2e6   :  { %7602 = vst [vmem:[#allocation58_spill] sm:$0xff] %v6354_v63  ;;  %v2275_v8 = vadd.f32 %v2274_v9, %v2273_v56  ;;  %v2151_v35 = vmul.f32 %v6341_v0, %v6341_v0  ;;  %v6367_v50 = vsub.f32 %v7605_v33, %v1944_v52  ;;  %v6370_v6 = vsub.f32 %v7607_v5, %v1944_v52  ;;  %v7610_v9 = vld [vmem:[#allocation59_spill] sm:$0xff] }
 0x2e7   :  { %7604 = vst [vmem:[#allocation72_spill] sm:$0xff] %v6362_v62  ;;  %v2281_v61 = vadd.f32 %v2280_v16, %v2146_v22  ;;  %v2287_v45 = vadd.f32 %v2150_v34, %v2149_v1  ;;  %v6374_v56 = vsub.f32 %v5817_v41, %v6209_v25  ;;  %v6377_v54 = vsub.f32 %v7610_v9, %v1944_v52  ;;  %v7613_v34 = vld [vmem:[#allocation60_spill] sm:$0xff] }
 0x2e8   :  { %7606 = vst [vmem:[#allocation48_spill] sm:$0xff] %v6367_v50  ;;  %7608 = vst [vmem:[#allocation49_spill] sm:$0xff] %v6370_v6  ;;  %2276 = vadd.xlane.f32.xlu1 %v2275_v8  ;;  %v6381_v0 = vsub.f32 %v7477_v48, %v6209_v25  ;;  %v2152_v22 = vmul.f32 %v6354_v63, %v6354_v63  ;;  %v2283_v16 = vsel %vm1790_vm0, %v2148_v47, 0.0 }
 0x2e9   :  { %7609 = vst [vmem:[#allocation78_spill] sm:$0xff] %v6374_v56  ;;  %7611 = vst [vmem:[#allocation59_spill] sm:$0xff] %v6377_v54  ;;  %v2282_v19 = vadd.f32 %v2281_v61, %v2147_v53  ;;  %v2288_v1 = vadd.f32 %v2287_v45, %v2151_v35  ;;  %v6387_v8 = vsub.f32 %v7613_v34, %v1944_v52  ;;  %v7615_v35 = vld [vmem:[#allocation73_spill] sm:$0xff] }
 0x2ea   :  { %7612 = vst [vmem:[#allocation79_spill] sm:$0xff] %v6381_v0  ;;  %v2156_v41 = vmul.f32 %v6367_v50, %v6367_v50  ;;  %v2157_v33 = vmul.f32 %v6370_v6, %v6370_v6  ;;  %v2153_v48 = vmul.f32 %v6362_v62, %v6362_v62  ;;  %v2155_v53 = vmul.f32 %v6374_v56, %v6374_v56  ;;  %v7639_v56 = vld [vmem:[#allocation7_spill] sm:$0xff] }
 0x2eb   :  { %7614 = vst [vmem:[#allocation60_spill] sm:$0xff] %v6387_v8  ;;  %v2284_v61 = vadd.f32 %v2283_v16, %v2282_v19  ;;  %v2289_v25 = vadd.f32 %v2288_v1, %v2152_v22  ;;  %v6398_v45 = vsub.f32 %v7615_v35, %v1944_v52  ;;  %v2158_v47 = vmul.f32 %v6377_v54, %v6377_v54  ;;  %v7638_v54 = vld [vmem:[#allocation4_spill] sm:$0xff]  ;;  %v7640_v62 = vld [vmem:[#allocation3_spill] sm:$0xff] }
 0x2ec   :  { %v2296_v5 = vadd.f32 %v2157_v33, %v2156_v41  ;;  %v2154_v9 = vmul.f32 %v6381_v0, %v6381_v0  ;;  %v6405_v19 = vsub.f32 %v5824_v27, %v1944_v52  ;;  %v6408_v22 = vsub.f32 %v7480_v44, %v1944_v52 }
 0x2ed   :  { %7616 = vst [vmem:[#allocation73_spill] sm:$0xff] %v6398_v45  ;;  %2285 = vadd.xlane.f32.xlu0 %v2284_v61  ;;  %v2290_v34 = vadd.f32 %v2289_v25, %v2153_v48  ;;  %v2159_v1 = vmul.f32 %v6387_v8, %v6387_v8  ;;  %v2292_v6 = vsel %vm1790_vm0, %v2155_v53, 0.0  ;;  %v2160_v41 = vmul.f32 %v6398_v45, %v6398_v45  ;;  %v2586_v53 = vld [vmem:[%s7126_s3] sm:$0xff]  ;;  %v7637_v45 = vld [vmem:[#allocation33_spill] sm:$0xff] }
 0x2ee   :  { %7617 = vst [vmem:[#allocation80_spill] sm:$0xff] %v6405_v19  ;;  %7618 = vst [vmem:[#allocation81_spill] sm:$0xff] %v6408_v22  ;;  %v2297_v16 = vadd.f32 %v2296_v5, %v2158_v47  ;;  %v2162_v48 = vmul.f32 %v6405_v19, %v6405_v19  ;;  %v2161_v27 = vmul.f32 %v6408_v22, %v6408_v22  ;;  %v2590_v5 = vld [vmem:[%s7126_s3 + $0x20] sm:$0xff]  ;;  %v7636_v19 = vld [vmem:[#allocation25_spill] sm:$0xff] }
 0x2ef   :  { %v2291_v35 = vadd.f32 %v2290_v34, %v2154_v9  ;;  %v2587_v9 = vld [vmem:[%s7126_s3 + $0x8] sm:$0xff]  ;;  %v2592_v34 = vld [vmem:[%s7126_s3 + $0x30] sm:$0xff] }
 0x2f0   :  { %v2298_v33 = vadd.f32 %v2297_v16, %v2159_v1  ;;  %v2301_v25 = vsel %vm1790_vm0, %v2162_v48, 0.0  ;;  %v1929_v1 = vpop.xlane.xlu1 %1928  ;;  %v2589_v16 = vld [vmem:[%s7126_s3 + $0x18] sm:$0xff]  ;;  %v7621_v48 = vld [vmem:[#allocation51_spill] sm:$0xff] }
 0x2f1   :  { %v2293_v61 = vadd.f32 %v2292_v6, %v2291_v35  ;;  %v2588_v6 = vld [vmem:[%s7126_s3 + $0x10] sm:$0xff]  ;;  %v1945_v35 = vmul.f32 0.0012755102, %v1929_v1 }
 0x2f2   :  { %v2299_v44 = vadd.f32 %v2298_v33, %v2160_v41  ;;  %v2591_v41 = vld [vmem:[%s7126_s3 + $0x28] sm:$0xff]  ;;  %v7619_v33 = vld [vmem:[#allocation50_spill] sm:$0xff] }
 0x2f3   :  { %2294 = vadd.xlane.f32.xlu1 %v2293_v61  ;;  %v6442_v61 = vsub.f32 %v7619_v33, %v1945_v35  ;;  %v2599_v33 = vld [vmem:[%s7126_s3 + $0x68] sm:$0xff] }
 0x2f4   :  { %v2300_v52 = vadd.f32 %v2299_v44, %v2161_v27  ;;  %v6445_v27 = vsub.f32 %v7621_v48, %v1945_v35  ;;  %v2593_v44 = vld [vmem:[%s7126_s3 + $0x38] sm:$0xff]  ;;  %v7627_v48 = vld [vmem:[#allocation74_spill] sm:$0xff] }
 0x2f5   :  { %7620 = vst [vmem:[#allocation50_spill] sm:$0xff] %v6442_v61 }
 0x2f6   :  { %v2302_v47 = vadd.f32 %v2301_v25, %v2300_v52  ;;  %7622 = vst [vmem:[#allocation51_spill] sm:$0xff] %v6445_v27  ;;  %v2163_v52 = vmul.f32 %v6442_v61, %v6442_v61  ;;  %v2164_v25 = vmul.f32 %v6445_v27, %v6445_v27 }
 0x2f8   :  { %2303 = vadd.xlane.f32.xlu0 %v2302_v47  ;;  %v2595_v47 = vld [vmem:[%s7126_s3 + $0x48] sm:$0xff] }
 0x304   :  { %2604 = vperm.xlu1 %3071, %v2586_v53   ;;  %v7623_v53 = vld [vmem:[#allocation61_spill] sm:$0xff] }
 0x308   :  { %2614 = vperm.xlu1 %3071, %v2588_v6   ;;  %v6458_v6 = vsub.f32 %v7623_v53, %v1945_v35 }
 0x30a   :  { %7624 = vst [vmem:[#allocation61_spill] sm:$0xff] %v6458_v6 }
 0x30c   :  { %2624 = vperm.xlu1 %3071, %v2590_v5   ;;  %v2305_v5 = vadd.f32 %v2164_v25, %v2163_v52 }
 0x30e   :  { %2609 = vperm.xlu0 %3072, %v2587_v9   ;;  %v2597_v9 = vld [vmem:[%s7126_s3 + $0x58] sm:$0xff] }
 0x310   :  { %2634 = vperm.xlu1 %3071, %v2592_v34   ;;  %v7625_v34 = vld [vmem:[#allocation62_spill] sm:$0xff] }
 0x311   :  { %v6464_v1 = vsub.f32 %v7625_v34, %v1945_v35 }
 0x312   :  { %2619 = vperm.xlu0 %3072, %v2589_v16   ;;  %v2165_v16 = vmul.f32 %v6458_v6, %v6458_v6 }
 0x313   :  { %7626 = vst [vmem:[#allocation62_spill] sm:$0xff] %v6464_v1  ;;  %v2166_v52 = vmul.f32 %v6464_v1, %v6464_v1 }
 0x316   :  { %2629 = vperm.xlu0 %3072, %v2591_v41   ;;  %v2306_v41 = vadd.f32 %v2305_v5, %v2165_v16  ;;  %v7631_v5 = vld [vmem:[#allocation24_spill] sm:$0xff] }
 0x318   :  { %v2307_v25 = vadd.f32 %v2306_v41, %v2166_v52 }
 0x31a   :  { %2639 = vperm.xlu0 %3072, %v2593_v44   ;;  %v6472_v44 = vsub.f32 %v7627_v48, %v1945_v35 }
 0x31c   :  { %7628 = vst [vmem:[#allocation74_spill] sm:$0xff] %v6472_v44  ;;  %v2167_v34 = vmul.f32 %v6472_v44, %v6472_v44 }
 0x31e   :  { %2649 = vperm.xlu0 %3072, %v2595_v47   ;;  %v7629_v47 = vld [vmem:[#allocation10_spill] sm:$0xff]  ;;  %v2308_v16 = vadd.f32 %v2307_v25, %v2167_v34 }
 0x31f   :  { %v6477_v53 = vsub.f32 %v7629_v47, %v1945_v35 }
 0x321   :  { %7630 = vst [vmem:[#allocation10_spill] sm:$0xff] %v6477_v53  ;;  %v2168_v6 = vmul.f32 %v6477_v53, %v6477_v53 }
 0x322   :  { %2659 = vperm.xlu0 %3072, %v2597_v9   ;;  %v6482_v9 = vsub.f32 %v7631_v5, %v1945_v35  ;;  %v2594_v5 = vld [vmem:[%s7126_s3 + $0x40] sm:$0xff] }
 0x323   :  { %v2309_v27 = vadd.f32 %v2308_v16, %v2168_v6 }
 0x324   :  { %7632 = vst [vmem:[#allocation24_spill] sm:$0xff] %v6482_v9  ;;  %v2169_v48 = vmul.f32 %v6482_v9, %v6482_v9 }
 0x326   :  { %2669 = vperm.xlu0 %3072, %v2599_v33   ;;  %v2310_v41 = vsel %vm1790_vm0, %v2169_v48, 0.0 }
 0x327   :  { %v2311_v33 = vadd.f32 %v2310_v41, %v2309_v27  ;;  %v2362_v27 = vld [vmem:[%s7127_s2] sm:$0xff] }
 0x328   :  { %v2598_v41 = vld [vmem:[%s7126_s3 + $0x60] sm:$0xff] }
 0x334   :  { %2312 = vadd.xlane.f32.xlu1 %v2311_v33  ;;  %v2178_v52 = vpop.xlane.xlu0 %2177  ;;  %v2363_v33 = vld [vmem:[%s7127_s2 + $0x8] sm:$0xff] }
 0x335   :  { %v2314_v47 = vmul.f32 0.0012755102, %v2178_v52 }
 0x337   :  { %v2330_v1 = vadd.f32 1e-05, %v2314_v47 }
 0x338   :  { %v2187_v44 = vpop.xlane.xlu1 %2186 }
 0x339   :  { %3073 = vrsqrt.f32 %v2330_v1  ;;  %v2315_v61 = vmul.f32 0.0012755102, %v2187_v44  ;;  %v2596_v1 = vld [vmem:[%s7126_s3 + $0x50] sm:$0xff] }
 0x33b   :  { %v2331_v35 = vadd.f32 1e-05, %v2315_v61 }
 0x33d   :  { %3075 = vrsqrt.f32 %v2331_v35  ;;  %v2196_v25 = vpop.xlane.xlu0 %2195 }
 0x33e   :  { %v2316_v34 = vmul.f32 0.0012755102, %v2196_v25 }
 0x340   :  { %v2332_v9 = vadd.f32 1e-05, %v2316_v34  ;;  %v2364_v34 = vld [vmem:[%s7127_s2 + $0x10] sm:$0xff] }
 0x342   :  { %3077 = vrsqrt.f32 %v2332_v9 }
 0x344   :  { %v2205_v6 = vpop.xlane.xlu1 %2204 }
 0x345   :  { %2644 = vperm.xlu1 %3071, %v2594_v5   ;;  %v2317_v61 = vmul.f32 0.0012755102, %v2205_v6 }
 0x346   :  { %v3074_v44 = vpop.eup %3073 }
 0x347   :  { %v2333_v16 = vadd.f32 1e-05, %v2317_v61  ;;  %v2378_v48 = vmul.f32 %v3074_v44, %v2362_v27 }
 0x349   :  { %2654 = vperm.xlu1 %3071, %v2596_v1   ;;  %3079 = vrsqrt.f32 %v2333_v16  ;;  %v2214_v9 = vpop.xlane.xlu0 %2213  ;;  %2396 = vperm.xlu0 %3072, %v2378_v48   ;;  %v2365_v16 = vld [vmem:[%s7127_s2 + $0x18] sm:$0xff] }
 0x34a   :  { %v2318_v52 = vmul.f32 0.0012755102, %v2214_v9  ;;  %v3076_v47 = vpop.eup %3075 }
 0x34b   :  { %v2379_v25 = vmul.f32 %v3076_v47, %v2363_v33 }
 0x34c   :  { %v2334_v35 = vadd.f32 1e-05, %v2318_v52  ;;  %v2366_v52 = vld [vmem:[%s7127_s2 + $0x20] sm:$0xff] }
 0x34d   :  { %2664 = vperm.xlu1 %3071, %v2598_v41  }
 0x34e   :  { %3081 = vrsqrt.f32 %v2334_v35 }
 0x34f   :  { %v2223_v5 = vpop.xlane.xlu1 %2222  ;;  %v3078_v6 = vpop.eup %3077 }
 0x350   :  { %v2319_v27 = vmul.f32 0.0012755102, %v2223_v5  ;;  %v2380_v1 = vmul.f32 %v3078_v6, %v2364_v34  ;;  %v2367_v6 = vld [vmem:[%s7127_s2 + $0x28] sm:$0xff] }
 0x351   :  { %2401 = vperm.xlu1 %3071, %v2379_v25  }
 0x352   :  { %v2335_v61 = vadd.f32 1e-05, %v2319_v27 }
 0x354   :  { %3083 = vrsqrt.f32 %v2335_v61  ;;  %v2232_v44 = vpop.xlane.xlu0 %2231 }
 0x355   :  { %2406 = vperm.xlu1 %3071, %v2380_v1   ;;  %v2320_v48 = vmul.f32 0.0012755102, %v2232_v44 }
 0x356   :  { %v3080_v41 = vpop.eup %3079 }
 0x357   :  { %v2336_v9 = vadd.f32 1e-05, %v2320_v48  ;;  %v2381_v33 = vmul.f32 %v3080_v41, %v2365_v16  ;;  %v2368_v48 = vld [vmem:[%s7127_s2 + $0x30] sm:$0xff] }
 0x359   :  { %3085 = vrsqrt.f32 %v2336_v9  ;;  %2411 = vperm.xlu1 %3071, %v2381_v33  }
 0x35a   :  { %v2241_v47 = vpop.xlane.xlu1 %2240 }
 0x35b   :  { %v3082_v35 = vpop.eup %3081  ;;  %v2321_v25 = vmul.f32 0.0012755102, %v2241_v47 }
 0x35c   :  { %v2382_v34 = vmul.f32 %v3082_v35, %v2366_v52  ;;  %v2369_v35 = vld [vmem:[%s7127_s2 + $0x38] sm:$0xff] }
 0x35d   :  { %v2337_v5 = vadd.f32 1e-05, %v2321_v25 }
 0x35e   :  { %2416 = vperm.xlu1 %3071, %v2382_v34  }
 0x35f   :  { %3087 = vrsqrt.f32 %v2337_v5 }
 0x360   :  { %v2250_v27 = vpop.xlane.xlu0 %2249 }
 0x361   :  { %v3084_v1 = vpop.eup %3083  ;;  %v2322_v61 = vmul.f32 0.0012755102, %v2250_v27 }
 0x362   :  { %v2383_v44 = vmul.f32 %v3084_v1, %v2367_v6 }
 0x363   :  { %v2338_v16 = vadd.f32 1e-05, %v2322_v61  ;;  %v2370_v61 = vld [vmem:[%s7127_s2 + $0x40] sm:$0xff] }
 0x364   :  { %2421 = vperm.xlu1 %3071, %v2383_v44  }
 0x365   :  { %3089 = vrsqrt.f32 %v2338_v16  ;;  %v2259_v41 = vpop.xlane.xlu1 %2258 }
 0x366   :  { %v3086_v9 = vpop.eup %3085  ;;  %v2323_v33 = vmul.f32 0.0012755102, %v2259_v41 }
 0x367   :  { %v2384_v52 = vmul.f32 %v3086_v9, %v2368_v48 }
 0x368   :  { %v2339_v47 = vadd.f32 1e-05, %v2323_v33  ;;  %v2371_v33 = vld [vmem:[%s7127_s2 + $0x48] sm:$0xff] }
 0x369   :  { %2426 = vperm.xlu1 %3071, %v2384_v52  }
 0x36a   :  { %3091 = vrsqrt.f32 %v2339_v47 }
 0x36c   :  { %v2268_v25 = vpop.xlane.xlu0 %2267  ;;  %v3088_v34 = vpop.eup %3087 }
 0x36d   :  { %v2324_v5 = vmul.f32 0.0012755102, %v2268_v25  ;;  %v2385_v6 = vmul.f32 %v3088_v34, %v2369_v35 }
 0x36f   :  { %v2340_v27 = vadd.f32 1e-05, %v2324_v5  ;;  %2431 = vperm.xlu1 %3071, %v2385_v6   ;;  %v2372_v5 = vld [vmem:[%s7127_s2 + $0x50] sm:$0xff] }
 0x371   :  { %3093 = vrsqrt.f32 %v2340_v27  ;;  %v2277_v1 = vpop.xlane.xlu1 %2276 }
 0x372   :  { %v2325_v44 = vmul.f32 0.0012755102, %v2277_v1  ;;  %v3090_v16 = vpop.eup %3089 }
 0x373   :  { %v2386_v41 = vmul.f32 %v3090_v16, %v2370_v61  ;;  %v2373_v16 = vld [vmem:[%s7127_s2 + $0x58] sm:$0xff] }
 0x374   :  { %v2341_v48 = vadd.f32 1e-05, %v2325_v44 }
 0x375   :  { %2436 = vperm.xlu1 %3071, %v2386_v41  }
 0x376   :  { %3095 = vrsqrt.f32 %v2341_v48  ;;  %v2286_v9 = vpop.xlane.xlu0 %2285 }
 0x377   :  { %v2326_v52 = vmul.f32 0.0012755102, %v2286_v9  ;;  %v3092_v47 = vpop.eup %3091 }
 0x378   :  { %v2387_v25 = vmul.f32 %v3092_v47, %v2371_v33 }
 0x379   :  { %v2342_v35 = vadd.f32 1e-05, %v2326_v52  ;;  %v2374_v52 = vld [vmem:[%s7127_s2 + $0x60] sm:$0xff] }
 0x37a   :  { %2441 = vperm.xlu0 %3072, %v2387_v25   ;;  %v2375_v25 = vld [vmem:[%s7127_s2 + $0x68] sm:$0xff] }
 0x37b   :  { %3097 = vrsqrt.f32 %v2342_v35 }
 0x37c   :  { %v2295_v34 = vpop.xlane.xlu1 %2294 }
 0x37d   :  { %v2327_v6 = vmul.f32 0.0012755102, %v2295_v34 }
 0x37e   :  { %v3094_v27 = vpop.eup %3093 }
 0x37f   :  { %v2343_v1 = vadd.f32 1e-05, %v2327_v6  ;;  %v2388_v61 = vmul.f32 %v3094_v27, %v2372_v5  ;;  %v2376_v6 = vld [vmem:[%s7127_s2 + $0x70] sm:$0xff] }
 0x381   :  { %3099 = vrsqrt.f32 %v2343_v1  ;;  %v2304_v44 = vpop.xlane.xlu0 %2303  ;;  %2446 = vperm.xlu1 %3071, %v2388_v61   ;;  %v2600_v61 = vld [vmem:[%s7126_s3 + $0x70] sm:$0xff] }
 0x382   :  { %v2328_v48 = vmul.f32 0.0012755102, %v2304_v44 }
 0x383   :  { %v3096_v41 = vpop.eup %3095 }
 0x384   :  { %v2344_v9 = vadd.f32 1e-05, %v2328_v48  ;;  %v2389_v33 = vmul.f32 %v3096_v41, %v2373_v16  ;;  %v2605_v48 = vpop.permute.xlu1 %2604 }
 0x386   :  { %3101 = vrsqrt.f32 %v2344_v9  ;;  %2451 = vperm.xlu0 %3072, %v2389_v33  }
 0x388   :  { %v3098_v47 = vpop.eup %3097  ;;  %v6550_v9 = vpop.permute.xlu1 %2614 }
 0x389   :  { %v2390_v35 = vmul.f32 %v3098_v47, %v2374_v52  ;;  %v2610_v44 = vpop.permute.xlu0 %2609 }
 0x38b   :  { %2456 = vperm.xlu1 %3071, %v2390_v35  }
 0x38c   :  { %v6554_v52 = vpop.permute.xlu1 %2624 }
 0x38d   :  { %v6546_v16 = vpop.permute.xlu0 %2619 }
 0x38e   :  { %v3100_v34 = vpop.eup %3099 }
 0x38f   :  { %v2391_v5 = vmul.f32 %v3100_v34, %v2375_v25 }
 0x390   :  { %v6558_v35 = vpop.permute.xlu1 %2634 }
 0x391   :  { %2461 = vperm.xlu0 %3072, %v2391_v5   ;;  %v6548_v41 = vpop.permute.xlu0 %2629 }
 0x393   :  { %v3102_v27 = vpop.eup %3101 }
 0x394   :  { %v2392_v1 = vmul.f32 %v3102_v27, %v2376_v6 }
 0x395   :  { %v6552_v33 = vpop.permute.xlu0 %2639 }
 0x396   :  { %2466 = vperm.xlu1 %3071, %v2392_v1  }
 0x399   :  { %v6556_v47 = vpop.permute.xlu0 %2649 }
 0x39a   :  { %2674 = vperm.xlu1 %3071, %v2600_v61  }
 0x39d   :  { %v6560_v25 = vpop.permute.xlu0 %2659 }
 0x39e   :  { %7633 = vst [vmem:[#allocation82_spill] sm:$0xff] %v6560_v25 }
 0x3a1   :  { %v6562_v6 = vpop.permute.xlu0 %2669 }
 0x3a2   :  { %7634 = vst [vmem:[#allocation83_spill] sm:$0xff] %v6562_v6  ;;  %v7642_v6 = vld [vmem:[#allocation2_spill] sm:$0xff] }
 0x3bd   :  { %v2313_v34 = vpop.xlane.xlu1 %2312 }
 0x3be   :  { %v2329_v5 = vmul.f32 0.0012755102, %v2313_v34  ;;  %v7641_v34 = vld [vmem:[#allocation52_spill] sm:$0xff] }
 0x3c0   :  { %v2345_v27 = vadd.f32 1e-05, %v2329_v5 }
 0x3c1   :  { %v6564_v1 = vpop.permute.xlu1 %2644 }
 0x3c2   :  { %3103 = vrsqrt.f32 %v2345_v27 }
 0x3c4   :  { %v2397_v53 = vpop.permute.xlu0 %2396 }
 0x3c5   :  { %v6566_v61 = vpop.permute.xlu1 %2654  ;;  %v2474_v22 = vmul.f32 %v2397_v53, %v7636_v19  ;;  %v2475_v8 = vmul.f32 %v2397_v53, %v7637_v45  ;;  %v2476_v50 = vmul.f32 %v2397_v53, %v7638_v54  ;;  %v2477_v0 = vmul.f32 %v2397_v53, %v7639_v56  ;;  %v2377_v54 = vld [vmem:[%s7127_s2 + $0x78] sm:$0xff] }
 0x3c6   :  { %7635 = vst [vmem:[#allocation84_spill] sm:$0xff] %v6566_v61  ;;  %v2478_v63 = vmul.f32 %v2397_v53, %v7640_v62  ;;  %v2479_v26 = vmul.f32 %v2397_v53, %v7641_v34  ;;  %v2480_v5 = vmul.f32 %v2397_v53, %v7642_v6 }
 0x3c7   :  { %v2682_v38 = vadd.f32 %v2605_v48, %v2474_v22  ;;  %v2683_v46 = vadd.f32 %v2605_v48, %v2475_v8  ;;  %v2684_v27 = vadd.f32 %v2605_v48, %v2476_v50  ;;  %v2685_v25 = vadd.f32 %v2605_v48, %v2477_v0  ;;  %v7645_v8 = vld [vmem:[#allocation6_spill] sm:$0xff]  ;;  %v7646_v22 = vld [vmem:[#allocation63_spill] sm:$0xff] }
 0x3c8   :  { %v2686_v61 = vadd.f32 %v2605_v48, %v2478_v63  ;;  %v2687_v19 = vadd.f32 %v2605_v48, %v2479_v26  ;;  %v2688_v17 = vadd.f32 %v2605_v48, %v2480_v5  ;;  %v7644_v26 = vld [vmem:[#allocation5_spill] sm:$0xff]  ;;  %v7647_v48 = vld [vmem:[#allocation54_spill] sm:$0xff] }
 0x3c9   :  { %v6575_v7 = vpop.permute.xlu1 %2664  ;;  %2794 = vst [vmem:[%s7128_s4] sm:$0xff] %v2682_v38  ;;  %2795 = vst [vmem:[%s7128_s4 + $0x8] sm:$0xff] %v2683_v46  ;;  %v7643_v38 = vld [vmem:[#allocation53_spill] sm:$0xff] }
 0x3ca   :  { %2796 = vst [vmem:[%s7128_s4 + $0x10] sm:$0xff] %v2684_v27  ;;  %2797 = vst [vmem:[%s7128_s4 + $0x18] sm:$0xff] %v2685_v25 }
 0x3cb   :  { %2798 = vst [vmem:[%s7128_s4 + $0x20] sm:$0xff] %v2686_v61  ;;  %2799 = vst [vmem:[%s7128_s4 + $0x28] sm:$0xff] %v2687_v19 }
 0x3cc   :  { %2800 = vst.msk [vmem:[%s7128_s4 + $0x30] sm:$0xff] %vm1790_vm0, %v2688_v17 }
 0x3cd   :  { %v2402_v46 = vpop.permute.xlu1 %2401 }
 0x3ce   :  { %v2481_v50 = vmul.f32 %v2402_v46, %v7643_v38  ;;  %v2482_v0 = vmul.f32 %v2402_v46, %v7644_v26  ;;  %v2483_v63 = vmul.f32 %v2402_v46, %v5871_v42  ;;  %v2484_v62 = vmul.f32 %v2402_v46, %v5880_v31  ;;  %v7648_v42 = vld [vmem:[#allocation55_spill] sm:$0xff] }
 0x3cf   :  { %v3104_v56 = vpop.eup %3103  ;;  %v2485_v45 = vmul.f32 %v2402_v46, %v7645_v8  ;;  %v2486_v53 = vmul.f32 %v2402_v46, %v7646_v22  ;;  %v2487_v17 = vmul.f32 %v2402_v46, %v7647_v48 }
 0x3d0   :  { %v2393_v25 = vmul.f32 %v3104_v56, %v2377_v54  ;;  %v2689_v6 = vadd.f32 %v2610_v44, %v2481_v50  ;;  %v2690_v61 = vadd.f32 %v2610_v44, %v2482_v0  ;;  %v2691_v34 = vadd.f32 %v2610_v44, %v2483_v63  ;;  %v7649_v54 = vld [vmem:[#allocation8_spill] sm:$0xff]  ;;  %v2601_v0 = vld [vmem:[%s7126_s3 + $0x78] sm:$0xff] }
 0x3d1   :  { %v2692_v5 = vadd.f32 %v2610_v44, %v2484_v62  ;;  %v2693_v27 = vadd.f32 %v2610_v44, %v2485_v45  ;;  %v2694_v19 = vadd.f32 %v2610_v44, %v2486_v53  ;;  %v2695_v38 = vadd.f32 %v2610_v44, %v2487_v17  ;;  %v2407_v26 = vpop.permute.xlu1 %2406  ;;  %v7650_v63 = vld [vmem:[#allocation9_spill] sm:$0xff] }
 0x3d2   :  { %2471 = vperm.xlu0 %3072, %v2393_v25   ;;  %2801 = vst [vmem:[%s7128_s4 + $0x38] sm:$0xff] %v2689_v6  ;;  %2802 = vst [vmem:[%s7128_s4 + $0x40] sm:$0xff] %v2690_v61  ;;  %v2488_v31 = vmul.f32 %v2407_v26, %v7648_v42  ;;  %v2489_v46 = vmul.f32 %v2407_v26, %v7649_v54  ;;  %v2490_v44 = vmul.f32 %v2407_v26, %v5905_v59 }
 0x3d3   :  { %2803 = vst [vmem:[%s7128_s4 + $0x48] sm:$0xff] %v2691_v34  ;;  %v2491_v50 = vmul.f32 %v2407_v26, %v5916_v40  ;;  %2804 = vst [vmem:[%s7128_s4 + $0x50] sm:$0xff] %v2692_v5  ;;  %v2492_v59 = vmul.f32 %v2407_v26, %v5923_v10  ;;  %v2493_v40 = vmul.f32 %v2407_v26, %v5934_v29  ;;  %v7651_v29 = vld [vmem:[#allocation56_spill] sm:$0xff] }
 0x3d4   :  { %2805 = vst [vmem:[%s7128_s4 + $0x58] sm:$0xff] %v2693_v27  ;;  %2806 = vst [vmem:[%s7128_s4 + $0x60] sm:$0xff] %v2694_v19  ;;  %v2494_v62 = vmul.f32 %v2407_v26, %v7650_v63  ;;  %v2696_v56 = vadd.f32 %v6550_v9, %v2488_v31  ;;  %v2697_v8 = vadd.f32 %v6550_v9, %v2489_v46 }
 0x3d5   :  { %2807 = vst.msk [vmem:[%s7128_s4 + $0x68] sm:$0xff] %vm1790_vm0, %v2695_v38  ;;  %v2698_v45 = vadd.f32 %v6550_v9, %v2490_v44  ;;  %v2699_v22 = vadd.f32 %v6550_v9, %v2491_v50  ;;  %v2700_v53 = vadd.f32 %v6550_v9, %v2492_v59  ;;  %v2701_v48 = vadd.f32 %v6550_v9, %v2493_v40  ;;  %v2412_v25 = vpop.permute.xlu1 %2411  ;;  %v7655_v44 = vld [vmem:[#allocation14_spill] sm:$0xff] }
 0x3d6   :  { %v2702_v17 = vadd.f32 %v6550_v9, %v2494_v62  ;;  %2679 = vperm.xlu0 %3072, %v2601_v0   ;;  %2808 = vst [vmem:[%s7128_s4 + $0x70] sm:$0xff] %v2696_v56  ;;  %2809 = vst [vmem:[%s7128_s4 + $0x78] sm:$0xff] %v2697_v8  ;;  %v2495_v10 = vmul.f32 %v2412_v25, %v7651_v29  ;;  %v7652_v9 = vld [vmem:[#allocation11_spill] sm:$0xff]  ;;  %v2497_v61 = vmul.f32 %v2412_v25, %v5940_v39 }
 0x3d7   :  { %2810 = vst [vmem:[%s7128_s4 + $0x80] sm:$0xff] %v2698_v45  ;;  %2811 = vst [vmem:[%s7128_s4 + $0x88] sm:$0xff] %v2699_v22  ;;  %v2496_v6 = vmul.f32 %v2412_v25, %v7652_v9  ;;  %v2498_v34 = vmul.f32 %v2412_v25, %v5954_v24  ;;  %v2499_v5 = vmul.f32 %v2412_v25, %v5962_v43  ;;  %v7653_v43 = vld [vmem:[#allocation12_spill] sm:$0xff]  ;;  %v7657_v29 = vld [vmem:[#allocation15_spill] sm:$0xff] }
 0x3d8   :  { %2812 = vst [vmem:[%s7128_s4 + $0x90] sm:$0xff] %v2700_v53  ;;  %2813 = vst [vmem:[%s7128_s4 + $0x98] sm:$0xff] %v2701_v48  ;;  %v2500_v27 = vmul.f32 %v2412_v25, %v5974_v18  ;;  %v2501_v39 = vmul.f32 %v2412_v25, %v5957_v13  ;;  %v2703_v24 = vadd.f32 %v6546_v16, %v2495_v10  ;;  %v7658_v9 = vld [vmem:[#allocation29_spill] sm:$0xff] }
 0x3d9   :  { %2814 = vst.msk [vmem:[%s7128_s4 + $0xa0] sm:$0xff] %vm1790_vm0, %v2702_v17  ;;  %v2704_v19 = vadd.f32 %v6546_v16, %v2496_v6  ;;  %v2705_v38 = vadd.f32 %v6546_v16, %v2497_v61  ;;  %v2706_v26 = vadd.f32 %v6546_v16, %v2498_v34  ;;  %v2707_v42 = vadd.f32 %v6546_v16, %v2499_v5  ;;  %v2417_v13 = vpop.permute.xlu1 %2416  ;;  %v7656_v17 = vld [vmem:[#allocation13_spill] sm:$0xff] }
 0x3da   :  { %v2708_v31 = vadd.f32 %v6546_v16, %v2500_v27  ;;  %v2709_v54 = vadd.f32 %v6546_v16, %v2501_v39  ;;  %2815 = vst [vmem:[%s7128_s4 + $0xa8] sm:$0xff] %v2703_v24  ;;  %v2502_v18 = vmul.f32 %v2417_v13, %v7653_v43  ;;  %v7654_v16 = vld [vmem:[#allocation27_spill] sm:$0xff]  ;;  %v2504_v50 = vmul.f32 %v2417_v13, %v7655_v44  ;;  %v7660_v24 = vld [vmem:[#allocation20_spill] sm:$0xff] }
 0x3db   :  { %2816 = vst [vmem:[%s7128_s4 + $0xb0] sm:$0xff] %v2704_v19  ;;  %2817 = vst [vmem:[%s7128_s4 + $0xb8] sm:$0xff] %v2705_v38  ;;  %v2503_v46 = vmul.f32 %v2417_v13, %v7654_v16  ;;  %v2505_v0 = vmul.f32 %v2417_v13, %v5986_v21  ;;  %v2506_v59 = vmul.f32 %v2417_v13, %v5993_v12  ;;  %v7661_v38 = vld [vmem:[#allocation16_spill] sm:$0xff] }
 0x3dc   :  { %2818 = vst [vmem:[%s7128_s4 + $0xc0] sm:$0xff] %v2706_v26  ;;  %2819 = vst [vmem:[%s7128_s4 + $0xc8] sm:$0xff] %v2707_v42  ;;  %v2507_v40 = vmul.f32 %v2417_v13, %v6007_v32  ;;  %v2508_v63 = vmul.f32 %v2417_v13, %v5996_v2  ;;  %v2710_v62 = vadd.f32 %v6554_v52, %v2502_v18 }
 0x3dd   :  { %2820 = vst [vmem:[%s7128_s4 + $0xd0] sm:$0xff] %v2708_v31  ;;  %2821 = vst.msk [vmem:[%s7128_s4 + $0xd8] sm:$0xff] %vm1790_vm0, %v2709_v54  ;;  %v2711_v56 = vadd.f32 %v6554_v52, %v2503_v46  ;;  %v2712_v8 = vadd.f32 %v6554_v52, %v2504_v50  ;;  %v2713_v45 = vadd.f32 %v6554_v52, %v2505_v0 }
 0x3de   :  { %v2714_v22 = vadd.f32 %v6554_v52, %v2506_v59  ;;  %v2715_v53 = vadd.f32 %v6554_v52, %v2507_v40  ;;  %v2716_v21 = vadd.f32 %v6554_v52, %v2508_v63  ;;  %2822 = vst [vmem:[%s7128_s4 + $0xe0] sm:$0xff] %v2710_v62 }
 0x3df   :  { %2823 = vst [vmem:[%s7128_s4 + $0xe8] sm:$0xff] %v2711_v56  ;;  %2824 = vst [vmem:[%s7128_s4 + $0xf0] sm:$0xff] %v2712_v8  ;;  %v2422_v12 = vpop.permute.xlu1 %2421 }
 0x3e0   :  { %2825 = vst [vmem:[%s7128_s4 + $0xf8] sm:$0xff] %v2713_v45  ;;  %2826 = vst [vmem:[%s7128_s4 + $0x100] sm:$0xff] %v2714_v22  ;;  %v2509_v2 = vmul.f32 %v2422_v12, %v6003_v58  ;;  %v2510_v32 = vmul.f32 %v2422_v12, %v6010_v23  ;;  %v2511_v52 = vmul.f32 %v2422_v12, %v6015_v28 }
 0x3e1   :  { %2827 = vst [vmem:[%s7128_s4 + $0x108] sm:$0xff] %v2715_v53  ;;  %2828 = vst.msk [vmem:[%s7128_s4 + $0x110] sm:$0xff] %vm1790_vm0, %v2716_v21  ;;  %v2512_v48 = vmul.f32 %v2422_v12, %v6024_v14  ;;  %v2513_v25 = vmul.f32 %v2422_v12, %v7656_v17  ;;  %v2514_v10 = vmul.f32 %v2422_v12, %v7657_v29  ;;  %v7664_v21 = vld [vmem:[#allocation31_spill] sm:$0xff] }
 0x3e2   :  { %v2515_v6 = vmul.f32 %v2422_v12, %v7658_v9  ;;  %v2717_v61 = vadd.f32 %v6548_v41, %v2509_v2  ;;  %v2718_v34 = vadd.f32 %v6548_v41, %v2510_v32  ;;  %v2719_v5 = vadd.f32 %v6548_v41, %v2511_v52  ;;  %v7665_v2 = vld [vmem:[#allocation26_spill] sm:$0xff] }
 0x3e3   :  { %v2720_v58 = vadd.f32 %v6548_v41, %v2512_v48  ;;  %v2721_v23 = vadd.f32 %v6548_v41, %v2513_v25  ;;  %v2722_v28 = vadd.f32 %v6548_v41, %v2514_v10  ;;  %v7666_v52 = vld [vmem:[#allocation18_spill] sm:$0xff] }
 0x3e4   :  { %v2723_v14 = vadd.f32 %v6548_v41, %v2515_v6  ;;  %2829 = vst [vmem:[%s7128_s4 + $0x118] sm:$0xff] %v2717_v61  ;;  %2830 = vst [vmem:[%s7128_s4 + $0x120] sm:$0xff] %v2718_v34  ;;  %v2427_v27 = vpop.permute.xlu1 %2426  ;;  %v7659_v41 = vld [vmem:[#allocation17_spill] sm:$0xff]  ;;  %v7668_v34 = vld [vmem:[#allocation36_spill] sm:$0xff] }
 0x3e5   :  { %2831 = vst [vmem:[%s7128_s4 + $0x128] sm:$0xff] %v2719_v5  ;;  %2832 = vst [vmem:[%s7128_s4 + $0x130] sm:$0xff] %v2720_v58  ;;  %v2516_v39 = vmul.f32 %v2427_v27, %v7659_v41  ;;  %v2517_v19 = vmul.f32 %v2427_v27, %v7660_v24  ;;  %v2518_v26 = vmul.f32 %v2427_v27, %v7661_v38  ;;  %v7669_v58 = vld [vmem:[#allocation75_spill] sm:$0xff] }
 0x3e6   :  { %2833 = vst [vmem:[%s7128_s4 + $0x138] sm:$0xff] %v2721_v23  ;;  %2834 = vst [vmem:[%s7128_s4 + $0x140] sm:$0xff] %v2722_v28  ;;  %v2519_v42 = vmul.f32 %v2427_v27, %v6058_v4  ;;  %v2520_v31 = vmul.f32 %v2427_v27, %v6065_v57  ;;  %v2521_v54 = vmul.f32 %v2427_v27, %v6075_v20  ;;  %v7670_v28 = vld [vmem:[#allocation76_spill] sm:$0xff] }
 0x3e7   :  { %2835 = vst.msk [vmem:[%s7128_s4 + $0x148] sm:$0xff] %vm1790_vm0, %v2723_v14  ;;  %v2522_v13 = vmul.f32 %v2427_v27, %v6068_v36  ;;  %v2724_v43 = vadd.f32 %v6558_v35, %v2516_v39  ;;  %v2725_v18 = vadd.f32 %v6558_v35, %v2517_v19  ;;  %v2726_v16 = vadd.f32 %v6558_v35, %v2518_v26  ;;  %v7671_v27 = vld [vmem:[#allocation64_spill] sm:$0xff]  ;;  %v7672_v39 = vld [vmem:[#allocation65_spill] sm:$0xff]  ;;  %v7673_v19 = vld [vmem:[#allocation19_spill] sm:$0xff] }
 0x3e8   :  { %v2727_v46 = vadd.f32 %v6558_v35, %v2519_v42  ;;  %v2728_v44 = vadd.f32 %v6558_v35, %v2520_v31  ;;  %v2729_v50 = vadd.f32 %v6558_v35, %v2521_v54 }
 0x3e9   :  { %v2730_v4 = vadd.f32 %v6558_v35, %v2522_v13  ;;  %2836 = vst [vmem:[%s7128_s4 + $0x150] sm:$0xff] %v2724_v43  ;;  %2837 = vst [vmem:[%s7128_s4 + $0x158] sm:$0xff] %v2725_v18 }
 0x3ea   :  { %2838 = vst [vmem:[%s7128_s4 + $0x160] sm:$0xff] %v2726_v16  ;;  %2839 = vst [vmem:[%s7128_s4 + $0x168] sm:$0xff] %v2727_v46  ;;  %v2432_v57 = vpop.permute.xlu1 %2431  ;;  %v7674_v16 = vld [vmem:[#allocation40_spill] sm:$0xff] }
 0x3eb   :  { %2840 = vst [vmem:[%s7128_s4 + $0x170] sm:$0xff] %v2728_v44  ;;  %2841 = vst [vmem:[%s7128_s4 + $0x178] sm:$0xff] %v2729_v50  ;;  %v2523_v36 = vmul.f32 %v2432_v57, %v6078_v55  ;;  %v2524_v20 = vmul.f32 %v2432_v57, %v6081_v49  ;;  %v2525_v35 = vmul.f32 %v2432_v57, %v6087_v51  ;;  %v7675_v44 = vld [vmem:[#allocation41_spill] sm:$0xff] }
 0x3ec   :  { %2842 = vst.msk [vmem:[%s7128_s4 + $0x180] sm:$0xff] %vm1790_vm0, %v2730_v4  ;;  %v2526_v0 = vmul.f32 %v2432_v57, %v6096_v11  ;;  %v2527_v59 = vmul.f32 %v2432_v57, %v6105_v15  ;;  %v2528_v40 = vmul.f32 %v2432_v57, %v6115_v3  ;;  %v2529_v63 = vmul.f32 %v2432_v57, %v6108_v30  ;;  %v7662_v30 = vld [vmem:[#allocation30_spill] sm:$0xff]  ;;  %v7676_v4 = vld [vmem:[#allocation32_spill] sm:$0xff] }
 0x3ed   :  { %v2731_v62 = vadd.f32 %v6552_v33, %v2523_v36  ;;  %v2732_v56 = vadd.f32 %v6552_v33, %v2524_v20  ;;  %v2733_v8 = vadd.f32 %v6552_v33, %v2525_v35  ;;  %v7677_v36 = vld [vmem:[#allocation34_spill] sm:$0xff] }
 0x3ee   :  { %v2734_v55 = vadd.f32 %v6552_v33, %v2526_v0  ;;  %v2735_v49 = vadd.f32 %v6552_v33, %v2527_v59  ;;  %v2736_v51 = vadd.f32 %v6552_v33, %v2528_v40  ;;  %v2737_v11 = vadd.f32 %v6552_v33, %v2529_v63  ;;  %v7663_v33 = vld [vmem:[#allocation23_spill] sm:$0xff]  ;;  %v7678_v35 = vld [vmem:[#allocation66_spill] sm:$0xff]  ;;  %v7680_v63 = vld [vmem:[#allocation21_spill] sm:$0xff] }
 0x3ef   :  { %2843 = vst [vmem:[%s7128_s4 + $0x188] sm:$0xff] %v2731_v62  ;;  %2844 = vst [vmem:[%s7128_s4 + $0x190] sm:$0xff] %v2732_v56  ;;  %v7679_v59 = vld [vmem:[#allocation67_spill] sm:$0xff]  ;;  %v7681_v56 = vld [vmem:[#allocation84_spill] sm:$0xff] }
 0x3f0   :  { %2845 = vst [vmem:[%s7128_s4 + $0x198] sm:$0xff] %v2733_v8  ;;  %2846 = vst [vmem:[%s7128_s4 + $0x1a0] sm:$0xff] %v2734_v55  ;;  %v2437_v15 = vpop.permute.xlu1 %2436 }
 0x3f1   :  { %2847 = vst [vmem:[%s7128_s4 + $0x1a8] sm:$0xff] %v2735_v49  ;;  %2848 = vst [vmem:[%s7128_s4 + $0x1b0] sm:$0xff] %v2736_v51  ;;  %v2530_v3 = vmul.f32 %v2437_v15, %v7662_v30  ;;  %v2531_v45 = vmul.f32 %v2437_v15, %v7663_v33  ;;  %v2532_v22 = vmul.f32 %v2437_v15, %v6124_v37  ;;  %v7682_v33 = vld [vmem:[#allocation42_spill] sm:$0xff] }
 0x3f2   :  { %2849 = vst.msk [vmem:[%s7128_s4 + $0x1b8] sm:$0xff] %vm1790_vm0, %v2737_v11  ;;  %v2533_v53 = vmul.f32 %v2437_v15, %v6138_v60  ;;  %v2534_v12 = vmul.f32 %v2437_v15, %v7664_v21  ;;  %v2535_v32 = vmul.f32 %v2437_v15, %v7665_v2  ;;  %v2536_v48 = vmul.f32 %v2437_v15, %v7666_v52  ;;  %v7684_v21 = vld [vmem:[#allocation35_spill] sm:$0xff]  ;;  %v7685_v2 = vld [vmem:[#allocation37_spill] sm:$0xff]  ;;  %v7686_v52 = vld [vmem:[#allocation68_spill] sm:$0xff] }
 0x3f3   :  { %v2738_v17 = vadd.f32 %v6564_v1, %v2530_v3  ;;  %v2739_v25 = vadd.f32 %v6564_v1, %v2531_v45  ;;  %v2740_v29 = vadd.f32 %v6564_v1, %v2532_v22  ;;  %v7683_v22 = vld [vmem:[#allocation43_spill] sm:$0xff] }
 0x3f4   :  { %v2741_v10 = vadd.f32 %v6564_v1, %v2533_v53  ;;  %v2742_v9 = vadd.f32 %v6564_v1, %v2534_v12  ;;  %v2743_v37 = vadd.f32 %v6564_v1, %v2535_v32  ;;  %v2744_v60 = vadd.f32 %v6564_v1, %v2536_v48  ;;  %v7667_v1 = vld [vmem:[#allocation28_spill] sm:$0xff] }
 0x3f5   :  { %2850 = vst [vmem:[%s7128_s4 + $0x1c0] sm:$0xff] %v2738_v17  ;;  %2851 = vst [vmem:[%s7128_s4 + $0x1c8] sm:$0xff] %v2739_v25  ;;  %v2442_v6 = vpop.permute.xlu0 %2441  ;;  %v7687_v17 = vld [vmem:[#allocation69_spill] sm:$0xff] }
 0x3f6   :  { %2852 = vst [vmem:[%s7128_s4 + $0x1d0] sm:$0xff] %v2740_v29  ;;  %2853 = vst [vmem:[%s7128_s4 + $0x1d8] sm:$0xff] %v2741_v10  ;;  %v2537_v61 = vmul.f32 %v2442_v6, %v7667_v1  ;;  %v2538_v5 = vmul.f32 %v2442_v6, %v7668_v34  ;;  %v2539_v23 = vmul.f32 %v2442_v6, %v7669_v58  ;;  %v7688_v29 = vld [vmem:[#allocation22_spill] sm:$0xff] }
 0x3f7   :  { %2854 = vst [vmem:[%s7128_s4 + $0x1e0] sm:$0xff] %v2742_v9  ;;  %2855 = vst [vmem:[%s7128_s4 + $0x1e8] sm:$0xff] %v2743_v37  ;;  %v2540_v14 = vmul.f32 %v2442_v6, %v7670_v28  ;;  %v2541_v41 = vmul.f32 %v2442_v6, %v7671_v27  ;;  %v2542_v24 = vmul.f32 %v2442_v6, %v7672_v39  ;;  %v7689_v9 = vld [vmem:[#allocation82_spill] sm:$0xff] }
 0x3f8   :  { %2856 = vst.msk [vmem:[%s7128_s4 + $0x1f0] sm:$0xff] %vm1790_vm0, %v2744_v60  ;;  %v2543_v38 = vmul.f32 %v2442_v6, %v7673_v19  ;;  %v2745_v26 = vadd.f32 %v6556_v47, %v2537_v61  ;;  %v2746_v42 = vadd.f32 %v6556_v47, %v2538_v5  ;;  %v2747_v31 = vadd.f32 %v6556_v47, %v2539_v23  ;;  %v7690_v23 = vld [vmem:[#allocation44_spill] sm:$0xff] }
 0x3f9   :  { %v2748_v54 = vadd.f32 %v6556_v47, %v2540_v14  ;;  %v2749_v13 = vadd.f32 %v6556_v47, %v2541_v41  ;;  %v2750_v43 = vadd.f32 %v6556_v47, %v2542_v24  ;;  %v7691_v14 = vld [vmem:[#allocation45_spill] sm:$0xff]  ;;  %v7692_v41 = vld [vmem:[#allocation38_spill] sm:$0xff]  ;;  %v7693_v24 = vld [vmem:[#allocation39_spill] sm:$0xff] }
 0x3fa   :  { %v2751_v18 = vadd.f32 %v6556_v47, %v2543_v38  ;;  %2857 = vst [vmem:[%s7128_s4 + $0x1f8] sm:$0xff] %v2745_v26  ;;  %2858 = vst [vmem:[%s7128_s4 + $0x200] sm:$0xff] %v2746_v42  ;;  %v7694_v38 = vld [vmem:[#allocation70_spill] sm:$0xff]  ;;  %v7695_v42 = vld [vmem:[#allocation71_spill] sm:$0xff] }
 0x3fb   :  { %2859 = vst [vmem:[%s7128_s4 + $0x208] sm:$0xff] %v2747_v31  ;;  %2860 = vst [vmem:[%s7128_s4 + $0x210] sm:$0xff] %v2748_v54  ;;  %v7696_v54 = vld [vmem:[#allocation77_spill] sm:$0xff] }
 0x3fc   :  { %2861 = vst [vmem:[%s7128_s4 + $0x218] sm:$0xff] %v2749_v13  ;;  %2862 = vst [vmem:[%s7128_s4 + $0x220] sm:$0xff] %v2750_v43  ;;  %v2447_v47 = vpop.permute.xlu1 %2446 }
 0x3fd   :  { %2863 = vst.msk [vmem:[%s7128_s4 + $0x228] sm:$0xff] %vm1790_vm0, %v2751_v18  ;;  %v2544_v46 = vmul.f32 %v2447_v47, %v7674_v16  ;;  %v2545_v50 = vmul.f32 %v2447_v47, %v7675_v44  ;;  %v2546_v57 = vmul.f32 %v2447_v47, %v7676_v4  ;;  %v2547_v20 = vmul.f32 %v2447_v47, %v7677_v36  ;;  %v7697_v4 = vld [vmem:[#allocation46_spill] sm:$0xff]  ;;  %v7698_v36 = vld [vmem:[#allocation47_spill] sm:$0xff] }
 0x3fe   :  { %v2548_v0 = vmul.f32 %v2447_v47, %v7678_v35  ;;  %v2549_v40 = vmul.f32 %v2447_v47, %v7679_v59  ;;  %v2550_v62 = vmul.f32 %v2447_v47, %v7680_v63  ;;  %v7699_v35 = vld [vmem:[#allocation57_spill] sm:$0xff]  ;;  %v7700_v59 = vld [vmem:[#allocation58_spill] sm:$0xff]  ;;  %v7701_v63 = vld [vmem:[#allocation72_spill] sm:$0xff] }
 0x3ff   :  { %v2752_v8 = vadd.f32 %v7681_v56, %v2544_v46  ;;  %v2753_v55 = vadd.f32 %v7681_v56, %v2545_v50  ;;  %v2754_v49 = vadd.f32 %v7681_v56, %v2546_v57  ;;  %v2755_v51 = vadd.f32 %v7681_v56, %v2547_v20 }
 0x400   :  { %v2756_v11 = vadd.f32 %v7681_v56, %v2548_v0  ;;  %v2757_v15 = vadd.f32 %v7681_v56, %v2549_v40  ;;  %v2758_v30 = vadd.f32 %v7681_v56, %v2550_v62  ;;  %v7702_v56 = vld [vmem:[#allocation79_spill] sm:$0xff] }
 0x401   :  { %2864 = vst [vmem:[%s7128_s4 + $0x230] sm:$0xff] %v2752_v8  ;;  %2865 = vst [vmem:[%s7128_s4 + $0x238] sm:$0xff] %v2753_v55  ;;  %v2452_v3 = vpop.permute.xlu0 %2451  ;;  %v7703_v55 = vld [vmem:[#allocation78_spill] sm:$0xff] }
 0x402   :  { %2866 = vst [vmem:[%s7128_s4 + $0x240] sm:$0xff] %v2754_v49  ;;  %2867 = vst [vmem:[%s7128_s4 + $0x248] sm:$0xff] %v2755_v51  ;;  %v2551_v45 = vmul.f32 %v2452_v3, %v7682_v33  ;;  %v2552_v53 = vmul.f32 %v2452_v3, %v7683_v22  ;;  %v2553_v12 = vmul.f32 %v2452_v3, %v7684_v21  ;;  %v7704_v51 = vld [vmem:[#allocation83_spill] sm:$0xff]  ;;  %v7705_v21 = vld [vmem:[#allocation48_spill] sm:$0xff] }
 0x403   :  { %2868 = vst [vmem:[%s7128_s4 + $0x250] sm:$0xff] %v2756_v11  ;;  %2869 = vst [vmem:[%s7128_s4 + $0x258] sm:$0xff] %v2757_v15  ;;  %v2554_v32 = vmul.f32 %v2452_v3, %v7685_v2  ;;  %v2555_v48 = vmul.f32 %v2452_v3, %v7686_v52  ;;  %v2556_v25 = vmul.f32 %v2452_v3, %v7687_v17  ;;  %v7706_v2 = vld [vmem:[#allocation49_spill] sm:$0xff]  ;;  %v7707_v52 = vld [vmem:[#allocation59_spill] sm:$0xff] }
 0x404   :  { %2870 = vst.msk [vmem:[%s7128_s4 + $0x260] sm:$0xff] %vm1790_vm0, %v2758_v30  ;;  %v2557_v10 = vmul.f32 %v2452_v3, %v7688_v29  ;;  %v2759_v37 = vadd.f32 %v7689_v9, %v2551_v45  ;;  %v2760_v60 = vadd.f32 %v7689_v9, %v2552_v53  ;;  %v2761_v6 = vadd.f32 %v7689_v9, %v2553_v12  ;;  %v7708_v17 = vld [vmem:[#allocation60_spill] sm:$0xff]  ;;  %v7709_v29 = vld [vmem:[#allocation73_spill] sm:$0xff] }
 0x405   :  { %v2762_v1 = vadd.f32 %v7689_v9, %v2554_v32  ;;  %v2763_v61 = vadd.f32 %v7689_v9, %v2555_v48  ;;  %v2764_v34 = vadd.f32 %v7689_v9, %v2556_v25 }
 0x406   :  { %v2765_v5 = vadd.f32 %v7689_v9, %v2557_v10  ;;  %2871 = vst [vmem:[%s7128_s4 + $0x268] sm:$0xff] %v2759_v37  ;;  %2872 = vst [vmem:[%s7128_s4 + $0x270] sm:$0xff] %v2760_v60  ;;  %v2457_v58 = vpop.permute.xlu1 %2456  ;;  %v7710_v9 = vld [vmem:[#allocation81_spill] sm:$0xff]  ;;  %v7711_v60 = vld [vmem:[#allocation80_spill] sm:$0xff] }
 0x407   :  { %2873 = vst [vmem:[%s7128_s4 + $0x278] sm:$0xff] %v2761_v6  ;;  %2874 = vst [vmem:[%s7128_s4 + $0x280] sm:$0xff] %v2762_v1  ;;  %v2558_v28 = vmul.f32 %v2457_v58, %v7690_v23  ;;  %v2559_v27 = vmul.f32 %v2457_v58, %v7691_v14  ;;  %v2560_v39 = vmul.f32 %v2457_v58, %v7692_v41  ;;  %v7712_v41 = vld [vmem:[#allocation50_spill] sm:$0xff] }
 0x408   :  { %2875 = vst [vmem:[%s7128_s4 + $0x288] sm:$0xff] %v2763_v61  ;;  %2876 = vst [vmem:[%s7128_s4 + $0x290] sm:$0xff] %v2764_v34  ;;  %v2561_v19 = vmul.f32 %v2457_v58, %v7693_v24  ;;  %v2562_v26 = vmul.f32 %v2457_v58, %v7694_v38  ;;  %v2563_v31 = vmul.f32 %v2457_v58, %v7695_v42  ;;  %v7713_v24 = vld [vmem:[#allocation51_spill] sm:$0xff]  ;;  %v7714_v38 = vld [vmem:[#allocation61_spill] sm:$0xff] }
 0x409   :  { %2877 = vst.msk [vmem:[%s7128_s4 + $0x298] sm:$0xff] %vm1790_vm0, %v2765_v5  ;;  %v2564_v13 = vmul.f32 %v2457_v58, %v7696_v54  ;;  %v2766_v43 = vadd.f32 %v6575_v7, %v2558_v28  ;;  %v2767_v18 = vadd.f32 %v6575_v7, %v2559_v27  ;;  %v2768_v47 = vadd.f32 %v6575_v7, %v2560_v39  ;;  %v7715_v42 = vld [vmem:[#allocation62_spill] sm:$0xff] }
 0x40a   :  { %v2769_v16 = vadd.f32 %v6575_v7, %v2561_v19  ;;  %v2770_v46 = vadd.f32 %v6575_v7, %v2562_v26  ;;  %v2771_v44 = vadd.f32 %v6575_v7, %v2563_v31  ;;  %v7716_v54 = vld [vmem:[#allocation74_spill] sm:$0xff] }
 0x40b   :  { %v2772_v50 = vadd.f32 %v6575_v7, %v2564_v13  ;;  %2878 = vst [vmem:[%s7128_s4 + $0x2a0] sm:$0xff] %v2766_v43  ;;  %2879 = vst [vmem:[%s7128_s4 + $0x2a8] sm:$0xff] %v2767_v18  ;;  %v7717_v43 = vld [vmem:[#allocation10_spill] sm:$0xff] }
 0x40c   :  { %2880 = vst [vmem:[%s7128_s4 + $0x2b0] sm:$0xff] %v2768_v47  ;;  %2881 = vst [vmem:[%s7128_s4 + $0x2b8] sm:$0xff] %v2769_v16  ;;  %v2462_v7 = vpop.permute.xlu0 %2461  ;;  %v7718_v47 = vld [vmem:[#allocation24_spill] sm:$0xff] }
 0x40d   :  { %2882 = vst [vmem:[%s7128_s4 + $0x2c0] sm:$0xff] %v2770_v46  ;;  %2883 = vst [vmem:[%s7128_s4 + $0x2c8] sm:$0xff] %v2771_v44  ;;  %v2565_v57 = vmul.f32 %v2462_v7, %v7697_v4  ;;  %v2566_v20 = vmul.f32 %v2462_v7, %v7698_v36  ;;  %v2567_v0 = vmul.f32 %v2462_v7, %v7699_v35 }
 0x40e   :  { %2884 = vst.msk [vmem:[%s7128_s4 + $0x2d0] sm:$0xff] %vm1790_vm0, %v2772_v50  ;;  %v2568_v40 = vmul.f32 %v2462_v7, %v7700_v59  ;;  %v2569_v62 = vmul.f32 %v2462_v7, %v7701_v63  ;;  %v2570_v8 = vmul.f32 %v2462_v7, %v7702_v56  ;;  %v2571_v49 = vmul.f32 %v2462_v7, %v7703_v55 }
 0x40f   :  { %v2773_v11 = vadd.f32 %v7704_v51, %v2565_v57  ;;  %v2774_v15 = vadd.f32 %v7704_v51, %v2566_v20  ;;  %v2775_v30 = vadd.f32 %v7704_v51, %v2567_v0 }
 0x410   :  { %v2776_v3 = vadd.f32 %v7704_v51, %v2568_v40  ;;  %v2777_v33 = vadd.f32 %v7704_v51, %v2569_v62  ;;  %v2778_v45 = vadd.f32 %v7704_v51, %v2570_v8  ;;  %v2779_v22 = vadd.f32 %v7704_v51, %v2571_v49 }
 0x411   :  { %2885 = vst [vmem:[%s7128_s4 + $0x2d8] sm:$0xff] %v2773_v11  ;;  %2886 = vst [vmem:[%s7128_s4 + $0x2e0] sm:$0xff] %v2774_v15  ;;  %v2467_v53 = vpop.permute.xlu1 %2466 }
 0x412   :  { %2887 = vst [vmem:[%s7128_s4 + $0x2e8] sm:$0xff] %v2775_v30  ;;  %2888 = vst [vmem:[%s7128_s4 + $0x2f0] sm:$0xff] %v2776_v3  ;;  %v2572_v12 = vmul.f32 %v2467_v53, %v7705_v21  ;;  %v2573_v32 = vmul.f32 %v2467_v53, %v7706_v2  ;;  %v2574_v48 = vmul.f32 %v2467_v53, %v7707_v52 }
 0x413   :  { %2889 = vst [vmem:[%s7128_s4 + $0x2f8] sm:$0xff] %v2777_v33  ;;  %2890 = vst [vmem:[%s7128_s4 + $0x300] sm:$0xff] %v2778_v45  ;;  %v2575_v25 = vmul.f32 %v2467_v53, %v7708_v17  ;;  %v2576_v10 = vmul.f32 %v2467_v53, %v7709_v29  ;;  %v2577_v37 = vmul.f32 %v2467_v53, %v7710_v9 }
 0x414   :  { %2891 = vst.msk [vmem:[%s7128_s4 + $0x308] sm:$0xff] %vm1790_vm0, %v2779_v22  ;;  %v2578_v6 = vmul.f32 %v2467_v53, %v7711_v60 }
 0x415   :  { %v2675_v1 = vpop.permute.xlu1 %2674 }
 0x416   :  { %v2780_v61 = vadd.f32 %v2675_v1, %v2572_v12  ;;  %v2781_v34 = vadd.f32 %v2675_v1, %v2573_v32  ;;  %v2782_v5 = vadd.f32 %v2675_v1, %v2574_v48  ;;  %v2783_v58 = vadd.f32 %v2675_v1, %v2575_v25 }
 0x417   :  { %v2784_v23 = vadd.f32 %v2675_v1, %v2576_v10  ;;  %v2785_v28 = vadd.f32 %v2675_v1, %v2577_v37  ;;  %v2786_v14 = vadd.f32 %v2675_v1, %v2578_v6 }
 0x418   :  { %2892 = vst [vmem:[%s7128_s4 + $0x310] sm:$0xff] %v2780_v61  ;;  %2893 = vst [vmem:[%s7128_s4 + $0x318] sm:$0xff] %v2781_v34 }
 0x419   :  { %2894 = vst [vmem:[%s7128_s4 + $0x320] sm:$0xff] %v2782_v5  ;;  %2895 = vst [vmem:[%s7128_s4 + $0x328] sm:$0xff] %v2783_v58 }
 0x41a   :  { %2896 = vst [vmem:[%s7128_s4 + $0x330] sm:$0xff] %v2784_v23  ;;  %2897 = vst [vmem:[%s7128_s4 + $0x338] sm:$0xff] %v2785_v28 }
 0x41b   :  { %2898 = vst.msk [vmem:[%s7128_s4 + $0x340] sm:$0xff] %vm1790_vm0, %v2786_v14 }
 0x44d   :  { %v2472_v27 = vpop.permute.xlu0 %2471 }
 0x44e   :  { %v2579_v39 = vmul.f32 %v2472_v27, %v7712_v41  ;;  %v2580_v19 = vmul.f32 %v2472_v27, %v7713_v24  ;;  %v2581_v26 = vmul.f32 %v2472_v27, %v7714_v38  ;;  %v2582_v31 = vmul.f32 %v2472_v27, %v7715_v42 }
 0x44f   :  { %v2583_v13 = vmul.f32 %v2472_v27, %v7716_v54  ;;  %v2584_v18 = vmul.f32 %v2472_v27, %v7717_v43  ;;  %v2585_v16 = vmul.f32 %v2472_v27, %v7718_v47 }
 0x451   :  { %v2680_v46 = vpop.permute.xlu0 %2679 }
 0x452   :  { %v2787_v44 = vadd.f32 %v2680_v46, %v2579_v39  ;;  %v2788_v50 = vadd.f32 %v2680_v46, %v2580_v19  ;;  %v2789_v7 = vadd.f32 %v2680_v46, %v2581_v26  ;;  %v2790_v4 = vadd.f32 %v2680_v46, %v2582_v31 }
 0x453   :  { %v2791_v57 = vadd.f32 %v2680_v46, %v2583_v13  ;;  %v2792_v36 = vadd.f32 %v2680_v46, %v2584_v18  ;;  %v2793_v20 = vadd.f32 %v2680_v46, %v2585_v16 }
 0x454   :  { %2899 = vst [vmem:[%s7128_s4 + $0x348] sm:$0xff] %v2787_v44  ;;  %2900 = vst [vmem:[%s7128_s4 + $0x350] sm:$0xff] %v2788_v50 }
 0x455   :  { %2901 = vst [vmem:[%s7128_s4 + $0x358] sm:$0xff] %v2789_v7  ;;  %2902 = vst [vmem:[%s7128_s4 + $0x360] sm:$0xff] %v2790_v4 }
 0x456   :  { %2903 = vst [vmem:[%s7128_s4 + $0x368] sm:$0xff] %v2791_v57  ;;  %2904 = vst [vmem:[%s7128_s4 + $0x370] sm:$0xff] %v2792_v36 }
 0x457   :  { %2905 = vst.msk [vmem:[%s7128_s4 + $0x378] sm:$0xff] %vm1790_vm0, %v2793_v20 }

</bundles_post_ra>
